<compile_context>
chip_gen: v6e
topology: v6e:2x2x1
jax: 0.10.0
libtpu: 0.0.40
codegen_flags: <defaults>
</compile_context>

<pallas_src>
import math
from functools import partial

import jax
import jax.numpy as jnp
from jax.experimental import pallas as pl
from jax.experimental.pallas import tpu as pltpu


# Storage/compute dtype for the MXU matmuls (set to jnp.float32 for a
# bit-closer match to the f32 torch reference).
MM_DTYPE = jnp.bfloat16

# Packed per-layer parameter arrays (leading L axis):
#   vecs  : (L, 6, D)  rows = [ln1w, ln1b, ln2w, ln2b, bo, b2]   (f32)
#   wqkv  : (L, D, 3D) fused QKV weight, q columns pre-scaled    (bf16)
#   bqkv  : (L, 1, 3D) fused QKV bias                            (f32)
#   wo    : (L, D, D)  output projection                         (bf16)
#   w1    : (L, D, M)  MLP up                                    (bf16)
#   b1    : (L, 1, M)                                            (f32)
#   w2    : (L, M, D)  MLP down                                  (bf16)
_ENC_NAMES = ('vecs', 'wqkv', 'bqkv', 'wo', 'w1', 'b1', 'w2')

_VMEM_LIMIT_BYTES = 64 * 1024 * 1024


def _round_up(x, m):
    return ((x + m - 1) // m) * m


# ----------------------------- in-kernel helpers -----------------------------

def _erf_approx(z):
    # Abramowitz-Stegun 7.1.26 (|err| < 1.5e-7): GELU matches torch.nn.GELU
    # (exact erf) to f32 precision using only exp/mul/add (EUP + VPU).
    a1, a2, a3, a4, a5 = 0.254829592, -0.284496736, 1.421413741, -1.453152027, 1.061405429
    t = 1.0 / (1.0 + 0.3275911 * jnp.abs(z))
    poly = ((((a5 * t + a4) * t + a3) * t + a2) * t + a1) * t
    pos = 1.0 - poly * jnp.exp(-z * z)
    return jnp.where(z >= 0.0, pos, -pos)


def _gelu_exact(x):
    return 0.5 * x * (1.0 + _erf_approx(x * (1.0 / math.sqrt(2.0))))


def _layer_norm(x, w, b, eps=1e-6):
    mu = jnp.mean(x, axis=-1, keepdims=True)
    var = jnp.mean(jnp.square(x - mu), axis=-1, keepdims=True)
    return (x - mu) * jax.lax.rsqrt(var + eps) * w + b


def _encoder_layer(x, num_heads, vecs, wqkv, bqkv, wo, w1, b1, w2, *,
                   cls_only=False):
    """One pre-LN transformer encoder block on an (S, D) f32 activation.

    If cls_only, only the CLS (row 0) output is returned, shape (1, D).
    The 1/sqrt(hd) attention scale is already folded into wqkv/bqkv (q part).
    """
    S, D = x.shape
    H = num_heads
    hd = D // H
    mmdt = wqkv.dtype

    ln1w, ln1b = vecs[0:1], vecs[1:2]
    ln2w, ln2b = vecs[2:3], vecs[3:4]
    bo, b2 = vecs[4:5], vecs[5:6]

    # ---- multi-head self-attention ----
    h = _layer_norm(x, ln1w, ln1b)                                       # f32
    # Fused QKV: one full-width (S, D) @ (D, 3D) MXU matmul.
    qkv = jnp.dot(h.astype(mmdt), wqkv,
                  preferred_element_type=jnp.float32) + bqkv             # (S, 3D)

    km = qkv[:, D:2 * D].astype(mmdt)                                    # (S, D)
    vm = qkv[:, 2 * D:3 * D].astype(mmdt)                                # (S, D)
    if cls_only:
        qm = qkv[0:1, 0:D].astype(mmdt)                                  # (1, D)
        x_res = x[0:1, :]
    else:
        qm = qkv[:, 0:D].astype(mmdt)                                    # (S, D)
        x_res = x

    # Per-head attention on static lane slices (hd-wide), f32 softmax stats.
    heads_out = []
    for hh in range(H):
        sl = slice(hh * hd, (hh + 1) * hd)
        s_h = jax.lax.dot_general(qm[:, sl], km[:, sl],
                                  (((1,), (1,)), ((), ())),
                                  preferred_element_type=jnp.float32)    # (Sq, S)
        s_h = s_h - jnp.max(s_h, axis=-1, keepdims=True)
        p_h = jnp.exp(s_h)
        p_h = p_h * pl.reciprocal(jnp.sum(p_h, axis=-1, keepdims=True),
                                  approx=True)
        heads_out.append(jnp.dot(p_h.astype(mmdt), vm[:, sl],
                                 preferred_element_type=jnp.float32))    # (Sq, hd)
    oh = jnp.concatenate(heads_out, axis=-1)                             # (Sq, D)

    # Single K=D output projection (replaces H small K=hd matmuls + sum).
    attn = jnp.dot(oh.astype(mmdt), wo,
                   preferred_element_type=jnp.float32) + bo              # (Sq, D)
    x1 = x_res + attn                                                    # residual

    # ---- MLP block ----
    h2 = _layer_norm(x1, ln2w, ln2b)
    m = jnp.dot(h2.astype(mmdt), w1, preferred_element_type=jnp.float32) + b1
    m = _gelu_exact(m)
    m = jnp.dot(m.astype(mmdt), w2, preferred_element_type=jnp.float32) + b2
    return x1 + m


# --------------------------------- kernels -----------------------------------

def matmul_bias_kernel(x_ref, w_ref, b_ref, o_ref, acc_ref):
    @pl.when(pl.program_id(2) == 0)
    def _():
        acc_ref[...] = jnp.zeros_like(acc_ref)

    acc_ref[...] += jnp.dot(x_ref[...].astype(w_ref.dtype), w_ref[...],
                            preferred_element_type=jnp.float32)

    @pl.when(pl.program_id(2) == pl.num_programs(2) - 1)
    def _():
        o_ref[...] = (acc_ref[...] + b_ref[...].astype(jnp.float32)
                      ).astype(o_ref.dtype)


def encoder_stack_kernel(num_heads, nb,
                         x_ref, vecs_ref, wqkv_ref, bqkv_ref, wo_ref,
                         w1_ref, b1_ref, w2_ref, lnf_ref,
                         cls_ref, act_ref):
    """grid=(N//nb, L): the layer axis carries an (nb, S, D) activation in a
    VMEM scratch (weights are streamed once per nb images); the final
    LayerNorm of the CLS rows is fused at the last layer."""
    layer = pl.program_id(1)
    last = layer == pl.num_programs(1) - 1

    @pl.when(layer == 0)
    def _():
        act_ref[...] = x_ref[...].astype(jnp.float32)

    for i in range(nb):
        y = _encoder_layer(act_ref[i], num_heads,
                           vecs_ref[0], wqkv_ref[0], bqkv_ref[0], wo_ref[0],
                           w1_ref[0], b1_ref[0], w2_ref[0])
        act_ref[i] = y

        @pl.when(last)
        def _(y=y, i=i):
            cls = _layer_norm(y[0:1, :], lnf_ref[0:1, :], lnf_ref[1:2, :])
            cls_ref[i] = cls.astype(cls_ref.dtype)


def extras_kernel(num_heads, ids_ref, x_ref,
                  vecs_ref, wqkv_ref, bqkv_ref, wo_ref, w1_ref, b1_ref, w2_ref,
                  o_ref):
    """grid=(E, N): layer outer (weights fetched once per extras layer), batch
    inner.  Applies one scalar-prefetch-selected encoder layer to x0 and emits
    only the CLS row (torch extras branch: layers not chained, no positional
    embedding, no final LayerNorm)."""
    x = x_ref[0].astype(jnp.float32)
    cls = _encoder_layer(x, num_heads,
                         vecs_ref[0], wqkv_ref[0], bqkv_ref[0], wo_ref[0],
                         w1_ref[0], b1_ref[0], w2_ref[0],
                         cls_only=True)
    o_ref[0, 0] = cls.astype(o_ref.dtype)


# ------------------------------ pallas wrappers -------------------------------

def pallas_linear(x2d, w, b, *, tm=256, tn=512, tk=512):
    """Tiled y = x @ w + b with an f32 VMEM accumulator over K.  Inputs are
    zero-padded up to the tile sizes (no silent untiled fallback)."""
    M, K = x2d.shape
    N = w.shape[1]
    bm = min(tm, _round_up(M, 8))
    bn = min(tn, _round_up(N, 128))
    bk = min(tk, _round_up(K, 128))
    Mp, Np, Kp = _round_up(M, bm), _round_up(N, bn), _round_up(K, bk)
    if (Mp, Kp) != (M, K):
        x2d = jnp.pad(x2d, ((0, Mp - M), (0, Kp - K)))
    if (Kp, Np) != (K, N):
        w = jnp.pad(w, ((0, Kp - K), (0, Np - N)))
    if Np != N:
        b = jnp.pad(b, ((0, 0), (0, Np - N)))

    out = pl.pallas_call(
        matmul_bias_kernel,
        out_shape=jax.ShapeDtypeStruct((Mp, Np), x2d.dtype),
        grid=(Mp // bm, Np // bn, Kp // bk),
        in_specs=[pl.BlockSpec((bm, bk), lambda i, j, k: (i, k)),
                  pl.BlockSpec((bk, bn), lambda i, j, k: (k, j)),
                  pl.BlockSpec((1, bn), lambda i, j, k: (0, j))],
        out_specs=pl.BlockSpec((bm, bn), lambda i, j, k: (i, j)),
        scratch_shapes=[pltpu.VMEM((bm, bn), jnp.float32)],
        compiler_params=pltpu.CompilerParams(
            dimension_semantics=("parallel", "parallel", "arbitrary")),
    )(x2d, w, b)
    if (Mp, Np) != (M, N):
        out = out[:M, :N]
    return out


def _pick_nb(n):
    # Sub-batch per grid step: amortize weight DMA, but keep the parallel
    # batch grid axis >= 2 when possible so both v7x TensorCores stay busy.
    for cand in (4, 2):
        if n % cand == 0 and n // cand >= 2:
            return cand
    return 1


def pallas_encoder(x0_pos, enc, lnf, num_heads):
    """All L chained layers + final LN of the CLS row (pos already added)."""
    N, S, D = x0_pos.shape
    L = enc['wqkv'].shape[0]
    nb = _pick_nb(N)
    ops = [enc[name] for name in _ENC_NAMES]

    def wspec(a):
        ndim = a.ndim - 1
        return pl.BlockSpec((1,) + a.shape[1:],
                            lambda b, l, _n=ndim: (l,) + (0,) * _n)

    in_specs = ([pl.BlockSpec((nb, S, D), lambda b, l: (b, 0, 0))]
                + [wspec(a) for a in ops]
                + [pl.BlockSpec((2, D), lambda b, l: (0, 0))])

    return pl.pallas_call(
        partial(encoder_stack_kernel, num_heads, nb),
        out_shape=jax.ShapeDtypeStruct((N, 1, D), jnp.float32),
        grid=(N // nb, L),
        in_specs=in_specs,
        out_specs=pl.BlockSpec((nb, 1, D), lambda b, l: (b, 0, 0)),
        scratch_shapes=[pltpu.VMEM((nb, S, D), jnp.float32)],
        compiler_params=pltpu.CompilerParams(
            dimension_semantics=("parallel", "arbitrary"),
            vmem_limit_bytes=_VMEM_LIMIT_BYTES),
    )(x0_pos, *ops, lnf)


def pallas_extra_layers(x0, enc, ids, num_heads):
    """Layers ids[e] applied independently to x0; returns CLS rows (E,N,1,D)."""
    N, S, D = x0.shape
    E = ids.shape[0]
    ops = [enc[name] for name in _ENC_NAMES]

    def wspec(a):
        ndim = a.ndim - 1
        return pl.BlockSpec(
            (1,) + a.shape[1:],
            lambda e, b, ids_ref, _n=ndim: (ids_ref[e],) + (0,) * _n)

    in_specs = ([pl.BlockSpec((1, S, D), lambda e, b, ids_ref: (b, 0, 0))]
                + [wspec(a) for a in ops])

    return pl.pallas_call(
        partial(extras_kernel, num_heads),
        out_shape=jax.ShapeDtypeStruct((E, N, 1, D), jnp.float32),
        grid_spec=pltpu.PrefetchScalarGridSpec(
            num_scalar_prefetch=1,
            grid=(E, N),
            in_specs=in_specs,
            out_specs=pl.BlockSpec((1, 1, 1, D),
                                   lambda e, b, ids_ref: (e, b, 0, 0))),
        compiler_params=pltpu.CompilerParams(
            dimension_semantics=("parallel", "arbitrary"),
            vmem_limit_bytes=_VMEM_LIMIT_BYTES),
    )(ids, x0, *ops)


# ------------------------------- model (glue) ---------------------------------

def extract_patches(x, p):
    # NCHW -> (N, num_patches, C*p*p), flattened in (c, ph, pw) order to match
    # Conv2d(kernel=stride=p) weight flattening.
    N, C, H, W = x.shape
    nh, nw = H // p, W // p
    x = x.reshape(N, C, nh, p, nw, p)
    x = x.transpose(0, 2, 4, 1, 3, 5)
    return x.reshape(N, nh * nw, C * p * p)


def vit_forward(x, params, *, patch, heads, extra_layers=(3, 7, 11)):
    N = x.shape[0]
    D = params['patch_w'].shape[1]

    # _process_input: conv_proj(kernel=stride=patch) as patch-extract + matmul,
    # fed in bf16 at the source (halves the patch-projection DMA).
    patches = extract_patches(x, patch).astype(params['patch_w'].dtype)
    P = patches.shape[1]
    tok = pallas_linear(patches.reshape(N * P, -1),
                        params['patch_w'], params['patch_b'])
    tok = tok.reshape(N, P, D)

    cls = jnp.broadcast_to(params['class_token'].astype(tok.dtype), (N, 1, D))
    x0 = jnp.concatenate([cls, tok], axis=1)                  # (N, S, D)

    enc = params['enc']

    # Extras branch: layers {3,7,11} applied independently to the SAME x0
    # (as in the torch forward: x is never reassigned in that loop and the
    # positional embedding is only added inside encoder.forward).
    ids = jnp.asarray(extra_layers, dtype=jnp.int32)
    extras_cls = pallas_extra_layers(x0, enc, ids, heads)     # (E, N, 1, D)

    # Full encoder: positional embedding added here (wrapper-side, free XLA
    # fusion), then the chained layers + final LN of the CLS row.
    x0_pos = x0.astype(jnp.float32) + params['pos_embedding']
    final_cls = pallas_encoder(x0_pos, enc, params['lnf'], heads)  # (N, 1, D)

    # One lane-dense batched classification head for all 4 projections
    # (pallas_linear pads the class dim up to 128 internally).
    E = ids.shape[0]
    rows = jnp.concatenate([extras_cls.reshape(E * N, D),
                            final_cls.reshape(N, D)], axis=0)  # (E*N + N, D)
    logits = pallas_linear(rows, params['head_w'], params['head_b'])
    extras = [logits[i * N:(i + 1) * N] for i in range(E)]
    y = logits[E * N:]
    return (y, extras[0], extras[1], extras[2])


# ------------------------------ parameter init --------------------------------

def init_params(key, *, image, patch, hidden, mlp, layers, heads, classes,
                mm_dtype=MM_DTYPE):
    assert hidden % heads == 0
    D, M, H, L = hidden, mlp, heads, layers
    hd = D // H
    seq = (image // patch) ** 2 + 1
    cpp = 3 * patch * patch
    f32 = jnp.float32
    keys = jax.random.split(key, 2 + L)

    conv_std = math.sqrt(1.0 / cpp)
    conv_w = jax.random.truncated_normal(keys[0], -2.0, 2.0, (D, cpp), f32) * conv_std
    params = {
        'patch_w': conv_w.T.astype(mm_dtype),   # == conv_proj.weight.reshape(D,-1).T
        'patch_b': jnp.zeros((1, D), f32),
        'class_token': jnp.zeros((1, 1, D), f32),
        'pos_embedding': jax.random.normal(keys[1], (1, seq, D), f32) * 0.02,
        'lnf': jnp.concatenate([jnp.ones((1, D), f32),
                                jnp.zeros((1, D), f32)], axis=0),   # (2, D)
        # torch zero-initialises the classification head (logits are 0 exactly).
        'head_w': jnp.zeros((D, classes), mm_dtype),
        'head_b': jnp.zeros((1, classes), f32),
    }

    scale = 1.0 / math.sqrt(hd)                 # folded into the q part of wqkv
    attn_bound = math.sqrt(6.0 / (4.0 * D))     # xavier_uniform on (3D, D) in_proj
    out_bound = math.sqrt(1.0 / D)
    mlp1_bound = math.sqrt(6.0 / (D + M))
    mlp2_bound = math.sqrt(6.0 / (M + D))

    vecs_l, wqkv_l, bqkv_l, wo_l, w1_l, b1_l, w2_l = [], [], [], [], [], [], []
    ones_d, zeros_d = jnp.ones((1, D), f32), jnp.zeros((1, D), f32)
    for i in range(L):
        lk = jax.random.split(keys[2 + i], 8)
        wq = jax.random.uniform(lk[0], (D, D), f32, -attn_bound, attn_bound)
        wk = jax.random.uniform(lk[1], (D, D), f32, -attn_bound, attn_bound)
        wv = jax.random.uniform(lk[2], (D, D), f32, -attn_bound, attn_bound)
        wo = jax.random.uniform(lk[3], (D, D), f32, -out_bound, out_bound)
        w1 = jax.random.uniform(lk[4], (D, M), f32, -mlp1_bound, mlp1_bound)
        w2 = jax.random.uniform(lk[5], (M, D), f32, -mlp2_bound, mlp2_bound)
        b1 = jax.random.normal(lk[6], (1, M), f32) * 1e-6
        b2 = jax.random.normal(lk[7], (1, D), f32) * 1e-6

        wqkv_l.append(jnp.concatenate([wq * scale, wk, wv], axis=1).astype(mm_dtype))
        bqkv_l.append(jnp.zeros((1, 3 * D), f32))        # torch MHA in_proj_bias = 0
        wo_l.append(wo.astype(mm_dtype))
        w1_l.append(w1.astype(mm_dtype))
        b1_l.append(b1)
        w2_l.append(w2.astype(mm_dtype))
        # packed small per-layer vectors: [ln1w, ln1b, ln2w, ln2b, bo, b2]
        vecs_l.append(jnp.concatenate(
            [ones_d, zeros_d, ones_d, zeros_d, zeros_d, b2], axis=0))  # (6, D)

    params['enc'] = {
        'vecs': jnp.stack(vecs_l),
        'wqkv': jnp.stack(wqkv_l),
        'bqkv': jnp.stack(bqkv_l),
        'wo': jnp.stack(wo_l),
        'w1': jnp.stack(w1_l),
        'b1': jnp.stack(b1_l),
        'w2': jnp.stack(w2_l),
    }
    return params


# ----------------------------------- main --------------------------------------

if __name__ == "__main__":
    # Small config: 12 layers so the extras at i in {3,7,11} exist; hidden dim
    # chosen lane-dense (128) so every feature axis fills the 128-lane vregs.
    image, patch = 16, 8
    num_layers, num_heads = 12, 4
    hidden_dim, mlp_dim, num_classes = 128, 256, 10
    batch = 2

    key = jax.random.PRNGKey(0)
    kx, kp = jax.random.split(key)
    x = jax.random.normal(kx, (batch, 3, image, image), jnp.float32)  # NCHW
    params = init_params(kp, image=image, patch=patch, hidden=hidden_dim,
                         mlp=mlp_dim, layers=num_layers, heads=num_heads,
                         classes=num_classes)

    fwd = jax.jit(partial(vit_forward, patch=patch, heads=num_heads))
    out = fwd(x, params)
    out = jax.block_until_ready(out)

    assert out[0].shape == (batch, num_classes)
    assert all(e.shape == (batch, num_classes) for e in out[1:])
    assert all(bool(jnp.all(jnp.isfinite(o))) for o in out)
    print("KERNEL_OK")
</pallas_src>

<mosaic_0001>
module attributes {stable_mosaic.version = 11 : i64} {
  func.func @matmul_bias_kernel(%arg0: i32, %arg1: i32, %arg2: i32, %arg3: memref<8x256xbf16, #tpu.memory_space<vmem>>, %arg4: memref<256x128xbf16, #tpu.memory_space<vmem>>, %arg5: memref<1x128xf32, #tpu.memory_space<vmem>>, %arg6: memref<8x128xbf16, #tpu.memory_space<vmem>>, %arg7: memref<8x128xf32, #tpu.memory_space<vmem>>) attributes {dimension_semantics = [#tpu.dimension_semantics<parallel>, #tpu.dimension_semantics<parallel>, #tpu.dimension_semantics<arbitrary>], iteration_bounds = array<i64: 1, 1, 1>, scalar_prefetch = 0 : i64, scratch_operands = 1 : i64, tpu.core_type = #tpu.core_type<tc>, window_params = [{transform_indices = @transform_0, window_bounds = array<i64: 8, 256>}, {transform_indices = @transform_1, window_bounds = array<i64: 256, 128>}, {transform_indices = @transform_2, window_bounds = array<i64: 1, 128>}, {transform_indices = @transform_3, window_bounds = array<i64: 8, 128>}]} {
    %c0_i32 = arith.constant 0 : i32
    %0 = arith.cmpi eq, %arg2, %c0_i32 : i32
    %1 = arith.extui %0 : i1 to i32
    %c0_i32_0 = arith.constant 0 : i32
    %2 = arith.cmpi ne, %1, %c0_i32_0 : i32
    scf.if %2 {
      %cst_10 = arith.constant 0.000000e+00 : f32
      %12 = vector.broadcast %cst_10 : f32 to vector<8x128xf32>
      %c0_11 = arith.constant 0 : index
      %c0_12 = arith.constant 0 : index
      %13 = vector.load %arg7[%c0_11, %c0_12] : memref<8x128xf32, #tpu.memory_space<vmem>>, vector<8x128xf32>
      tpu.vector_store %arg7[%c0_11, %c0_12], %12 {strides = array<i32>} : memref<8x128xf32, #tpu.memory_space<vmem>>, vector<8x128xf32>,
    } else {
    }
    %c0 = arith.constant 0 : index
    %c0_1 = arith.constant 0 : index
    %3 = vector.load %arg7[%c0, %c0_1] : memref<8x128xf32, #tpu.memory_space<vmem>>, vector<8x128xf32>
    %c0_2 = arith.constant 0 : index
    %c0_3 = arith.constant 0 : index
    %4 = vector.load %arg3[%c0_2, %c0_3] : memref<8x256xbf16, #tpu.memory_space<vmem>>, vector<8x256xbf16>
    %c0_4 = arith.constant 0 : index
    %c0_5 = arith.constant 0 : index
    %5 = vector.load %arg4[%c0_4, %c0_5] : memref<256x128xbf16, #tpu.memory_space<vmem>>, vector<256x128xbf16>
    %cst = arith.constant dense<0.000000e+00> : vector<8x128xf32>
    %6 = tpu.matmul %4, %5, %cst {dimension_numbers = #tpu.dot_dimension_numbers<[1], [0], [0], [1], [0, 0, 1, 1], [], []>} : vector<8x256xbf16>, vector<256x128xbf16>, vector<8x128xf32> -> vector<8x128xf32>
    %7 = arith.addf %3, %6 : vector<8x128xf32>
    %c0_6 = arith.constant 0 : index
    %c0_7 = arith.constant 0 : index
    %8 = vector.load %arg7[%c0_6, %c0_7] : memref<8x128xf32, #tpu.memory_space<vmem>>, vector<8x128xf32>
    tpu.vector_store %arg7[%c0_6, %c0_7], %7 {strides = array<i32>} : memref<8x128xf32, #tpu.memory_space<vmem>>, vector<8x128xf32>,
    %c0_i32_8 = arith.constant 0 : i32
    %9 = arith.cmpi eq, %arg2, %c0_i32_8 : i32
    %10 = arith.extui %9 : i1 to i32
    %c0_i32_9 = arith.constant 0 : i32
    %11 = arith.cmpi ne, %10, %c0_i32_9 : i32
    scf.if %11 {
      %c0_10 = arith.constant 0 : index
      %c0_11 = arith.constant 0 : index
      %12 = vector.load %arg7[%c0_10, %c0_11] : memref<8x128xf32, #tpu.memory_space<vmem>>, vector<8x128xf32>
      %c0_12 = arith.constant 0 : index
      %c0_13 = arith.constant 0 : index
      %13 = vector.load %arg5[%c0_12, %c0_13] : memref<1x128xf32, #tpu.memory_space<vmem>>, vector<1x128xf32>
      %14 = vector.broadcast %13 : vector<1x128xf32> to vector<8x128xf32>
      %15 = arith.addf %12, %14 : vector<8x128xf32>
      %16 = arith.truncf %15 : vector<8x128xf32> to vector<8x128xbf16>
      %c0_14 = arith.constant 0 : index
      %c0_15 = arith.constant 0 : index
      %17 = vector.load %arg6[%c0_14, %c0_15] : memref<8x128xbf16, #tpu.memory_space<vmem>>, vector<8x128xbf16>
      tpu.vector_store %arg6[%c0_14, %c0_15], %16 {strides = array<i32>} : memref<8x128xbf16, #tpu.memory_space<vmem>>, vector<8x128xbf16>,
    } else {
    }
    return
  }
  func.func @transform_0(%arg0: i32, %arg1: i32, %arg2: i32) -> (i32, i32) {
    %c0_i32 = arith.constant 0 : i32
    return %arg0, %arg2 : i32, i32
  }
  func.func @transform_1(%arg0: i32, %arg1: i32, %arg2: i32) -> (i32, i32) {
    %c0_i32 = arith.constant 0 : i32
    return %arg2, %arg1 : i32, i32
  }
  func.func @transform_2(%arg0: i32, %arg1: i32, %arg2: i32) -> (i32, i32) {
    %c0_i32 = arith.constant 0 : i32
    %c0_i32_0 = arith.constant 0 : i32
    return %c0_i32, %arg1 : i32, i32
  }
  func.func @transform_3(%arg0: i32, %arg1: i32, %arg2: i32) -> (i32, i32) {
    %c0_i32 = arith.constant 0 : i32
    return %arg0, %arg1 : i32, i32
  }
}

module attributes {stable_mosaic.version = 11 : i64} {
  func.func @encoder_stack_kernel(%arg0: i32, %arg1: i32, %arg2: memref<1x5x128xf32, #tpu.memory_space<vmem>>, %arg3: memref<1x6x128xf32, #tpu.memory_space<vmem>>, %arg4: memref<1x128x384xbf16, #tpu.memory_space<vmem>>, %arg5: memref<1x1x384xf32, #tpu.memory_space<vmem>>, %arg6: memref<1x128x128xbf16, #tpu.memory_space<vmem>>, %arg7: memref<1x128x256xbf16, #tpu.memory_space<vmem>>, %arg8: memref<1x1x256xf32, #tpu.memory_space<vmem>>, %arg9: memref<1x256x128xbf16, #tpu.memory_space<vmem>>, %arg10: memref<2x128xf32, #tpu.memory_space<vmem>>, %arg11: memref<1x1x128xf32, #tpu.memory_space<vmem>>, %arg12: memref<1x5x128xf32, #tpu.memory_space<vmem>>) attributes {dimension_semantics = [#tpu.dimension_semantics<parallel>, #tpu.dimension_semantics<arbitrary>], iteration_bounds = array<i64: 2, 12>, scalar_prefetch = 0 : i64, scratch_operands = 1 : i64, tpu.core_type = #tpu.core_type<tc>, window_params = [{transform_indices = @transform_0, window_bounds = array<i64: 1, 5, 128>}, {transform_indices = @transform_1, window_bounds = array<i64: 1, 6, 128>}, {transform_indices = @transform_2, window_bounds = array<i64: 1, 128, 384>}, {transform_indices = @transform_3, window_bounds = array<i64: 1, 1, 384>}, {transform_indices = @transform_4, window_bounds = array<i64: 1, 128, 128>}, {transform_indices = @transform_5, window_bounds = array<i64: 1, 128, 256>}, {transform_indices = @transform_6, window_bounds = array<i64: 1, 1, 256>}, {transform_indices = @transform_7, window_bounds = array<i64: 1, 256, 128>}, {pipeline_mode = #tpu.pipeline_mode<synchronous>, transform_indices = @transform_8, window_bounds = array<i64: 2, 128>}, {transform_indices = @transform_9, window_bounds = array<i64: 1, 1, 128>}]} {
    %c11_i32 = arith.constant 11 : i32
    %0 = arith.cmpi eq, %arg1, %c11_i32 : i32
    %c0_i32 = arith.constant 0 : i32
    %1 = arith.cmpi eq, %arg1, %c0_i32 : i32
    %2 = arith.extui %1 : i1 to i32
    %c0_i32_0 = arith.constant 0 : i32
    %3 = arith.cmpi ne, %2, %c0_i32_0 : i32
    scf.if %3 {
      %c0_72 = arith.constant 0 : index
      %c0_73 = arith.constant 0 : index
      %c0_74 = arith.constant 0 : index
      %204 = vector.load %arg2[%c0_72, %c0_73, %c0_74] : memref<1x5x128xf32, #tpu.memory_space<vmem>>, vector<1x5x128xf32>
      %c0_75 = arith.constant 0 : index
      %c0_76 = arith.constant 0 : index
      %c0_77 = arith.constant 0 : index
      %205 = vector.load %arg12[%c0_75, %c0_76, %c0_77] : memref<1x5x128xf32, #tpu.memory_space<vmem>>, vector<1x5x128xf32>
      tpu.vector_store %arg12[%c0_75, %c0_76, %c0_77], %204 {strides = array<i32>} : memref<1x5x128xf32, #tpu.memory_space<vmem>>, vector<1x5x128xf32>,
    } else {
    }
    %c0 = arith.constant 0 : index
    %c0_1 = arith.constant 0 : index
    %c0_2 = arith.constant 0 : index
    %4 = vector.load %arg12[%c0, %c0_1, %c0_2] : memref<1x5x128xf32, #tpu.memory_space<vmem>>, vector<1x5x128xf32>
    %5 = vector.shape_cast %4 : vector<1x5x128xf32> to vector<5x128xf32>
    %c0_3 = arith.constant 0 : index
    %c0_4 = arith.constant 0 : index
    %c0_5 = arith.constant 0 : index
    %6 = vector.load %arg3[%c0_3, %c0_4, %c0_5] : memref<1x6x128xf32, #tpu.memory_space<vmem>>, vector<1x6x128xf32>
    %7 = vector.shape_cast %6 : vector<1x6x128xf32> to vector<6x128xf32>
    %c0_6 = arith.constant 0 : index
    %c0_7 = arith.constant 0 : index
    %c0_8 = arith.constant 0 : index
    %8 = vector.load %arg4[%c0_6, %c0_7, %c0_8] : memref<1x128x384xbf16, #tpu.memory_space<vmem>>, vector<1x128x384xbf16>
    %9 = vector.shape_cast %8 : vector<1x128x384xbf16> to vector<128x384xbf16>
    %c0_9 = arith.constant 0 : index
    %c0_10 = arith.constant 0 : index
    %c0_11 = arith.constant 0 : index
    %10 = vector.load %arg5[%c0_9, %c0_10, %c0_11] : memref<1x1x384xf32, #tpu.memory_space<vmem>>, vector<1x1x384xf32>
    %11 = vector.shape_cast %10 : vector<1x1x384xf32> to vector<1x384xf32>
    %c0_12 = arith.constant 0 : index
    %c0_13 = arith.constant 0 : index
    %c0_14 = arith.constant 0 : index
    %12 = vector.load %arg6[%c0_12, %c0_13, %c0_14] : memref<1x128x128xbf16, #tpu.memory_space<vmem>>, vector<1x128x128xbf16>
    %13 = vector.shape_cast %12 : vector<1x128x128xbf16> to vector<128x128xbf16>
    %c0_15 = arith.constant 0 : index
    %c0_16 = arith.constant 0 : index
    %c0_17 = arith.constant 0 : index
    %14 = vector.load %arg7[%c0_15, %c0_16, %c0_17] : memref<1x128x256xbf16, #tpu.memory_space<vmem>>, vector<1x128x256xbf16>
    %15 = vector.shape_cast %14 : vector<1x128x256xbf16> to vector<128x256xbf16>
    %c0_18 = arith.constant 0 : index
    %c0_19 = arith.constant 0 : index
    %c0_20 = arith.constant 0 : index
    %16 = vector.load %arg8[%c0_18, %c0_19, %c0_20] : memref<1x1x256xf32, #tpu.memory_space<vmem>>, vector<1x1x256xf32>
    %17 = vector.shape_cast %16 : vector<1x1x256xf32> to vector<1x256xf32>
    %c0_21 = arith.constant 0 : index
    %c0_22 = arith.constant 0 : index
    %c0_23 = arith.constant 0 : index
    %18 = vector.load %arg9[%c0_21, %c0_22, %c0_23] : memref<1x256x128xbf16, #tpu.memory_space<vmem>>, vector<1x256x128xbf16>
    %19 = vector.shape_cast %18 : vector<1x256x128xbf16> to vector<256x128xbf16>
    %20 = vector.extract_strided_slice %7 {offsets = [0, 0], sizes = [1, 128], strides = [1, 1]} : vector<6x128xf32> to vector<1x128xf32>
    %21 = vector.extract_strided_slice %7 {offsets = [1, 0], sizes = [1, 128], strides = [1, 1]} : vector<6x128xf32> to vector<1x128xf32>
    %22 = vector.extract_strided_slice %7 {offsets = [2, 0], sizes = [1, 128], strides = [1, 1]} : vector<6x128xf32> to vector<1x128xf32>
    %23 = vector.extract_strided_slice %7 {offsets = [3, 0], sizes = [1, 128], strides = [1, 1]} : vector<6x128xf32> to vector<1x128xf32>
    %24 = vector.extract_strided_slice %7 {offsets = [4, 0], sizes = [1, 128], strides = [1, 1]} : vector<6x128xf32> to vector<1x128xf32>
    %25 = vector.extract_strided_slice %7 {offsets = [5, 0], sizes = [1, 128], strides = [1, 1]} : vector<6x128xf32> to vector<1x128xf32>
    %cst = arith.constant dense<0.000000e+00> : vector<5xf32>
    %26 = vector.multi_reduction <add>, %5, %cst [1] : vector<5x128xf32> to vector<5xf32>
    %27 = vector.shape_cast %26 : vector<5xf32> to vector<5x1xf32>
    %cst_24 = arith.constant 1.280000e+02 : f32
    %28 = vector.broadcast %cst_24 : f32 to vector<5x1xf32>
    %29 = arith.divf %27, %28 : vector<5x1xf32>
    %30 = vector.broadcast %29 : vector<5x1xf32> to vector<5x128xf32>
    %31 = arith.subf %5, %30 : vector<5x128xf32>
    %32 = arith.mulf %31, %31 : vector<5x128xf32>
    %cst_25 = arith.constant dense<0.000000e+00> : vector<5xf32>
    %33 = vector.multi_reduction <add>, %32, %cst_25 [1] : vector<5x128xf32> to vector<5xf32>
    %34 = vector.shape_cast %33 : vector<5xf32> to vector<5x1xf32>
    %cst_26 = arith.constant 1.280000e+02 : f32
    %35 = vector.broadcast %cst_26 : f32 to vector<5x1xf32>
    %36 = arith.divf %34, %35 : vector<5x1xf32>
    %37 = vector.broadcast %29 : vector<5x1xf32> to vector<5x128xf32>
    %38 = arith.subf %5, %37 : vector<5x128xf32>
    %cst_27 = arith.constant 9.99999997E-7 : f32
    %39 = vector.broadcast %cst_27 : f32 to vector<5x1xf32>
    %40 = arith.addf %36, %39 : vector<5x1xf32>
    %41 = math.rsqrt %40 : vector<5x1xf32>
    %42 = vector.broadcast %41 : vector<5x1xf32> to vector<5x128xf32>
    %43 = arith.mulf %38, %42 : vector<5x128xf32>
    %44 = vector.broadcast %20 : vector<1x128xf32> to vector<5x128xf32>
    %45 = arith.mulf %43, %44 : vector<5x128xf32>
    %46 = vector.broadcast %21 : vector<1x128xf32> to vector<5x128xf32>
    %47 = arith.addf %45, %46 : vector<5x128xf32>
    %48 = arith.truncf %47 : vector<5x128xf32> to vector<5x128xbf16>
    %cst_28 = arith.constant dense<0.000000e+00> : vector<5x384xf32>
    %49 = tpu.matmul %48, %9, %cst_28 {dimension_numbers = #tpu.dot_dimension_numbers<[1], [0], [0], [1], [0, 0, 1, 1], [], []>} : vector<5x128xbf16>, vector<128x384xbf16>, vector<5x384xf32> -> vector<5x384xf32>
    %50 = vector.broadcast %11 : vector<1x384xf32> to vector<5x384xf32>
    %51 = arith.addf %49, %50 : vector<5x384xf32>
    %52 = vector.extract_strided_slice %51 {offsets = [0, 128], sizes = [5, 128], strides = [1, 1]} : vector<5x384xf32> to vector<5x128xf32>
    %53 = arith.truncf %52 : vector<5x128xf32> to vector<5x128xbf16>
    %54 = vector.extract_strided_slice %51 {offsets = [0, 256], sizes = [5, 128], strides = [1, 1]} : vector<5x384xf32> to vector<5x128xf32>
    %55 = arith.truncf %54 : vector<5x128xf32> to vector<5x128xbf16>
    %56 = vector.extract_strided_slice %51 {offsets = [0, 0], sizes = [5, 128], strides = [1, 1]} : vector<5x384xf32> to vector<5x128xf32>
    %57 = arith.truncf %56 : vector<5x128xf32> to vector<5x128xbf16>
    %58 = vector.extract_strided_slice %57 {offsets = [0, 0], sizes = [5, 32], strides = [1, 1]} : vector<5x128xbf16> to vector<5x32xbf16>
    %59 = vector.extract_strided_slice %53 {offsets = [0, 0], sizes = [5, 32], strides = [1, 1]} : vector<5x128xbf16> to vector<5x32xbf16>
    %cst_29 = arith.constant dense<0.000000e+00> : vector<5x5xf32>
    %60 = tpu.matmul %58, %59, %cst_29 {dimension_numbers = #tpu.dot_dimension_numbers<[1], [1], [0], [0], [0, 0, 1, 0], [], []>} : vector<5x32xbf16>, vector<5x32xbf16>, vector<5x5xf32> -> vector<5x5xf32>
    %cst_30 = arith.constant dense<0xFF800000> : vector<5xf32>
    %61 = vector.multi_reduction <maximumf>, %60, %cst_30 [1] : vector<5x5xf32> to vector<5xf32>
    %62 = vector.shape_cast %61 : vector<5xf32> to vector<5x1xf32>
    %63 = vector.broadcast %62 : vector<5x1xf32> to vector<5x5xf32>
    %64 = arith.subf %60, %63 : vector<5x5xf32>
    %65 = math.exp %64 : vector<5x5xf32>
    %cst_31 = arith.constant dense<0.000000e+00> : vector<5xf32>
    %66 = vector.multi_reduction <add>, %65, %cst_31 [1] : vector<5x5xf32> to vector<5xf32>
    %67 = vector.shape_cast %66 : vector<5xf32> to vector<5x1xf32>
    %68 = tpu.reciprocal %67 {approx = true} : vector<5x1xf32> -> vector<5x1xf32>
    %69 = vector.broadcast %68 : vector<5x1xf32> to vector<5x5xf32>
    %70 = arith.mulf %65, %69 : vector<5x5xf32>
    %71 = arith.truncf %70 : vector<5x5xf32> to vector<5x5xbf16>
    %72 = vector.extract_strided_slice %55 {offsets = [0, 0], sizes = [5, 32], strides = [1, 1]} : vector<5x128xbf16> to vector<5x32xbf16>
    %cst_32 = arith.constant dense<0.000000e+00> : vector<5x32xf32>
    %73 = tpu.matmul %71, %72, %cst_32 {dimension_numbers = #tpu.dot_dimension_numbers<[1], [0], [0], [1], [0, 0, 1, 1], [], []>} : vector<5x5xbf16>, vector<5x32xbf16>, vector<5x32xf32> -> vector<5x32xf32>
    %74 = vector.extract_strided_slice %57 {offsets = [0, 32], sizes = [5, 32], strides = [1, 1]} : vector<5x128xbf16> to vector<5x32xbf16>
    %75 = vector.extract_strided_slice %53 {offsets = [0, 32], sizes = [5, 32], strides = [1, 1]} : vector<5x128xbf16> to vector<5x32xbf16>
    %cst_33 = arith.constant dense<0.000000e+00> : vector<5x5xf32>
    %76 = tpu.matmul %74, %75, %cst_33 {dimension_numbers = #tpu.dot_dimension_numbers<[1], [1], [0], [0], [0, 0, 1, 0], [], []>} : vector<5x32xbf16>, vector<5x32xbf16>, vector<5x5xf32> -> vector<5x5xf32>
    %cst_34 = arith.constant dense<0xFF800000> : vector<5xf32>
    %77 = vector.multi_reduction <maximumf>, %76, %cst_34 [1] : vector<5x5xf32> to vector<5xf32>
    %78 = vector.shape_cast %77 : vector<5xf32> to vector<5x1xf32>
    %79 = vector.broadcast %78 : vector<5x1xf32> to vector<5x5xf32>
    %80 = arith.subf %76, %79 : vector<5x5xf32>
    %81 = math.exp %80 : vector<5x5xf32>
    %cst_35 = arith.constant dense<0.000000e+00> : vector<5xf32>
    %82 = vector.multi_reduction <add>, %81, %cst_35 [1] : vector<5x5xf32> to vector<5xf32>
    %83 = vector.shape_cast %82 : vector<5xf32> to vector<5x1xf32>
    %84 = tpu.reciprocal %83 {approx = true} : vector<5x1xf32> -> vector<5x1xf32>
    %85 = vector.broadcast %84 : vector<5x1xf32> to vector<5x5xf32>
    %86 = arith.mulf %81, %85 : vector<5x5xf32>
    %87 = arith.truncf %86 : vector<5x5xf32> to vector<5x5xbf16>
    %88 = vector.extract_strided_slice %55 {offsets = [0, 32], sizes = [5, 32], strides = [1, 1]} : vector<5x128xbf16> to vector<5x32xbf16>
    %cst_36 = arith.constant dense<0.000000e+00> : vector<5x32xf32>
    %89 = tpu.matmul %87, %88, %cst_36 {dimension_numbers = #tpu.dot_dimension_numbers<[1], [0], [0], [1], [0, 0, 1, 1], [], []>} : vector<5x5xbf16>, vector<5x32xbf16>, vector<5x32xf32> -> vector<5x32xf32>
    %90 = vector.extract_strided_slice %57 {offsets = [0, 64], sizes = [5, 32], strides = [1, 1]} : vector<5x128xbf16> to vector<5x32xbf16>
    %91 = vector.extract_strided_slice %53 {offsets = [0, 64], sizes = [5, 32], strides = [1, 1]} : vector<5x128xbf16> to vector<5x32xbf16>
    %cst_37 = arith.constant dense<0.000000e+00> : vector<5x5xf32>
    %92 = tpu.matmul %90, %91, %cst_37 {dimension_numbers = #tpu.dot_dimension_numbers<[1], [1], [0], [0], [0, 0, 1, 0], [], []>} : vector<5x32xbf16>, vector<5x32xbf16>, vector<5x5xf32> -> vector<5x5xf32>
    %cst_38 = arith.constant dense<0xFF800000> : vector<5xf32>
    %93 = vector.multi_reduction <maximumf>, %92, %cst_38 [1] : vector<5x5xf32> to vector<5xf32>
    %94 = vector.shape_cast %93 : vector<5xf32> to vector<5x1xf32>
    %95 = vector.broadcast %94 : vector<5x1xf32> to vector<5x5xf32>
    %96 = arith.subf %92, %95 : vector<5x5xf32>
    %97 = math.exp %96 : vector<5x5xf32>
    %cst_39 = arith.constant dense<0.000000e+00> : vector<5xf32>
    %98 = vector.multi_reduction <add>, %97, %cst_39 [1] : vector<5x5xf32> to vector<5xf32>
    %99 = vector.shape_cast %98 : vector<5xf32> to vector<5x1xf32>
    %100 = tpu.reciprocal %99 {approx = true} : vector<5x1xf32> -> vector<5x1xf32>
    %101 = vector.broadcast %100 : vector<5x1xf32> to vector<5x5xf32>
    %102 = arith.mulf %97, %101 : vector<5x5xf32>
    %103 = arith.truncf %102 : vector<5x5xf32> to vector<5x5xbf16>
    %104 = vector.extract_strided_slice %55 {offsets = [0, 64], sizes = [5, 32], strides = [1, 1]} : vector<5x128xbf16> to vector<5x32xbf16>
    %cst_40 = arith.constant dense<0.000000e+00> : vector<5x32xf32>
    %105 = tpu.matmul %103, %104, %cst_40 {dimension_numbers = #tpu.dot_dimension_numbers<[1], [0], [0], [1], [0, 0, 1, 1], [], []>} : vector<5x5xbf16>, vector<5x32xbf16>, vector<5x32xf32> -> vector<5x32xf32>
    %106 = vector.extract_strided_slice %57 {offsets = [0, 96], sizes = [5, 32], strides = [1, 1]} : vector<5x128xbf16> to vector<5x32xbf16>
    %107 = vector.extract_strided_slice %53 {offsets = [0, 96], sizes = [5, 32], strides = [1, 1]} : vector<5x128xbf16> to vector<5x32xbf16>
    %cst_41 = arith.constant dense<0.000000e+00> : vector<5x5xf32>
    %108 = tpu.matmul %106, %107, %cst_41 {dimension_numbers = #tpu.dot_dimension_numbers<[1], [1], [0], [0], [0, 0, 1, 0], [], []>} : vector<5x32xbf16>, vector<5x32xbf16>, vector<5x5xf32> -> vector<5x5xf32>
    %cst_42 = arith.constant dense<0xFF800000> : vector<5xf32>
    %109 = vector.multi_reduction <maximumf>, %108, %cst_42 [1] : vector<5x5xf32> to vector<5xf32>
    %110 = vector.shape_cast %109 : vector<5xf32> to vector<5x1xf32>
    %111 = vector.broadcast %110 : vector<5x1xf32> to vector<5x5xf32>
    %112 = arith.subf %108, %111 : vector<5x5xf32>
    %113 = math.exp %112 : vector<5x5xf32>
    %cst_43 = arith.constant dense<0.000000e+00> : vector<5xf32>
    %114 = vector.multi_reduction <add>, %113, %cst_43 [1] : vector<5x5xf32> to vector<5xf32>
    %115 = vector.shape_cast %114 : vector<5xf32> to vector<5x1xf32>
    %116 = tpu.reciprocal %115 {approx = true} : vector<5x1xf32> -> vector<5x1xf32>
    %117 = vector.broadcast %116 : vector<5x1xf32> to vector<5x5xf32>
    %118 = arith.mulf %113, %117 : vector<5x5xf32>
    %119 = arith.truncf %118 : vector<5x5xf32> to vector<5x5xbf16>
    %120 = vector.extract_strided_slice %55 {offsets = [0, 96], sizes = [5, 32], strides = [1, 1]} : vector<5x128xbf16> to vector<5x32xbf16>
    %cst_44 = arith.constant dense<0.000000e+00> : vector<5x32xf32>
    %121 = tpu.matmul %119, %120, %cst_44 {dimension_numbers = #tpu.dot_dimension_numbers<[1], [0], [0], [1], [0, 0, 1, 1], [], []>} : vector<5x5xbf16>, vector<5x32xbf16>, vector<5x32xf32> -> vector<5x32xf32>
    %122 = tpu.concatenate %73, %89, %105, %121 in 1 : vector<5x32xf32>, vector<5x32xf32>, vector<5x32xf32>, vector<5x32xf32> -> vector<5x128xf32>
    %123 = arith.truncf %122 : vector<5x128xf32> to vector<5x128xbf16>
    %cst_45 = arith.constant dense<0.000000e+00> : vector<5x128xf32>
    %124 = tpu.matmul %123, %13, %cst_45 {dimension_numbers = #tpu.dot_dimension_numbers<[1], [0], [0], [1], [0, 0, 1, 1], [], []>} : vector<5x128xbf16>, vector<128x128xbf16>, vector<5x128xf32> -> vector<5x128xf32>
    %125 = vector.broadcast %24 : vector<1x128xf32> to vector<5x128xf32>
    %126 = arith.addf %124, %125 : vector<5x128xf32>
    %127 = arith.addf %5, %126 : vector<5x128xf32>
    %cst_46 = arith.constant dense<0.000000e+00> : vector<5xf32>
    %128 = vector.multi_reduction <add>, %127, %cst_46 [1] : vector<5x128xf32> to vector<5xf32>
    %129 = vector.shape_cast %128 : vector<5xf32> to vector<5x1xf32>
    %cst_47 = arith.constant 1.280000e+02 : f32
    %130 = vector.broadcast %cst_47 : f32 to vector<5x1xf32>
    %131 = arith.divf %129, %130 : vector<5x1xf32>
    %132 = vector.broadcast %131 : vector<5x1xf32> to vector<5x128xf32>
    %133 = arith.subf %127, %132 : vector<5x128xf32>
    %134 = arith.mulf %133, %133 : vector<5x128xf32>
    %cst_48 = arith.constant dense<0.000000e+00> : vector<5xf32>
    %135 = vector.multi_reduction <add>, %134, %cst_48 [1] : vector<5x128xf32> to vector<5xf32>
    %136 = vector.shape_cast %135 : vector<5xf32> to vector<5x1xf32>
    %cst_49 = arith.constant 1.280000e+02 : f32
    %137 = vector.broadcast %cst_49 : f32 to vector<5x1xf32>
    %138 = arith.divf %136, %137 : vector<5x1xf32>
    %139 = vector.broadcast %131 : vector<5x1xf32> to vector<5x128xf32>
    %140 = arith.subf %127, %139 : vector<5x128xf32>
    %cst_50 = arith.constant 9.99999997E-7 : f32
    %141 = vector.broadcast %cst_50 : f32 to vector<5x1xf32>
    %142 = arith.addf %138, %141 : vector<5x1xf32>
    %143 = math.rsqrt %142 : vector<5x1xf32>
    %144 = vector.broadcast %143 : vector<5x1xf32> to vector<5x128xf32>
    %145 = arith.mulf %140, %144 : vector<5x128xf32>
    %146 = vector.broadcast %22 : vector<1x128xf32> to vector<5x128xf32>
    %147 = arith.mulf %145, %146 : vector<5x128xf32>
    %148 = vector.broadcast %23 : vector<1x128xf32> to vector<5x128xf32>
    %149 = arith.addf %147, %148 : vector<5x128xf32>
    %150 = arith.truncf %149 : vector<5x128xf32> to vector<5x128xbf16>
    %cst_51 = arith.constant dense<0.000000e+00> : vector<5x256xf32>
    %151 = tpu.matmul %150, %15, %cst_51 {dimension_numbers = #tpu.dot_dimension_numbers<[1], [0], [0], [1], [0, 0, 1, 1], [], []>} : vector<5x128xbf16>, vector<128x256xbf16>, vector<5x256xf32> -> vector<5x256xf32>
    %152 = vector.broadcast %17 : vector<1x256xf32> to vector<5x256xf32>
    %153 = arith.addf %151, %152 : vector<5x256xf32>
    %cst_52 = arith.constant 5.000000e-01 : f32
    %154 = vector.broadcast %cst_52 : f32 to vector<5x256xf32>
    %155 = arith.mulf %154, %153 : vector<5x256xf32>
    %cst_53 = arith.constant 0.707106769 : f32
    %156 = vector.broadcast %cst_53 : f32 to vector<5x256xf32>
    %157 = arith.mulf %153, %156 : vector<5x256xf32>
    %158 = math.absf %157 : vector<5x256xf32>
    %cst_54 = arith.constant 0.327591091 : f32
    %159 = vector.broadcast %cst_54 : f32 to vector<5x256xf32>
    %160 = arith.mulf %159, %158 : vector<5x256xf32>
    %cst_55 = arith.constant 1.000000e+00 : f32
    %161 = vector.broadcast %cst_55 : f32 to vector<5x256xf32>
    %162 = arith.addf %161, %160 : vector<5x256xf32>
    %cst_56 = arith.constant 1.000000e+00 : f32
    %163 = vector.broadcast %cst_56 : f32 to vector<5x256xf32>
    %164 = arith.divf %163, %162 : vector<5x256xf32>
    %cst_57 = arith.constant 1.06140542 : f32
    %165 = vector.broadcast %cst_57 : f32 to vector<5x256xf32>
    %166 = arith.mulf %165, %164 : vector<5x256xf32>
    %cst_58 = arith.constant -1.45315206 : f32
    %167 = vector.broadcast %cst_58 : f32 to vector<5x256xf32>
    %168 = arith.addf %166, %167 : vector<5x256xf32>
    %169 = arith.mulf %168, %164 : vector<5x256xf32>
    %cst_59 = arith.constant 1.42141378 : f32
    %170 = vector.broadcast %cst_59 : f32 to vector<5x256xf32>
    %171 = arith.addf %169, %170 : vector<5x256xf32>
    %172 = arith.mulf %171, %164 : vector<5x256xf32>
    %cst_60 = arith.constant -0.284496725 : f32
    %173 = vector.broadcast %cst_60 : f32 to vector<5x256xf32>
    %174 = arith.addf %172, %173 : vector<5x256xf32>
    %175 = arith.mulf %174, %164 : vector<5x256xf32>
    %cst_61 = arith.constant 0.254829586 : f32
    %176 = vector.broadcast %cst_61 : f32 to vector<5x256xf32>
    %177 = arith.addf %175, %176 : vector<5x256xf32>
    %178 = arith.mulf %177, %164 : vector<5x256xf32>
    %cst_62 = arith.constant 0.000000e+00 : f32
    %179 = vector.broadcast %cst_62 : f32 to vector<5x256xf32>
    %180 = arith.subf %179, %157 : vector<5x256xf32>
    %181 = arith.mulf %180, %157 : vector<5x256xf32>
    %182 = math.exp %181 : vector<5x256xf32>
    %183 = arith.mulf %178, %182 : vector<5x256xf32>
    %cst_63 = arith.constant 1.000000e+00 : f32
    %184 = vector.broadcast %cst_63 : f32 to vector<5x256xf32>
    %185 = arith.subf %184, %183 : vector<5x256xf32>
    %cst_64 = arith.constant 0.000000e+00 : f32
    %186 = vector.broadcast %cst_64 : f32 to vector<5x256xf32>
    %187 = arith.cmpf oge, %157, %186 : vector<5x256xf32>
    %cst_65 = arith.constant 0.000000e+00 : f32
    %188 = vector.broadcast %cst_65 : f32 to vector<5x256xf32>
    %189 = arith.subf %188, %185 : vector<5x256xf32>
    %190 = arith.select %187, %185, %189 : vector<5x256xi1>, vector<5x256xf32>
    %cst_66 = arith.constant 1.000000e+00 : f32
    %191 = vector.broadcast %cst_66 : f32 to vector<5x256xf32>
    %192 = arith.addf %191, %190 : vector<5x256xf32>
    %193 = arith.mulf %155, %192 : vector<5x256xf32>
    %194 = arith.truncf %193 : vector<5x256xf32> to vector<5x256xbf16>
    %cst_67 = arith.constant dense<0.000000e+00> : vector<5x128xf32>
    %195 = tpu.matmul %194, %19, %cst_67 {dimension_numbers = #tpu.dot_dimension_numbers<[1], [0], [0], [1], [0, 0, 1, 1], [], []>} : vector<5x256xbf16>, vector<256x128xbf16>, vector<5x128xf32> -> vector<5x128xf32>
    %196 = vector.broadcast %25 : vector<1x128xf32> to vector<5x128xf32>
    %197 = arith.addf %195, %196 : vector<5x128xf32>
    %198 = arith.addf %127, %197 : vector<5x128xf32>
    %c0_68 = arith.constant 0 : index
    %c0_69 = arith.constant 0 : index
    %c0_70 = arith.constant 0 : index
    %199 = vector.load %arg12[%c0_68, %c0_69, %c0_70] : memref<1x5x128xf32, #tpu.memory_space<vmem>>, vector<1x5x128xf32>
    %200 = vector.shape_cast %199 : vector<1x5x128xf32> to vector<5x128xf32>
    %201 = vector.shape_cast %198 : vector<5x128xf32> to vector<1x5x128xf32>
    tpu.vector_store %arg12[%c0_68, %c0_69, %c0_70], %201 {strides = array<i32>} : memref<1x5x128xf32, #tpu.memory_space<vmem>>, vector<1x5x128xf32>,
    %202 = arith.extui %0 : i1 to i32
    %c0_i32_71 = arith.constant 0 : i32
    %203 = arith.cmpi ne, %202, %c0_i32_71 : i32
    scf.if %203 {
      %204 = vector.extract_strided_slice %198 {offsets = [0, 0], sizes = [1, 128], strides = [1, 1]} : vector<5x128xf32> to vector<1x128xf32>
      %c0_72 = arith.constant 0 : index
      %c0_73 = arith.constant 0 : index
      %205 = vector.load %arg10[%c0_72, %c0_73] : memref<2x128xf32, #tpu.memory_space<vmem>>, vector<1x128xf32>
      %c1 = arith.constant 1 : index
      %c0_74 = arith.constant 0 : index
      %206 = vector.load %arg10[%c1, %c0_74] : memref<2x128xf32, #tpu.memory_space<vmem>>, vector<1x128xf32>
      %cst_75 = arith.constant dense<0.000000e+00> : vector<1xf32>
      %207 = vector.multi_reduction <add>, %204, %cst_75 [1] : vector<1x128xf32> to vector<1xf32>
      %208 = vector.shape_cast %207 : vector<1xf32> to vector<1x1xf32>
      %cst_76 = arith.constant 1.280000e+02 : f32
      %209 = vector.broadcast %cst_76 : f32 to vector<1x1xf32>
      %210 = arith.divf %208, %209 : vector<1x1xf32>
      %211 = vector.broadcast %210 : vector<1x1xf32> to vector<1x128xf32>
      %212 = arith.subf %204, %211 : vector<1x128xf32>
      %213 = arith.mulf %212, %212 : vector<1x128xf32>
      %cst_77 = arith.constant dense<0.000000e+00> : vector<1xf32>
      %214 = vector.multi_reduction <add>, %213, %cst_77 [1] : vector<1x128xf32> to vector<1xf32>
      %215 = vector.shape_cast %214 : vector<1xf32> to vector<1x1xf32>
      %cst_78 = arith.constant 1.280000e+02 : f32
      %216 = vector.broadcast %cst_78 : f32 to vector<1x1xf32>
      %217 = arith.divf %215, %216 : vector<1x1xf32>
      %218 = vector.broadcast %210 : vector<1x1xf32> to vector<1x128xf32>
      %219 = arith.subf %204, %218 : vector<1x128xf32>
      %cst_79 = arith.constant 9.99999997E-7 : f32
      %220 = vector.broadcast %cst_79 : f32 to vector<1x1xf32>
      %221 = arith.addf %217, %220 : vector<1x1xf32>
      %222 = math.rsqrt %221 : vector<1x1xf32>
      %223 = vector.broadcast %222 : vector<1x1xf32> to vector<1x128xf32>
      %224 = arith.mulf %219, %223 : vector<1x128xf32>
      %225 = arith.mulf %224, %205 : vector<1x128xf32>
      %226 = arith.addf %225, %206 : vector<1x128xf32>
      %c0_80 = arith.constant 0 : index
      %c0_81 = arith.constant 0 : index
      %c0_82 = arith.constant 0 : index
      %227 = vector.load %arg11[%c0_80, %c0_81, %c0_82] : memref<1x1x128xf32, #tpu.memory_space<vmem>>, vector<1x1x128xf32>
      %228 = vector.shape_cast %227 : vector<1x1x128xf32> to vector<1x128xf32>
      %229 = vector.shape_cast %226 : vector<1x128xf32> to vector<1x1x128xf32>
      tpu.vector_store %arg11[%c0_80, %c0_81, %c0_82], %229 {strides = array<i32>} : memref<1x1x128xf32, #tpu.memory_space<vmem>>, vector<1x1x128xf32>,
    } else {
    }
    return
  }
  func.func @transform_0(%arg0: i32, %arg1: i32) -> (i32, i32, i32) {
    %c0_i32 = arith.constant 0 : i32
    %c0_i32_0 = arith.constant 0 : i32
    %c0_i32_1 = arith.constant 0 : i32
    return %arg0, %c0_i32, %c0_i32_0 : i32, i32, i32
  }
  func.func @transform_1(%arg0: i32, %arg1: i32) -> (i32, i32, i32) {
    %c0_i32 = arith.constant 0 : i32
    %c0_i32_0 = arith.constant 0 : i32
    %c0_i32_1 = arith.constant 0 : i32
    return %arg1, %c0_i32, %c0_i32_0 : i32, i32, i32
  }
  func.func @transform_2(%arg0: i32, %arg1: i32) -> (i32, i32, i32) {
    %c0_i32 = arith.constant 0 : i32
    %c0_i32_0 = arith.constant 0 : i32
    %c0_i32_1 = arith.constant 0 : i32
    return %arg1, %c0_i32, %c0_i32_0 : i32, i32, i32
  }
  func.func @transform_3(%arg0: i32, %arg1: i32) -> (i32, i32, i32) {
    %c0_i32 = arith.constant 0 : i32
    %c0_i32_0 = arith.constant 0 : i32
    %c0_i32_1 = arith.constant 0 : i32
    return %arg1, %c0_i32, %c0_i32_0 : i32, i32, i32
  }
  func.func @transform_4(%arg0: i32, %arg1: i32) -> (i32, i32, i32) {
    %c0_i32 = arith.constant 0 : i32
    %c0_i32_0 = arith.constant 0 : i32
    %c0_i32_1 = arith.constant 0 : i32
    return %arg1, %c0_i32, %c0_i32_0 : i32, i32, i32
  }
  func.func @transform_5(%arg0: i32, %arg1: i32) -> (i32, i32, i32) {
    %c0_i32 = arith.constant 0 : i32
    %c0_i32_0 = arith.constant 0 : i32
    %c0_i32_1 = arith.constant 0 : i32
    return %arg1, %c0_i32, %c0_i32_0 : i32, i32, i32
  }
  func.func @transform_6(%arg0: i32, %arg1: i32) -> (i32, i32, i32) {
    %c0_i32 = arith.constant 0 : i32
    %c0_i32_0 = arith.constant 0 : i32
    %c0_i32_1 = arith.constant 0 : i32
    return %arg1, %c0_i32, %c0_i32_0 : i32, i32, i32
  }
  func.func @transform_7(%arg0: i32, %arg1: i32) -> (i32, i32, i32) {
    %c0_i32 = arith.constant 0 : i32
    %c0_i32_0 = arith.constant 0 : i32
    %c0_i32_1 = arith.constant 0 : i32
    return %arg1, %c0_i32, %c0_i32_0 : i32, i32, i32
  }
  func.func @transform_8(%arg0: i32, %arg1: i32) -> (i32, i32) {
    %c0_i32 = arith.constant 0 : i32
    %c0_i32_0 = arith.constant 0 : i32
    %c0_i32_1 = arith.constant 0 : i32
    return %c0_i32, %c0_i32_0 : i32, i32
  }
  func.func @transform_9(%arg0: i32, %arg1: i32) -> (i32, i32, i32) {
    %c0_i32 = arith.constant 0 : i32
    %c0_i32_0 = arith.constant 0 : i32
    %c0_i32_1 = arith.constant 0 : i32
    return %arg0, %c0_i32, %c0_i32_0 : i32, i32, i32
  }
}

module attributes {stable_mosaic.version = 11 : i64} {
  func.func @extras_kernel(%arg0: i32, %arg1: i32, %arg2: memref<3xi32, #tpu.memory_space<smem>>, %arg3: memref<1x5x128xbf16, #tpu.memory_space<vmem>>, %arg4: memref<1x6x128xf32, #tpu.memory_space<vmem>>, %arg5: memref<1x128x384xbf16, #tpu.memory_space<vmem>>, %arg6: memref<1x1x384xf32, #tpu.memory_space<vmem>>, %arg7: memref<1x128x128xbf16, #tpu.memory_space<vmem>>, %arg8: memref<1x128x256xbf16, #tpu.memory_space<vmem>>, %arg9: memref<1x1x256xf32, #tpu.memory_space<vmem>>, %arg10: memref<1x256x128xbf16, #tpu.memory_space<vmem>>, %arg11: memref<1x1x1x128xf32, #tpu.memory_space<vmem>>) attributes {dimension_semantics = [#tpu.dimension_semantics<parallel>, #tpu.dimension_semantics<arbitrary>], iteration_bounds = array<i64: 3, 2>, scalar_prefetch = 1 : i64, scratch_operands = 0 : i64, tpu.core_type = #tpu.core_type<tc>, window_params = [{transform_indices = @transform_0, window_bounds = array<i64: 1, 5, 128>}, {transform_indices = @transform_1, window_bounds = array<i64: 1, 6, 128>}, {transform_indices = @transform_2, window_bounds = array<i64: 1, 128, 384>}, {transform_indices = @transform_3, window_bounds = array<i64: 1, 1, 384>}, {transform_indices = @transform_4, window_bounds = array<i64: 1, 128, 128>}, {transform_indices = @transform_5, window_bounds = array<i64: 1, 128, 256>}, {transform_indices = @transform_6, window_bounds = array<i64: 1, 1, 256>}, {transform_indices = @transform_7, window_bounds = array<i64: 1, 256, 128>}, {transform_indices = @transform_8, window_bounds = array<i64: 1, 1, 1, 128>}]} {
    %c0 = arith.constant 0 : index
    %c0_0 = arith.constant 0 : index
    %c0_1 = arith.constant 0 : index
    %0 = vector.load %arg3[%c0, %c0_0, %c0_1] : memref<1x5x128xbf16, #tpu.memory_space<vmem>>, vector<1x5x128xbf16>
    %1 = vector.shape_cast %0 : vector<1x5x128xbf16> to vector<5x128xbf16>
    %2 = arith.extf %1 : vector<5x128xbf16> to vector<5x128xf32>
    %c0_2 = arith.constant 0 : index
    %c0_3 = arith.constant 0 : index
    %c0_4 = arith.constant 0 : index
    %3 = vector.load %arg4[%c0_2, %c0_3, %c0_4] : memref<1x6x128xf32, #tpu.memory_space<vmem>>, vector<1x6x128xf32>
    %4 = vector.shape_cast %3 : vector<1x6x128xf32> to vector<6x128xf32>
    %c0_5 = arith.constant 0 : index
    %c0_6 = arith.constant 0 : index
    %c0_7 = arith.constant 0 : index
    %5 = vector.load %arg5[%c0_5, %c0_6, %c0_7] : memref<1x128x384xbf16, #tpu.memory_space<vmem>>, vector<1x128x384xbf16>
    %6 = vector.shape_cast %5 : vector<1x128x384xbf16> to vector<128x384xbf16>
    %c0_8 = arith.constant 0 : index
    %c0_9 = arith.constant 0 : index
    %c0_10 = arith.constant 0 : index
    %7 = vector.load %arg6[%c0_8, %c0_9, %c0_10] : memref<1x1x384xf32, #tpu.memory_space<vmem>>, vector<1x1x384xf32>
    %8 = vector.shape_cast %7 : vector<1x1x384xf32> to vector<1x384xf32>
    %c0_11 = arith.constant 0 : index
    %c0_12 = arith.constant 0 : index
    %c0_13 = arith.constant 0 : index
    %9 = vector.load %arg7[%c0_11, %c0_12, %c0_13] : memref<1x128x128xbf16, #tpu.memory_space<vmem>>, vector<1x128x128xbf16>
    %10 = vector.shape_cast %9 : vector<1x128x128xbf16> to vector<128x128xbf16>
    %c0_14 = arith.constant 0 : index
    %c0_15 = arith.constant 0 : index
    %c0_16 = arith.constant 0 : index
    %11 = vector.load %arg8[%c0_14, %c0_15, %c0_16] : memref<1x128x256xbf16, #tpu.memory_space<vmem>>, vector<1x128x256xbf16>
    %12 = vector.shape_cast %11 : vector<1x128x256xbf16> to vector<128x256xbf16>
    %c0_17 = arith.constant 0 : index
    %c0_18 = arith.constant 0 : index
    %c0_19 = arith.constant 0 : index
    %13 = vector.load %arg9[%c0_17, %c0_18, %c0_19] : memref<1x1x256xf32, #tpu.memory_space<vmem>>, vector<1x1x256xf32>
    %14 = vector.shape_cast %13 : vector<1x1x256xf32> to vector<1x256xf32>
    %c0_20 = arith.constant 0 : index
    %c0_21 = arith.constant 0 : index
    %c0_22 = arith.constant 0 : index
    %15 = vector.load %arg10[%c0_20, %c0_21, %c0_22] : memref<1x256x128xbf16, #tpu.memory_space<vmem>>, vector<1x256x128xbf16>
    %16 = vector.shape_cast %15 : vector<1x256x128xbf16> to vector<256x128xbf16>
    %17 = vector.extract_strided_slice %4 {offsets = [0, 0], sizes = [1, 128], strides = [1, 1]} : vector<6x128xf32> to vector<1x128xf32>
    %18 = vector.extract_strided_slice %4 {offsets = [1, 0], sizes = [1, 128], strides = [1, 1]} : vector<6x128xf32> to vector<1x128xf32>
    %19 = vector.extract_strided_slice %4 {offsets = [2, 0], sizes = [1, 128], strides = [1, 1]} : vector<6x128xf32> to vector<1x128xf32>
    %20 = vector.extract_strided_slice %4 {offsets = [3, 0], sizes = [1, 128], strides = [1, 1]} : vector<6x128xf32> to vector<1x128xf32>
    %21 = vector.extract_strided_slice %4 {offsets = [4, 0], sizes = [1, 128], strides = [1, 1]} : vector<6x128xf32> to vector<1x128xf32>
    %22 = vector.extract_strided_slice %4 {offsets = [5, 0], sizes = [1, 128], strides = [1, 1]} : vector<6x128xf32> to vector<1x128xf32>
    %cst = arith.constant dense<0.000000e+00> : vector<5xf32>
    %23 = vector.multi_reduction <add>, %2, %cst [1] : vector<5x128xf32> to vector<5xf32>
    %24 = vector.shape_cast %23 : vector<5xf32> to vector<5x1xf32>
    %cst_23 = arith.constant 1.280000e+02 : f32
    %25 = vector.broadcast %cst_23 : f32 to vector<5x1xf32>
    %26 = arith.divf %24, %25 : vector<5x1xf32>
    %27 = vector.broadcast %26 : vector<5x1xf32> to vector<5x128xf32>
    %28 = arith.subf %2, %27 : vector<5x128xf32>
    %29 = arith.mulf %28, %28 : vector<5x128xf32>
    %cst_24 = arith.constant dense<0.000000e+00> : vector<5xf32>
    %30 = vector.multi_reduction <add>, %29, %cst_24 [1] : vector<5x128xf32> to vector<5xf32>
    %31 = vector.shape_cast %30 : vector<5xf32> to vector<5x1xf32>
    %cst_25 = arith.constant 1.280000e+02 : f32
    %32 = vector.broadcast %cst_25 : f32 to vector<5x1xf32>
    %33 = arith.divf %31, %32 : vector<5x1xf32>
    %34 = vector.broadcast %26 : vector<5x1xf32> to vector<5x128xf32>
    %35 = arith.subf %2, %34 : vector<5x128xf32>
    %cst_26 = arith.constant 9.99999997E-7 : f32
    %36 = vector.broadcast %cst_26 : f32 to vector<5x1xf32>
    %37 = arith.addf %33, %36 : vector<5x1xf32>
    %38 = math.rsqrt %37 : vector<5x1xf32>
    %39 = vector.broadcast %38 : vector<5x1xf32> to vector<5x128xf32>
    %40 = arith.mulf %35, %39 : vector<5x128xf32>
    %41 = vector.broadcast %17 : vector<1x128xf32> to vector<5x128xf32>
    %42 = arith.mulf %40, %41 : vector<5x128xf32>
    %43 = vector.broadcast %18 : vector<1x128xf32> to vector<5x128xf32>
    %44 = arith.addf %42, %43 : vector<5x128xf32>
    %45 = arith.truncf %44 : vector<5x128xf32> to vector<5x128xbf16>
    %cst_27 = arith.constant dense<0.000000e+00> : vector<5x384xf32>
    %46 = tpu.matmul %45, %6, %cst_27 {dimension_numbers = #tpu.dot_dimension_numbers<[1], [0], [0], [1], [0, 0, 1, 1], [], []>} : vector<5x128xbf16>, vector<128x384xbf16>, vector<5x384xf32> -> vector<5x384xf32>
    %47 = vector.broadcast %8 : vector<1x384xf32> to vector<5x384xf32>
    %48 = arith.addf %46, %47 : vector<5x384xf32>
    %49 = vector.extract_strided_slice %48 {offsets = [0, 128], sizes = [5, 128], strides = [1, 1]} : vector<5x384xf32> to vector<5x128xf32>
    %50 = arith.truncf %49 : vector<5x128xf32> to vector<5x128xbf16>
    %51 = vector.extract_strided_slice %48 {offsets = [0, 256], sizes = [5, 128], strides = [1, 1]} : vector<5x384xf32> to vector<5x128xf32>
    %52 = arith.truncf %51 : vector<5x128xf32> to vector<5x128xbf16>
    %53 = vector.extract_strided_slice %48 {offsets = [0, 0], sizes = [1, 128], strides = [1, 1]} : vector<5x384xf32> to vector<1x128xf32>
    %54 = arith.truncf %53 : vector<1x128xf32> to vector<1x128xbf16>
    %55 = vector.extract_strided_slice %2 {offsets = [0, 0], sizes = [1, 128], strides = [1, 1]} : vector<5x128xf32> to vector<1x128xf32>
    %56 = vector.extract_strided_slice %54 {offsets = [0, 0], sizes = [1, 32], strides = [1, 1]} : vector<1x128xbf16> to vector<1x32xbf16>
    %57 = vector.extract_strided_slice %50 {offsets = [0, 0], sizes = [5, 32], strides = [1, 1]} : vector<5x128xbf16> to vector<5x32xbf16>
    %cst_28 = arith.constant dense<0.000000e+00> : vector<1x5xf32>
    %58 = tpu.matmul %56, %57, %cst_28 {dimension_numbers = #tpu.dot_dimension_numbers<[1], [1], [0], [0], [0, 0, 1, 0], [], []>} : vector<1x32xbf16>, vector<5x32xbf16>, vector<1x5xf32> -> vector<1x5xf32>
    %cst_29 = arith.constant dense<0xFF800000> : vector<1xf32>
    %59 = vector.multi_reduction <maximumf>, %58, %cst_29 [1] : vector<1x5xf32> to vector<1xf32>
    %60 = vector.shape_cast %59 : vector<1xf32> to vector<1x1xf32>
    %61 = vector.broadcast %60 : vector<1x1xf32> to vector<1x5xf32>
    %62 = arith.subf %58, %61 : vector<1x5xf32>
    %63 = math.exp %62 : vector<1x5xf32>
    %cst_30 = arith.constant dense<0.000000e+00> : vector<1xf32>
    %64 = vector.multi_reduction <add>, %63, %cst_30 [1] : vector<1x5xf32> to vector<1xf32>
    %65 = vector.shape_cast %64 : vector<1xf32> to vector<1x1xf32>
    %66 = tpu.reciprocal %65 {approx = true} : vector<1x1xf32> -> vector<1x1xf32>
    %67 = vector.broadcast %66 : vector<1x1xf32> to vector<1x5xf32>
    %68 = arith.mulf %63, %67 : vector<1x5xf32>
    %69 = arith.truncf %68 : vector<1x5xf32> to vector<1x5xbf16>
    %70 = vector.extract_strided_slice %52 {offsets = [0, 0], sizes = [5, 32], strides = [1, 1]} : vector<5x128xbf16> to vector<5x32xbf16>
    %cst_31 = arith.constant dense<0.000000e+00> : vector<1x32xf32>
    %71 = tpu.matmul %69, %70, %cst_31 {dimension_numbers = #tpu.dot_dimension_numbers<[1], [0], [0], [1], [0, 0, 1, 1], [], []>} : vector<1x5xbf16>, vector<5x32xbf16>, vector<1x32xf32> -> vector<1x32xf32>
    %72 = vector.extract_strided_slice %54 {offsets = [0, 32], sizes = [1, 32], strides = [1, 1]} : vector<1x128xbf16> to vector<1x32xbf16>
    %73 = vector.extract_strided_slice %50 {offsets = [0, 32], sizes = [5, 32], strides = [1, 1]} : vector<5x128xbf16> to vector<5x32xbf16>
    %cst_32 = arith.constant dense<0.000000e+00> : vector<1x5xf32>
    %74 = tpu.matmul %72, %73, %cst_32 {dimension_numbers = #tpu.dot_dimension_numbers<[1], [1], [0], [0], [0, 0, 1, 0], [], []>} : vector<1x32xbf16>, vector<5x32xbf16>, vector<1x5xf32> -> vector<1x5xf32>
    %cst_33 = arith.constant dense<0xFF800000> : vector<1xf32>
    %75 = vector.multi_reduction <maximumf>, %74, %cst_33 [1] : vector<1x5xf32> to vector<1xf32>
    %76 = vector.shape_cast %75 : vector<1xf32> to vector<1x1xf32>
    %77 = vector.broadcast %76 : vector<1x1xf32> to vector<1x5xf32>
    %78 = arith.subf %74, %77 : vector<1x5xf32>
    %79 = math.exp %78 : vector<1x5xf32>
    %cst_34 = arith.constant dense<0.000000e+00> : vector<1xf32>
    %80 = vector.multi_reduction <add>, %79, %cst_34 [1] : vector<1x5xf32> to vector<1xf32>
    %81 = vector.shape_cast %80 : vector<1xf32> to vector<1x1xf32>
    %82 = tpu.reciprocal %81 {approx = true} : vector<1x1xf32> -> vector<1x1xf32>
    %83 = vector.broadcast %82 : vector<1x1xf32> to vector<1x5xf32>
    %84 = arith.mulf %79, %83 : vector<1x5xf32>
    %85 = arith.truncf %84 : vector<1x5xf32> to vector<1x5xbf16>
    %86 = vector.extract_strided_slice %52 {offsets = [0, 32], sizes = [5, 32], strides = [1, 1]} : vector<5x128xbf16> to vector<5x32xbf16>
    %cst_35 = arith.constant dense<0.000000e+00> : vector<1x32xf32>
    %87 = tpu.matmul %85, %86, %cst_35 {dimension_numbers = #tpu.dot_dimension_numbers<[1], [0], [0], [1], [0, 0, 1, 1], [], []>} : vector<1x5xbf16>, vector<5x32xbf16>, vector<1x32xf32> -> vector<1x32xf32>
    %88 = vector.extract_strided_slice %54 {offsets = [0, 64], sizes = [1, 32], strides = [1, 1]} : vector<1x128xbf16> to vector<1x32xbf16>
    %89 = vector.extract_strided_slice %50 {offsets = [0, 64], sizes = [5, 32], strides = [1, 1]} : vector<5x128xbf16> to vector<5x32xbf16>
    %cst_36 = arith.constant dense<0.000000e+00> : vector<1x5xf32>
    %90 = tpu.matmul %88, %89, %cst_36 {dimension_numbers = #tpu.dot_dimension_numbers<[1], [1], [0], [0], [0, 0, 1, 0], [], []>} : vector<1x32xbf16>, vector<5x32xbf16>, vector<1x5xf32> -> vector<1x5xf32>
    %cst_37 = arith.constant dense<0xFF800000> : vector<1xf32>
    %91 = vector.multi_reduction <maximumf>, %90, %cst_37 [1] : vector<1x5xf32> to vector<1xf32>
    %92 = vector.shape_cast %91 : vector<1xf32> to vector<1x1xf32>
    %93 = vector.broadcast %92 : vector<1x1xf32> to vector<1x5xf32>
    %94 = arith.subf %90, %93 : vector<1x5xf32>
    %95 = math.exp %94 : vector<1x5xf32>
    %cst_38 = arith.constant dense<0.000000e+00> : vector<1xf32>
    %96 = vector.multi_reduction <add>, %95, %cst_38 [1] : vector<1x5xf32> to vector<1xf32>
    %97 = vector.shape_cast %96 : vector<1xf32> to vector<1x1xf32>
    %98 = tpu.reciprocal %97 {approx = true} : vector<1x1xf32> -> vector<1x1xf32>
    %99 = vector.broadcast %98 : vector<1x1xf32> to vector<1x5xf32>
    %100 = arith.mulf %95, %99 : vector<1x5xf32>
    %101 = arith.truncf %100 : vector<1x5xf32> to vector<1x5xbf16>
    %102 = vector.extract_strided_slice %52 {offsets = [0, 64], sizes = [5, 32], strides = [1, 1]} : vector<5x128xbf16> to vector<5x32xbf16>
    %cst_39 = arith.constant dense<0.000000e+00> : vector<1x32xf32>
    %103 = tpu.matmul %101, %102, %cst_39 {dimension_numbers = #tpu.dot_dimension_numbers<[1], [0], [0], [1], [0, 0, 1, 1], [], []>} : vector<1x5xbf16>, vector<5x32xbf16>, vector<1x32xf32> -> vector<1x32xf32>
    %104 = vector.extract_strided_slice %54 {offsets = [0, 96], sizes = [1, 32], strides = [1, 1]} : vector<1x128xbf16> to vector<1x32xbf16>
    %105 = vector.extract_strided_slice %50 {offsets = [0, 96], sizes = [5, 32], strides = [1, 1]} : vector<5x128xbf16> to vector<5x32xbf16>
    %cst_40 = arith.constant dense<0.000000e+00> : vector<1x5xf32>
    %106 = tpu.matmul %104, %105, %cst_40 {dimension_numbers = #tpu.dot_dimension_numbers<[1], [1], [0], [0], [0, 0, 1, 0], [], []>} : vector<1x32xbf16>, vector<5x32xbf16>, vector<1x5xf32> -> vector<1x5xf32>
    %cst_41 = arith.constant dense<0xFF800000> : vector<1xf32>
    %107 = vector.multi_reduction <maximumf>, %106, %cst_41 [1] : vector<1x5xf32> to vector<1xf32>
    %108 = vector.shape_cast %107 : vector<1xf32> to vector<1x1xf32>
    %109 = vector.broadcast %108 : vector<1x1xf32> to vector<1x5xf32>
    %110 = arith.subf %106, %109 : vector<1x5xf32>
    %111 = math.exp %110 : vector<1x5xf32>
    %cst_42 = arith.constant dense<0.000000e+00> : vector<1xf32>
    %112 = vector.multi_reduction <add>, %111, %cst_42 [1] : vector<1x5xf32> to vector<1xf32>
    %113 = vector.shape_cast %112 : vector<1xf32> to vector<1x1xf32>
    %114 = tpu.reciprocal %113 {approx = true} : vector<1x1xf32> -> vector<1x1xf32>
    %115 = vector.broadcast %114 : vector<1x1xf32> to vector<1x5xf32>
    %116 = arith.mulf %111, %115 : vector<1x5xf32>
    %117 = arith.truncf %116 : vector<1x5xf32> to vector<1x5xbf16>
    %118 = vector.extract_strided_slice %52 {offsets = [0, 96], sizes = [5, 32], strides = [1, 1]} : vector<5x128xbf16> to vector<5x32xbf16>
    %cst_43 = arith.constant dense<0.000000e+00> : vector<1x32xf32>
    %119 = tpu.matmul %117, %118, %cst_43 {dimension_numbers = #tpu.dot_dimension_numbers<[1], [0], [0], [1], [0, 0, 1, 1], [], []>} : vector<1x5xbf16>, vector<5x32xbf16>, vector<1x32xf32> -> vector<1x32xf32>
    %120 = tpu.concatenate %71, %87, %103, %119 in 1 : vector<1x32xf32>, vector<1x32xf32>, vector<1x32xf32>, vector<1x32xf32> -> vector<1x128xf32>
    %121 = arith.truncf %120 : vector<1x128xf32> to vector<1x128xbf16>
    %cst_44 = arith.constant dense<0.000000e+00> : vector<1x128xf32>
    %122 = tpu.matmul %121, %10, %cst_44 {dimension_numbers = #tpu.dot_dimension_numbers<[1], [0], [0], [1], [0, 0, 1, 1], [], []>} : vector<1x128xbf16>, vector<128x128xbf16>, vector<1x128xf32> -> vector<1x128xf32>
    %123 = arith.addf %122, %21 : vector<1x128xf32>
    %124 = arith.addf %55, %123 : vector<1x128xf32>
    %cst_45 = arith.constant dense<0.000000e+00> : vector<1xf32>
    %125 = vector.multi_reduction <add>, %124, %cst_45 [1] : vector<1x128xf32> to vector<1xf32>
    %126 = vector.shape_cast %125 : vector<1xf32> to vector<1x1xf32>
    %cst_46 = arith.constant 1.280000e+02 : f32
    %127 = vector.broadcast %cst_46 : f32 to vector<1x1xf32>
    %128 = arith.divf %126, %127 : vector<1x1xf32>
    %129 = vector.broadcast %128 : vector<1x1xf32> to vector<1x128xf32>
    %130 = arith.subf %124, %129 : vector<1x128xf32>
    %131 = arith.mulf %130, %130 : vector<1x128xf32>
    %cst_47 = arith.constant dense<0.000000e+00> : vector<1xf32>
    %132 = vector.multi_reduction <add>, %131, %cst_47 [1] : vector<1x128xf32> to vector<1xf32>
    %133 = vector.shape_cast %132 : vector<1xf32> to vector<1x1xf32>
    %cst_48 = arith.constant 1.280000e+02 : f32
    %134 = vector.broadcast %cst_48 : f32 to vector<1x1xf32>
    %135 = arith.divf %133, %134 : vector<1x1xf32>
    %136 = vector.broadcast %128 : vector<1x1xf32> to vector<1x128xf32>
    %137 = arith.subf %124, %136 : vector<1x128xf32>
    %cst_49 = arith.constant 9.99999997E-7 : f32
    %138 = vector.broadcast %cst_49 : f32 to vector<1x1xf32>
    %139 = arith.addf %135, %138 : vector<1x1xf32>
    %140 = math.rsqrt %139 : vector<1x1xf32>
    %141 = vector.broadcast %140 : vector<1x1xf32> to vector<1x128xf32>
    %142 = arith.mulf %137, %141 : vector<1x128xf32>
    %143 = arith.mulf %142, %19 : vector<1x128xf32>
    %144 = arith.addf %143, %20 : vector<1x128xf32>
    %145 = arith.truncf %144 : vector<1x128xf32> to vector<1x128xbf16>
    %cst_50 = arith.constant dense<0.000000e+00> : vector<1x256xf32>
    %146 = tpu.matmul %145, %12, %cst_50 {dimension_numbers = #tpu.dot_dimension_numbers<[1], [0], [0], [1], [0, 0, 1, 1], [], []>} : vector<1x128xbf16>, vector<128x256xbf16>, vector<1x256xf32> -> vector<1x256xf32>
    %147 = arith.addf %146, %14 : vector<1x256xf32>
    %cst_51 = arith.constant 5.000000e-01 : f32
    %148 = vector.broadcast %cst_51 : f32 to vector<1x256xf32>
    %149 = arith.mulf %148, %147 : vector<1x256xf32>
    %cst_52 = arith.constant 0.707106769 : f32
    %150 = vector.broadcast %cst_52 : f32 to vector<1x256xf32>
    %151 = arith.mulf %147, %150 : vector<1x256xf32>
    %152 = math.absf %151 : vector<1x256xf32>
    %cst_53 = arith.constant 0.327591091 : f32
    %153 = vector.broadcast %cst_53 : f32 to vector<1x256xf32>
    %154 = arith.mulf %153, %152 : vector<1x256xf32>
    %cst_54 = arith.constant 1.000000e+00 : f32
    %155 = vector.broadcast %cst_54 : f32 to vector<1x256xf32>
    %156 = arith.addf %155, %154 : vector<1x256xf32>
    %cst_55 = arith.constant 1.000000e+00 : f32
    %157 = vector.broadcast %cst_55 : f32 to vector<1x256xf32>
    %158 = arith.divf %157, %156 : vector<1x256xf32>
    %cst_56 = arith.constant 1.06140542 : f32
    %159 = vector.broadcast %cst_56 : f32 to vector<1x256xf32>
    %160 = arith.mulf %159, %158 : vector<1x256xf32>
    %cst_57 = arith.constant -1.45315206 : f32
    %161 = vector.broadcast %cst_57 : f32 to vector<1x256xf32>
    %162 = arith.addf %160, %161 : vector<1x256xf32>
    %163 = arith.mulf %162, %158 : vector<1x256xf32>
    %cst_58 = arith.constant 1.42141378 : f32
    %164 = vector.broadcast %cst_58 : f32 to vector<1x256xf32>
    %165 = arith.addf %163, %164 : vector<1x256xf32>
    %166 = arith.mulf %165, %158 : vector<1x256xf32>
    %cst_59 = arith.constant -0.284496725 : f32
    %167 = vector.broadcast %cst_59 : f32 to vector<1x256xf32>
    %168 = arith.addf %166, %167 : vector<1x256xf32>
    %169 = arith.mulf %168, %158 : vector<1x256xf32>
    %cst_60 = arith.constant 0.254829586 : f32
    %170 = vector.broadcast %cst_60 : f32 to vector<1x256xf32>
    %171 = arith.addf %169, %170 : vector<1x256xf32>
    %172 = arith.mulf %171, %158 : vector<1x256xf32>
    %cst_61 = arith.constant 0.000000e+00 : f32
    %173 = vector.broadcast %cst_61 : f32 to vector<1x256xf32>
    %174 = arith.subf %173, %151 : vector<1x256xf32>
    %175 = arith.mulf %174, %151 : vector<1x256xf32>
    %176 = math.exp %175 : vector<1x256xf32>
    %177 = arith.mulf %172, %176 : vector<1x256xf32>
    %cst_62 = arith.constant 1.000000e+00 : f32
    %178 = vector.broadcast %cst_62 : f32 to vector<1x256xf32>
    %179 = arith.subf %178, %177 : vector<1x256xf32>
    %cst_63 = arith.constant 0.000000e+00 : f32
    %180 = vector.broadcast %cst_63 : f32 to vector<1x256xf32>
    %181 = arith.cmpf oge, %151, %180 : vector<1x256xf32>
    %cst_64 = arith.constant 0.000000e+00 : f32
    %182 = vector.broadcast %cst_64 : f32 to vector<1x256xf32>
    %183 = arith.subf %182, %179 : vector<1x256xf32>
    %184 = arith.select %181, %179, %183 : vector<1x256xi1>, vector<1x256xf32>
    %cst_65 = arith.constant 1.000000e+00 : f32
    %185 = vector.broadcast %cst_65 : f32 to vector<1x256xf32>
    %186 = arith.addf %185, %184 : vector<1x256xf32>
    %187 = arith.mulf %149, %186 : vector<1x256xf32>
    %188 = arith.truncf %187 : vector<1x256xf32> to vector<1x256xbf16>
    %cst_66 = arith.constant dense<0.000000e+00> : vector<1x128xf32>
    %189 = tpu.matmul %188, %16, %cst_66 {dimension_numbers = #tpu.dot_dimension_numbers<[1], [0], [0], [1], [0, 0, 1, 1], [], []>} : vector<1x256xbf16>, vector<256x128xbf16>, vector<1x128xf32> -> vector<1x128xf32>
    %190 = arith.addf %189, %22 : vector<1x128xf32>
    %191 = arith.addf %124, %190 : vector<1x128xf32>
    %c0_67 = arith.constant 0 : index
    %c0_68 = arith.constant 0 : index
    %c0_69 = arith.constant 0 : index
    %c0_70 = arith.constant 0 : index
    %192 = vector.load %arg11[%c0_67, %c0_68, %c0_69, %c0_70] : memref<1x1x1x128xf32, #tpu.memory_space<vmem>>, vector<1x1x1x128xf32>
    %193 = vector.shape_cast %192 : vector<1x1x1x128xf32> to vector<1x128xf32>
    %194 = vector.shape_cast %191 : vector<1x128xf32> to vector<1x1x1x128xf32>
    tpu.vector_store %arg11[%c0_67, %c0_68, %c0_69, %c0_70], %194 {strides = array<i32>} : memref<1x1x1x128xf32, #tpu.memory_space<vmem>>, vector<1x1x1x128xf32>,
    return
  }
  func.func @transform_0(%arg0: i32, %arg1: i32, %arg2: memref<3xi32, #tpu.memory_space<smem>>) -> (i32, i32, i32) {
    %c0_i32 = arith.constant 0 : i32
    %c0_i32_0 = arith.constant 0 : i32
    %c0_i32_1 = arith.constant 0 : i32
    return %arg1, %c0_i32, %c0_i32_0 : i32, i32, i32
  }
  func.func @transform_1(%arg0: i32, %arg1: i32, %arg2: memref<3xi32, #tpu.memory_space<smem>>) -> (i32, i32, i32) {
    %0 = arith.index_cast %arg0 : i32 to index
    %1 = memref.load %arg2[%0] : memref<3xi32, #tpu.memory_space<smem>>
    %c0_i32 = arith.constant 0 : i32
    %c0_i32_0 = arith.constant 0 : i32
    %c0_i32_1 = arith.constant 0 : i32
    return %1, %c0_i32, %c0_i32_0 : i32, i32, i32
  }
  func.func @transform_2(%arg0: i32, %arg1: i32, %arg2: memref<3xi32, #tpu.memory_space<smem>>) -> (i32, i32, i32) {
    %0 = arith.index_cast %arg0 : i32 to index
    %1 = memref.load %arg2[%0] : memref<3xi32, #tpu.memory_space<smem>>
    %c0_i32 = arith.constant 0 : i32
    %c0_i32_0 = arith.constant 0 : i32
    %c0_i32_1 = arith.constant 0 : i32
    return %1, %c0_i32, %c0_i32_0 : i32, i32, i32
  }
  func.func @transform_3(%arg0: i32, %arg1: i32, %arg2: memref<3xi32, #tpu.memory_space<smem>>) -> (i32, i32, i32) {
    %0 = arith.index_cast %arg0 : i32 to index
    %1 = memref.load %arg2[%0] : memref<3xi32, #tpu.memory_space<smem>>
    %c0_i32 = arith.constant 0 : i32
    %c0_i32_0 = arith.constant 0 : i32
    %c0_i32_1 = arith.constant 0 : i32
    return %1, %c0_i32, %c0_i32_0 : i32, i32, i32
  }
  func.func @transform_4(%arg0: i32, %arg1: i32, %arg2: memref<3xi32, #tpu.memory_space<smem>>) -> (i32, i32, i32) {
    %0 = arith.index_cast %arg0 : i32 to index
    %1 = memref.load %arg2[%0] : memref<3xi32, #tpu.memory_space<smem>>
    %c0_i32 = arith.constant 0 : i32
    %c0_i32_0 = arith.constant 0 : i32
    %c0_i32_1 = arith.constant 0 : i32
    return %1, %c0_i32, %c0_i32_0 : i32, i32, i32
  }
  func.func @transform_5(%arg0: i32, %arg1: i32, %arg2: memref<3xi32, #tpu.memory_space<smem>>) -> (i32, i32, i32) {
    %0 = arith.index_cast %arg0 : i32 to index
    %1 = memref.load %arg2[%0] : memref<3xi32, #tpu.memory_space<smem>>
    %c0_i32 = arith.constant 0 : i32
    %c0_i32_0 = arith.constant 0 : i32
    %c0_i32_1 = arith.constant 0 : i32
    return %1, %c0_i32, %c0_i32_0 : i32, i32, i32
  }
  func.func @transform_6(%arg0: i32, %arg1: i32, %arg2: memref<3xi32, #tpu.memory_space<smem>>) -> (i32, i32, i32) {
    %0 = arith.index_cast %arg0 : i32 to index
    %1 = memref.load %arg2[%0] : memref<3xi32, #tpu.memory_space<smem>>
    %c0_i32 = arith.constant 0 : i32
    %c0_i32_0 = arith.constant 0 : i32
    %c0_i32_1 = arith.constant 0 : i32
    return %1, %c0_i32, %c0_i32_0 : i32, i32, i32
  }
  func.func @transform_7(%arg0: i32, %arg1: i32, %arg2: memref<3xi32, #tpu.memory_space<smem>>) -> (i32, i32, i32) {
    %0 = arith.index_cast %arg0 : i32 to index
    %1 = memref.load %arg2[%0] : memref<3xi32, #tpu.memory_space<smem>>
    %c0_i32 = arith.constant 0 : i32
    %c0_i32_0 = arith.constant 0 : i32
    %c0_i32_1 = arith.constant 0 : i32
    return %1, %c0_i32, %c0_i32_0 : i32, i32, i32
  }
  func.func @transform_8(%arg0: i32, %arg1: i32, %arg2: memref<3xi32, #tpu.memory_space<smem>>) -> (i32, i32, i32, i32) {
    %c0_i32 = arith.constant 0 : i32
    %c0_i32_0 = arith.constant 0 : i32
    %c0_i32_1 = arith.constant 0 : i32
    return %arg0, %arg1, %c0_i32, %c0_i32_0 : i32, i32, i32, i32
  }
}

module attributes {stable_mosaic.version = 11 : i64} {
  func.func @matmul_bias_kernel(%arg0: i32, %arg1: i32, %arg2: i32, %arg3: memref<8x128xf32, #tpu.memory_space<vmem>>, %arg4: memref<128x128xbf16, #tpu.memory_space<vmem>>, %arg5: memref<1x128xf32, #tpu.memory_space<vmem>>, %arg6: memref<8x128xf32, #tpu.memory_space<vmem>>, %arg7: memref<8x128xf32, #tpu.memory_space<vmem>>) attributes {dimension_semantics = [#tpu.dimension_semantics<parallel>, #tpu.dimension_semantics<parallel>, #tpu.dimension_semantics<arbitrary>], iteration_bounds = array<i64: 1, 1, 1>, scalar_prefetch = 0 : i64, scratch_operands = 1 : i64, tpu.core_type = #tpu.core_type<tc>, window_params = [{transform_indices = @transform_0, window_bounds = array<i64: 8, 128>}, {transform_indices = @transform_1, window_bounds = array<i64: 128, 128>}, {transform_indices = @transform_2, window_bounds = array<i64: 1, 128>}, {transform_indices = @transform_3, window_bounds = array<i64: 8, 128>}]} {
    %c0_i32 = arith.constant 0 : i32
    %0 = arith.cmpi eq, %arg2, %c0_i32 : i32
    %1 = arith.extui %0 : i1 to i32
    %c0_i32_0 = arith.constant 0 : i32
    %2 = arith.cmpi ne, %1, %c0_i32_0 : i32
    scf.if %2 {
      %cst_10 = arith.constant 0.000000e+00 : f32
      %13 = vector.broadcast %cst_10 : f32 to vector<8x128xf32>
      %c0_11 = arith.constant 0 : index
      %c0_12 = arith.constant 0 : index
      %14 = vector.load %arg7[%c0_11, %c0_12] : memref<8x128xf32, #tpu.memory_space<vmem>>, vector<8x128xf32>
      tpu.vector_store %arg7[%c0_11, %c0_12], %13 {strides = array<i32>} : memref<8x128xf32, #tpu.memory_space<vmem>>, vector<8x128xf32>,
    } else {
    }
    %c0 = arith.constant 0 : index
    %c0_1 = arith.constant 0 : index
    %3 = vector.load %arg7[%c0, %c0_1] : memref<8x128xf32, #tpu.memory_space<vmem>>, vector<8x128xf32>
    %c0_2 = arith.constant 0 : index
    %c0_3 = arith.constant 0 : index
    %4 = vector.load %arg3[%c0_2, %c0_3] : memref<8x128xf32, #tpu.memory_space<vmem>>, vector<8x128xf32>
    %5 = arith.truncf %4 : vector<8x128xf32> to vector<8x128xbf16>
    %c0_4 = arith.constant 0 : index
    %c0_5 = arith.constant 0 : index
    %6 = vector.load %arg4[%c0_4, %c0_5] : memref<128x128xbf16, #tpu.memory_space<vmem>>, vector<128x128xbf16>
    %cst = arith.constant dense<0.000000e+00> : vector<8x128xf32>
    %7 = tpu.matmul %5, %6, %cst {dimension_numbers = #tpu.dot_dimension_numbers<[1], [0], [0], [1], [0, 0, 1, 1], [], []>} : vector<8x128xbf16>, vector<128x128xbf16>, vector<8x128xf32> -> vector<8x128xf32>
    %8 = arith.addf %3, %7 : vector<8x128xf32>
    %c0_6 = arith.constant 0 : index
    %c0_7 = arith.constant 0 : index
    %9 = vector.load %arg7[%c0_6, %c0_7] : memref<8x128xf32, #tpu.memory_space<vmem>>, vector<8x128xf32>
    tpu.vector_store %arg7[%c0_6, %c0_7], %8 {strides = array<i32>} : memref<8x128xf32, #tpu.memory_space<vmem>>, vector<8x128xf32>,
    %c0_i32_8 = arith.constant 0 : i32
    %10 = arith.cmpi eq, %arg2, %c0_i32_8 : i32
    %11 = arith.extui %10 : i1 to i32
    %c0_i32_9 = arith.constant 0 : i32
    %12 = arith.cmpi ne, %11, %c0_i32_9 : i32
    scf.if %12 {
      %c0_10 = arith.constant 0 : index
      %c0_11 = arith.constant 0 : index
      %13 = vector.load %arg7[%c0_10, %c0_11] : memref<8x128xf32, #tpu.memory_space<vmem>>, vector<8x128xf32>
      %c0_12 = arith.constant 0 : index
      %c0_13 = arith.constant 0 : index
      %14 = vector.load %arg5[%c0_12, %c0_13] : memref<1x128xf32, #tpu.memory_space<vmem>>, vector<1x128xf32>
      %15 = vector.broadcast %14 : vector<1x128xf32> to vector<8x128xf32>
      %16 = arith.addf %13, %15 : vector<8x128xf32>
      %c0_14 = arith.constant 0 : index
      %c0_15 = arith.constant 0 : index
      %17 = vector.load %arg6[%c0_14, %c0_15] : memref<8x128xf32, #tpu.memory_space<vmem>>, vector<8x128xf32>
      tpu.vector_store %arg6[%c0_14, %c0_15], %16 {strides = array<i32>} : memref<8x128xf32, #tpu.memory_space<vmem>>, vector<8x128xf32>,
    } else {
    }
    return
  }
  func.func @transform_0(%arg0: i32, %arg1: i32, %arg2: i32) -> (i32, i32) {
    %c0_i32 = arith.constant 0 : i32
    return %arg0, %arg2 : i32, i32
  }
  func.func @transform_1(%arg0: i32, %arg1: i32, %arg2: i32) -> (i32, i32) {
    %c0_i32 = arith.constant 0 : i32
    return %arg2, %arg1 : i32, i32
  }
  func.func @transform_2(%arg0: i32, %arg1: i32, %arg2: i32) -> (i32, i32) {
    %c0_i32 = arith.constant 0 : i32
    %c0_i32_0 = arith.constant 0 : i32
    return %c0_i32, %arg1 : i32, i32
  }
  func.func @transform_3(%arg0: i32, %arg1: i32, %arg2: i32) -> (i32, i32) {
    %c0_i32 = arith.constant 0 : i32
    return %arg0, %arg1 : i32, i32
  }
}

</mosaic_0001>

<bundles_post_ra>
// kernel: vit_forward.4
= control target key start
LH: loop header
LB: loop body
LE: loop exit
PB: predicated region body
PF: predicated region fallthrough
CT: control target
= control target key end

     0   :  { %8 = vsyncpa [#allocation4], 0  ;;  %s312_s12 = smov [#allocation3]   ;;  %s390_s0 = inlined_call_operand.vmem [shape: bf16[8,256], index: 0, kind: input, shape index: {}]   ;;  %s391_s1 = inlined_call_operand.vmem [shape: bf16[256,128], index: 1, kind: input, shape index: {}]   ;;  %s392_s2 = inlined_call_operand.hbm [shape: f32[1,128], index: 2, kind: input, shape index: {}]   ;;  %s393_s3 = inlined_call_operand.vmem [shape: bf16[8,128], index: 3, kind: output, shape index: {}]  }
   0x1   :  { %s19_s13 = sshll.u32 %s312_s12, 4  ;;  %s20_s13 = int_to_ptr.vmem [resolvable:$true] %s19_s13 }
   0x2   :  { %s298_s14 = scalar_lea.vmem %s20_s13, 16  ;;  %s302_s15 = scalar_lea.vmem %s20_s13, 32 }
   0x3   :  { %p299_p0 = scmp.ne.s32.totalorder %s20_s13, %s298_s14  ;;  %p303_p1 = scmp.lt.s32.totalorder %s20_s13, %s20_s13 }
   0x4   :  { %p304_p2 = scmp.lt.s32.totalorder %s302_s15, %s298_s14 }
   0x6   :  { %p305_p3 = por %p304_p2, %p303_p1 }
   0x8   :  { %p306_p4 = pnand %p305_p3, %p299_p0 }
   0xa   :  { %309 = shalt.err (!%p306_p4)
}
   0xb   :  { %22 = dma.hbm_to_vmem [thread:$0]  %s392_s2, 16, %s20_s13, [#allocation4]  }
   0xc   :  { %310 = dma.done.wait [#allocation4], 16  }
   0xd   :  { %311 = vsyncadd [#allocation4], 4294967280  ;;  %v272_v0 = vld [vmem:[%s391_s1 + $0x78] sm:$0xff]   ;;  %v274_v2 = vld [vmem:[%s391_s1 + $0x70] sm:$0xff]  }
   0xe   :  { %v273_v1 = vld [vmem:[%s391_s1 + $0x38] sm:$0xff]   ;;  %249 = vmatprep.subr.bf16.mxu0 %v272_v0  ;;  %v275_v3 = vld [vmem:[%s391_s1 + $0x30] sm:$0xff]   ;;  %v276_v4 = vld [vmem:[%s391_s1 + $0x68] sm:$0xff]  }
   0xf   :  { %250 = vmatpush3.bf16.msra.mxu0 %v273_v1  ;;  %v277_v5 = vld [vmem:[%s391_s1 + $0x28] sm:$0xff]   ;;  %v278_v6 = vld [vmem:[%s391_s1 + $0x60] sm:$0xff]   ;;  %v280_v8 = vld [vmem:[%s391_s1 + $0x58] sm:$0xff]  }
  0x10   :  { %251 = vmatprep.subr.bf16.mxu0 %v274_v2  ;;  %v279_v7 = vld [vmem:[%s391_s1 + $0x20] sm:$0xff]   ;;  %v281_v9 = vld [vmem:[%s391_s1 + $0x18] sm:$0xff]   ;;  %v282_v10 = vld [vmem:[%s391_s1 + $0x50] sm:$0xff]  }
  0x11   :  { %v33_v11 = vld [vmem:[%s390_s0] sm:$0xff]  ;;  %v283_v13 = vld [vmem:[%s391_s1 + $0x10] sm:$0xff]   ;;  %v284_v14 = vld [vmem:[%s391_s1 + $0x48] sm:$0xff]  }
  0x12   :  { %v231_v12 = vcombine.high %v33_v11, %v33_v11  ;;  %v285_v15 = vld [vmem:[%s391_s1 + $0x8] sm:$0xff]   ;;  %v286_v16 = vld [vmem:[%s391_s1 + $0x40] sm:$0xff]   ;;  %v230_v18 = vcombine.low %v33_v11, %v33_v11 }
  0x13   :  { %252 = vmatpush3.bf16.msra.mxu0 %v275_v3  ;;  %v287_v17 = vld [vmem:[%s391_s1] sm:$0xff]  }
  0x14   :  { %253 = vmatprep.subr.bf16.mxu0 %v276_v4  ;;  %201 = vmatprep.mubr.bf16.mxu0 %v231_v12  ;;  %v248_v21 = vld [vmem:[#allocation3] ss:$0 sm:$0xff] }
  0x17   :  { %254 = vmatpush3.bf16.msra.mxu0 %v277_v5 }
  0x18   :  { %255 = vmatprep.subr.bf16.mxu0 %v278_v6 }
  0x1b   :  { %256 = vmatpush3.bf16.msra.mxu0 %v279_v7 }
  0x1c   :  { %257 = vmatprep.subr.bf16.mxu0 %v280_v8 }
  0x1f   :  { %258 = vmatpush3.bf16.msra.mxu0 %v281_v9 }
  0x20   :  { %259 = vmatprep.subr.bf16.mxu0 %v282_v10 }
  0x23   :  { %260 = vmatpush3.bf16.msra.mxu0 %v283_v13 }
  0x24   :  { %261 = vmatprep.subr.bf16.mxu0 %v284_v14 }
  0x27   :  { %262 = vmatpush3.bf16.msra.mxu0 %v285_v15 }
  0x28   :  { %263 = vmatprep.subr.bf16.mxu0 %v286_v16 }
  0x2b   :  { %264 = vmatpush3.bf16.msra.mxu0 %v287_v17 }
  0x2e   :  { %202 = vmatmul.mubr.bf16.vlgmr.msra.gmra.mxu0 %v230_v18 }
  0xee   :  { %v265_v19 = vpop.f32.mrf.mxu0 }
  0xf0   :  { %v266_v20 = vpop.f32.mrf.mxu0 }
  0xf1   :  { %v267_v22 = vadd.f32 %v266_v20, %v265_v19 }
  0xf2   :  { %v268_v23 = vpop.f32.mrf.mxu0 }
  0xf3   :  { %v222_v24 = vadd.f32 %v267_v22, %v248_v21 }
  0xf4   :  { %v269_v25 = vpop.f32.mrf.mxu0 }
  0xf5   :  { %v223_v26 = vpack.c.bf16 %v222_v24, %v222_v24 }
  0xf7   :  { %224 = vst [vmem:[%s393_s3] sm:$0xf] %v223_v26 }
  0xf8   :  { %229 = vsyncpa [#allocation4], 1 }

// kernel: vit_forward.7
= control target key start
LH: loop header
LB: loop body
LE: loop exit
PB: predicated region body
PF: predicated region fallthrough
CT: control target
= control target key end

     0   :  { %v194_v0 = vmov 0.0   ;;  %vm195_vm0 = vmmov 0   ;;  %s249_s1 = inlined_call_operand.vmem [shape: bf16[128,128], index: 1, kind: input, shape index: {}]   ;;  %s250_s0 = inlined_call_operand.vmem [shape: f32[8,128], index: 0, kind: input, shape index: {}]   ;;  %s251_s2 = inlined_call_operand.vmem [shape: f32[1,128], index: 2, kind: input, shape index: {}]   ;;  %s252_s3 = inlined_call_operand.vmem [shape: f32[8,128], index: 3, kind: output, shape index: {}]  }
   0x1   :  { %164 = vmatprep.subr.bf16.mxu0 %v194_v0  ;;  %v186_v1 = vld [vmem:[%s249_s1 + $0x38] sm:$0xff]   ;;  %180 = vmatprep.mubr.msk.bf16.mxu0 %vm195_vm0, %v194_v0  ;;  %v187_v2 = vld [vmem:[%s249_s1 + $0x30] sm:$0xff]   ;;  %v188_v3 = vld [vmem:[%s249_s1 + $0x28] sm:$0xff]  }
   0x2   :  { %165 = vmatpush3.bf16.msra.mxu0 %v186_v1  ;;  %v189_v4 = vld [vmem:[%s249_s1 + $0x20] sm:$0xff]   ;;  %v190_v5 = vld [vmem:[%s249_s1 + $0x18] sm:$0xff]   ;;  %v191_v6 = vld [vmem:[%s249_s1 + $0x10] sm:$0xff]  }
   0x3   :  { %166 = vmatprep.subr.bf16.mxu0 %v194_v0  ;;  %v192_v7 = vld [vmem:[%s249_s1 + $0x8] sm:$0xff]   ;;  %v193_v8 = vld [vmem:[%s249_s1] sm:$0xff]  }
   0x4   :  { %v21_v9 = vld [vmem:[%s250_s0] sm:$0xff] }
   0x5   :  { %v22_v10 = vpack.c.bf16 %v21_v9, %v21_v9  ;;  %v154_v11 = vld [vmem:[%s251_s2] ss:$0 sm:$0xff] }
   0x6   :  { %167 = vmatpush3.bf16.msra.mxu0 %v187_v2 }
   0x7   :  { %168 = vmatprep.subr.bf16.mxu0 %v194_v0 }
   0xa   :  { %169 = vmatpush3.bf16.msra.mxu0 %v188_v3 }
   0xb   :  { %170 = vmatprep.subr.bf16.mxu0 %v194_v0 }
   0xe   :  { %171 = vmatpush3.bf16.msra.mxu0 %v189_v4 }
   0xf   :  { %172 = vmatprep.subr.bf16.mxu0 %v194_v0 }
  0x12   :  { %173 = vmatpush3.bf16.msra.mxu0 %v190_v5 }
  0x13   :  { %174 = vmatprep.subr.bf16.mxu0 %v194_v0 }
  0x16   :  { %175 = vmatpush3.bf16.msra.mxu0 %v191_v6 }
  0x17   :  { %176 = vmatprep.subr.bf16.mxu0 %v194_v0 }
  0x1a   :  { %177 = vmatpush3.bf16.msra.mxu0 %v192_v7 }
  0x1b   :  { %178 = vmatprep.subr.bf16.mxu0 %v194_v0 }
  0x1e   :  { %179 = vmatpush3.bf16.msra.mxu0 %v193_v8 }
  0x21   :  { %181 = vmatmul.mubr.bf16.vlgmr.msra.gmra.mxu0 %v22_v10 }
  0xe1   :  { %v121_v12 = vpop.f32.mrf.mxu0 }
  0xe2   :  { %v140_v13 = vadd.f32 %v154_v11, %v121_v12 }
  0xe3   :  { %v182_v14 = vpop.f32.mrf.mxu0 }
  0xe4   :  { %141 = vst [vmem:[%s252_s3] sm:$0xff] %v140_v13 }
  0xe5   :  { %v124_v15 = vpop.f32.mrf.mxu0 }
  0xe7   :  { %v183_v16 = vpop.f32.mrf.mxu0 }

// kernel: vit_forward.6
= control target key start
LH: loop header
LB: loop body
LE: loop exit
PB: predicated region body
PF: predicated region fallthrough
CT: control target
= control target key end

     0   :  { %s3493_s0 = inlined_call_operand.vmem [shape: f32[2,5,128], index: 0, kind: input, shape index: {}]   ;;  %s3494_s1 = inlined_call_operand.hbm [shape: f32[12,6,128], index: 1, kind: input, shape index: {}]   ;;  %s3495_s2 = inlined_call_operand.hbm [shape: bf16[12,128,384], index: 2, kind: input, shape index: {}]   ;;  %s3496_s3 = inlined_call_operand.hbm [shape: f32[12,1,384], index: 3, kind: input, shape index: {}]   ;;  %s3497_s4 = inlined_call_operand.hbm [shape: bf16[12,128,128], index: 4, kind: input, shape index: {}]   ;;  %s3498_s5 = inlined_call_operand.hbm [shape: bf16[12,128,256], index: 5, kind: input, shape index: {}]   ;;  %s3499_s6 = inlined_call_operand.hbm [shape: f32[12,1,256], index: 6, kind: input, shape index: {}]   ;;  %s3500_s7 = inlined_call_operand.hbm [shape: bf16[12,256,128], index: 7, kind: input, shape index: {}]   ;;  %s3501_s8 = inlined_call_operand.hbm [shape: f32[2,128], index: 8, kind: input, shape index: {}]   ;;  %s3502_s9 = inlined_call_operand.vmem [shape: f32[2,1,128], index: 9, kind: output, shape index: {}]  }
   0x1   :  { %3516 = sst [smem:[#allocation28_spill]] %s3493_s0 }
   0x2   :  { %3517 = sst [smem:[#allocation29_spill]] %s3494_s1 }
   0x3   :  { %3518 = sst [smem:[#allocation30_spill]] %s3495_s2 }
   0x4   :  { %3519 = sst [smem:[#allocation31_spill]] %s3496_s3 }
   0x5   :  { %3520 = sst [smem:[#allocation32_spill]] %s3500_s7 }
   0x6   :  { %3521 = sst [smem:[#allocation33_spill]] %s3502_s9 }
   0x7   :  { %14 = vsyncpa [#allocation4], 0 }
   0x8   :  { %16 = vsyncpa [#allocation4 + $0x1], 0 }
   0x9   :  { %17 = vsyncpa [#allocation6], 0 }
   0xa   :  { %19 = vsyncpa [#allocation6 + $0x1], 0 }
   0xb   :  { %20 = vsyncpa [#allocation9], 0 }
   0xc   :  { %22 = vsyncpa [#allocation9 + $0x1], 0 }
   0xd   :  { %23 = vsyncpa [#allocation12], 0 }
   0xe   :  { %25 = vsyncpa [#allocation12 + $0x1], 0 }
   0xf   :  { %26 = vsyncpa [#allocation15], 0  ;;  %s3000_s30 = smov 0   ;;  %s3002_s10 = smov 0  }
  0x10   :  { %s3004_s11 = smov 0   ;;  %s3006_s12 = smov 0  }
  0x11   :  { %s3008_s13 = smov 0   ;;  %s3010_s14 = smov 0  }
  0x12   :  { %s3012_s15 = smov 0   ;;  %s3014_s16 = smov 0  }
  0x13 LB: > { %3522 = sst [smem:[#allocation21_spill]] %s2907_s11  ;;  %s41_s17 = sadd.s32 1, %s2919_s14  ;;  %s2927_s16 = sphi %s3014_s16, %s32_s16   ;;  %s2923_s15 = sphi %s3012_s15, %s3557_s15   ;;  %s2919_s14 = sphi %s3010_s14, %s3562_s14   ;;  %s2915_s13 = sphi %s3008_s13, %s3555_s13   ;;  %s2911_s12 = sphi %s3006_s12, %s3561_s12   ;;  %s2907_s11 = sphi %s3004_s11, %s3560_s11   ;;  %s2903_s10 = sphi %s3002_s10, %s3559_s10   ;;  %s2899_s30 = sphi %s3000_s30, %s3558_s30  }
  0x14   : > { %3523 = sst [smem:[#allocation22_spill]] %s2911_s12  ;;  %s44_s18 = sadd.s32 1, %s2923_s15 }
  0x15   : > { %3524 = sst [smem:[#allocation23_spill]] %s2915_s13  ;;  %p42_p0 = scmp.ge.s32.totalorder %s41_s17, 12 }
  0x16   : > { %3525 = sst [smem:[#allocation24_spill]] %s2923_s15  ;;  %s77_s19 = sadd.s32 1, %s2907_s11 }
  0x17   : > { %p84_p1 = scmp.ne.s32.totalorder %s2907_s11, %s2903_s10  ;;  %p85_p2 = scmp.eq.s32.totalorder %s2927_s16, 0 }
  0x18   : > { %s3564_s17 = smov (%p42_p0, %s41_s17), 0  ;;  %s3566_s18 = smov (!%p42_p0, %s44_s18), %s2923_s15 }
  0x19   : > { %3526 = sst [smem:[#allocation25_spill]] %s3564_s17  ;;  %s74_s20 = ssub.s32 %s2919_s14, %s3564_s17 }
  0x1a   : > { %p86_p3 = por %p85_p2, %p84_p1  ;;  %p46_p4 = scmp.ge.s32.totalorder %s3566_s18, 2 }
  0x1b   : > { %p75_p5 = scmp.eq.s32.totalorder %s74_s20, 0  ;;  %p2433_p6 = scmp.lt.s32.totalorder %s2927_s16, 24 }
  0x1c   : > { %s3568_s18 = smov (%p46_p4, %s3566_s18), 0  ;;  %s3058_s22 = sand.u32 1, %s2907_s11  }
  0x1d   : > { %3527 = sst [smem:[#allocation26_spill]] %s3568_s18  ;;  %p3060_p7 = pnand %p2433_p6, %p86_p3 }
  0x1e   : > { %s3055_s21 = scalar_select %p75_p5, %s2907_s11, %s77_s19  }
  0x1f   : > { %s3065_s24 = sand.u32 1, %s2927_s16   ;;  %s2382_s25 = smul.u32 192, %s3058_s22 }
  0x20   : > { %3528 = sst [smem:[#allocation27_spill]] %s3055_s21  ;;  %s2383_s26 = smul.u32 3072, %s2919_s14 }
  0x21   : > { %s357_s27 = scalar_lea.vmem [#allocation5], %s2382_s25  ;;  %s3530_s2 = sld [smem:[#allocation30_spill]] }
  0x22   : > { %s364_s28 = sshll.u32 %s357_s27, 4  ;;  %s3507_s18 = scalar_lea.sflag [#allocation6], %s3065_s24  ;;  %s365_s28 = int_to_ptr.vmem [resolvable:$true] %s364_s28 }
  0x23   : > { %p3075_p8 = pneg %p3060_p7  ;;  %s2636_s15 = scalar_lea.vmem %s365_s28, 3072 }
  0x24   : > { %p2637_p9 = scmp.ne.s32.totalorder %s365_s28, %s2636_s15  ;;  %s2929_s21 = smov [#allocation5]  }
  0x25   : > { %s2641_s25 = sshll.u32 %s2929_s21, 4  ;;  %s2642_s25 = int_to_ptr.vmem [resolvable:$false] %s2641_s25 }
  0x26   : > { %p2639_p10 = pnand %p2637_p9, %p3075_p8  ;;  %s2643_s27 = scalar_lea.vmem %s2642_s25, 6144 }
  0x27   : > { %s363_s19 = scalar_lea.hbm %s3530_s2, %s2383_s26  ;;  %p2644_p12 = scmp.lt.s32.totalorder %s365_s28, %s2642_s25 }
  0x28   : > { %p2640_p11 = pneg %p2639_p10  ;;  %p2645_p13 = scmp.lt.s32.totalorder %s2643_s27, %s2636_s15 }
  0x2a   : > { %p2646_p0 = por %p2645_p13, %p2644_p12 }
  0x2c   : > { %p2647_p1 = pnand %p2646_p0, %p2640_p11 }
  0x2e   : > { %2650 = shalt.err (!%p2647_p1)
}
  0x2f   : > { %s2930_s26 = smov 192   ;;  %s2931_s29 = smov 12  }
  0x30   : > { %2416 = dma.hbm_to_vmem [thread:$0]  (!%p3060_p7), %s363_s19, 3072, %s365_s28, %s3507_s18, %s2930_s26, %s2930_s26, %s2931_s29  }
  0x31   : > { %s2138_s20 = sshll.u32 %s3058_s22, 6  ;;  %s2234_s21 = sshll.u32 %s2919_s14, 10 }
  0x32   : > { %s403_s15 = scalar_lea.hbm %s3497_s4, %s2234_s21  ;;  %s397_s25 = scalar_lea.vmem [#allocation8], %s2138_s20 }
  0x33   : > { %s404_s27 = sshll.u32 %s397_s25, 4  ;;  %s3515_s12 = scalar_lea.sflag [#allocation9], %s3065_s24  ;;  %s405_s27 = int_to_ptr.vmem [resolvable:$true] %s404_s27 }
  0x34   : > { %s2664_s0 = scalar_lea.vmem %s405_s27, 1024  ;;  %s2932_s9 = smov [#allocation8]  }
  0x35   : > { %p2665_p2 = scmp.ne.s32.totalorder %s405_s27, %s2664_s0  ;;  %s2669_s13 = sshll.u32 %s2932_s9, 4  ;;  %s2670_s13 = int_to_ptr.vmem [resolvable:$false] %s2669_s13 }
  0x36   : > { %s2671_s7 = scalar_lea.vmem %s2670_s13, 2048  ;;  %p2672_p5 = scmp.lt.s32.totalorder %s405_s27, %s2670_s13 }
  0x37   : > { %p2667_p3 = pnand %p2665_p2, %p3075_p8  ;;  %p2673_p6 = scmp.lt.s32.totalorder %s2671_s7, %s2664_s0 }
  0x39   : > { %p2668_p4 = pneg %p2667_p3  ;;  %p2674_p9 = por %p2673_p6, %p2672_p5 }
  0x3b   : > { %p2675_p10 = pnand %p2674_p9, %p2668_p4 }
  0x3d   : > { %2678 = shalt.err (!%p2675_p10)
}
  0x3e   : > { %s3513_s2 = smov 64   ;;  %s3514_s11 = smov 4  }
  0x3f   : > { %2422 = dma.hbm_to_vmem [thread:$0]  (!%p3060_p7), %s403_s15, 1024, %s405_s27, %s3515_s12, %s3513_s2, %s3513_s2, %s3514_s11  }
  0x40   : > { %s2144_s9 = sshll.u32 %s3058_s22, 1  ;;  %s2236_s13 = sshll.u32 %s2919_s14, 5 }
  0x41   : > { %s445_s28 = scalar_lea.hbm %s3499_s6, %s2236_s13  ;;  %s439_s19 = scalar_lea.vmem [#allocation11], %s2144_s9 }
  0x42   : > { %s447_s26 = sshll.u32 %s439_s19, 4  ;;  %s3512_s29 = scalar_lea.sflag [#allocation12], %s3065_s24  ;;  %s448_s26 = int_to_ptr.vmem [resolvable:$true] %s447_s26 }
  0x43   : > { %s2692_s20 = scalar_lea.vmem %s448_s26, 32  ;;  %s2935_s21 = smov [#allocation11]  }
  0x44   : > { %p2693_p11 = scmp.ne.s32.totalorder %s448_s26, %s2692_s20  ;;  %s2697_s25 = sshll.u32 %s2935_s21, 4  ;;  %s2698_s25 = int_to_ptr.vmem [resolvable:$false] %s2697_s25 }
  0x45   : > { %s2699_s18 = scalar_lea.vmem %s2698_s25, 64  ;;  %p2700_p0 = scmp.lt.s32.totalorder %s448_s26, %s2698_s25 }
  0x46   : > { %p2695_p12 = pnand %p2693_p11, %p3075_p8  ;;  %p2701_p1 = scmp.lt.s32.totalorder %s2699_s18, %s2692_s20 }
  0x48   : > { %p2696_p13 = pneg %p2695_p12  ;;  %p2702_p2 = por %p2701_p1, %p2700_p0 }
  0x4a   : > { %p2703_p3 = pnand %p2702_p2, %p2696_p13 }
  0x4c   : > { %2706 = shalt.err (!%p2703_p3)
}
  0x4d   : > { %2428 = dma.hbm_to_vmem [thread:$0]  (!%p3060_p7), %s445_s28, 32, %s448_s26, %s3512_s29  }
  0x4e   : > { %s3511_s15 = sadd.s32 4294967295, %s2927_s16   ;;  %p90_p4 = scmp.ne.s32.totalorder %s2903_s10, %s2899_s30 }
  0x4f   : > { %p3117_p5 = scmp.eq.s32.totalorder %s3511_s15, 0  ;;  %p2131_p6 = scmp.ge.s32.totalorder %s2927_s16, 1 }
  0x50   : > { %p304_p9 = scmp.lt.s32.totalorder %s2927_s16, 25  ;;  %s2936_s30 = smov [#allocation14]  }
  0x51   : > { %s3532_s18 = scalar_select %p3117_p5, 1, 0 }
  0x52   : > { %p3125_p10 = por %p3117_p5, %p90_p4  ;;  %p3129_p11 = pnand %p2131_p6, %p304_p9 }
  0x53   : > { %s317_s13 = sshll.u32 %s2936_s30, 4  ;;  %s2134_s0 = sshll.u32 %s3058_s22, 3  ;;  %s318_s13 = int_to_ptr.vmem [resolvable:$true] %s317_s13 }
  0x54   : > { %s3533_s27 = scalar_select %p3125_p10, 1, 0 }
  0x55   : > { %p2406_p12 = pneg %p3129_p11  ;;  %s2135_s7 = sshll.u32 %s2919_s14, 7 }
  0x56   : > { %s3536_s1 = sld [smem:[#allocation29_spill]]  ;;  %s339_s21 = scalar_lea.vmem [#allocation3], %s2134_s0 }
  0x57   : > { %p3139_p13 = pnand %p2406_p12, %p3117_p5  ;;  %s346_s25 = sshll.u32 %s339_s21, 4  ;;  %s347_s25 = int_to_ptr.vmem [resolvable:$true] %s346_s25 }
  0x58   : > { %s2718_s30 = scalar_lea.vmem %s318_s13, 32  ;;  %p2726_p4 = scmp.lt.s32.totalorder %s318_s13, %s318_s13 }
  0x59   : > { %p2709_p0 = pneg %p3139_p13  ;;  %p2719_p1 = scmp.ne.s32.totalorder %s318_s13, %s2718_s30 }
  0x5a   : > { %p2727_p6 = scmp.lt.s32.totalorder %s2718_s30, %s2718_s30 }
  0x5b   : > { %p2721_p2 = pnand %p2719_p1, %p2709_p0 }
  0x5c   : > { %s3146_s20 = scalar_lea.hbm %s3536_s1, %s2135_s7  ;;  %p2728_p9 = por %p2727_p6, %p2726_p4 }
  0x5d   : > { %p2722_p3 = pneg %p2721_p2 }
  0x5f   : > { %p2729_p12 = pnand %p2728_p9, %p2722_p3 }
  0x61   : > { %2732 = shalt.err (!%p2729_p12)
}
  0x62   : > { %2409 = dma.hbm_to_vmem [thread:$0]  (!%p3139_p13), %s3501_s8, 32, %s318_s13, [#allocation15]  }
  0x63   : > { %s336_s0 = scalar_lea.sflag [#allocation4], %s3058_s22  ;;  %s2746_s7 = scalar_lea.vmem %s347_s25, 128 }
  0x64   : > { %p2747_p5 = scmp.ne.s32.totalorder %s347_s25, %s2746_s7  ;;  %s2937_s21 = smov [#allocation3]  }
  0x65   : > { %s2751_s15 = sshll.u32 %s2937_s21, 4  ;;  %s2752_s15 = int_to_ptr.vmem [resolvable:$false] %s2751_s15 }
  0x66   : > { %p2749_p10 = pnand %p2747_p5, %p3075_p8  ;;  %s2753_s30 = scalar_lea.vmem %s2752_s15, 256 }
  0x67   : > { %p2754_p1 = scmp.lt.s32.totalorder %s347_s25, %s2752_s15  ;;  %p2755_p2 = scmp.lt.s32.totalorder %s2753_s30, %s2746_s7 }
  0x68   : > { %p2750_p0 = pneg %p2749_p10 }
  0x69   : > { %p2756_p3 = por %p2755_p2, %p2754_p1 }
  0x6b   : > { %p2757_p4 = pnand %p2756_p3, %p2750_p0 }
  0x6d   : > { %2760 = shalt.err (!%p2757_p4)
}
  0x6e   : > { %2413 = dma.hbm_to_vmem [thread:$0]  (!%p3060_p7), %s3146_s20, 128, %s347_s25, %s336_s0  }
  0x6f   : > { %s2384_s13 = smul.u32 3, %s3058_s22  ;;  %s2141_s28 = sshll.u32 %s3058_s22, 7 }
  0x70   : > { %s2385_s19 = smul.u32 48, %s2919_s14  ;;  %s2235_s26 = sshll.u32 %s2919_s14, 11 }
  0x71   : > { %s3537_s3 = sld [smem:[#allocation31_spill]]  ;;  %s378_s30 = scalar_lea.vmem [#allocation7], %s2384_s13 }
  0x72   : > { %s386_s29 = sshll.u32 %s378_s30, 4  ;;  %s3173_s12 = scalar_lea.hbm %s3498_s5, %s2235_s26  ;;  %s387_s29 = int_to_ptr.vmem [resolvable:$true] %s386_s29 }
  0x73   : > { %s2774_s1 = scalar_lea.vmem %s387_s29, 48  ;;  %s2938_s20 = smov [#allocation7]  }
  0x74   : > { %p2775_p5 = scmp.ne.s32.totalorder %s387_s29, %s2774_s1  ;;  %s2779_s25 = sshll.u32 %s2938_s20, 4  ;;  %s2780_s25 = int_to_ptr.vmem [resolvable:$false] %s2779_s25 }
  0x75   : > { %s2781_s0 = scalar_lea.vmem %s2780_s25, 96  ;;  %p2782_p6 = scmp.lt.s32.totalorder %s387_s29, %s2780_s25 }
  0x76   : > { %p2777_p10 = pnand %p2775_p5, %p3075_p8  ;;  %p2783_p9 = scmp.lt.s32.totalorder %s2781_s0, %s2774_s1 }
  0x77   : > { %s384_s7 = scalar_lea.hbm %s3537_s3, %s2385_s19 }
  0x78   : > { %p2778_p13 = pneg %p2777_p10  ;;  %p2784_p12 = por %p2783_p9, %p2782_p6 }
  0x7a   : > { %p2785_p0 = pnand %p2784_p12, %p2778_p13 }
  0x7c   : > { %2788 = shalt.err (!%p2785_p0)
}
  0x7d   : > { %s3538_s2 = scalar_lea.sflag [#allocation6], %s3065_s24  ;;  %s418_s11 = scalar_lea.vmem [#allocation10], %s2141_s28 }
  0x7e   : > { %2419 = dma.hbm_to_vmem [thread:$0]  (!%p3060_p7), %s384_s7, 48, %s387_s29, %s3538_s2  }
  0x7f   : > { %s425_s13 = sshll.u32 %s418_s11, 4  ;;  %s2939_s1 = smov [#allocation10]   ;;  %s426_s13 = int_to_ptr.vmem [resolvable:$true] %s425_s13 }
  0x80   : > { %s2802_s19 = scalar_lea.vmem %s426_s13, 2048  ;;  %s2807_s21 = sshll.u32 %s2939_s1, 4  ;;  %s2808_s21 = int_to_ptr.vmem [resolvable:$false] %s2807_s21 }
  0x81   : > { %p2803_p1 = scmp.ne.s32.totalorder %s426_s13, %s2802_s19  ;;  %s2809_s15 = scalar_lea.vmem %s2808_s21, 4096 }
  0x82   : > { %p2810_p4 = scmp.lt.s32.totalorder %s426_s13, %s2808_s21  ;;  %p2811_p5 = scmp.lt.s32.totalorder %s2809_s15, %s2802_s19 }
  0x83   : > { %p2805_p2 = pnand %p2803_p1, %p3075_p8 }
  0x84   : > { %p2812_p10 = por %p2811_p5, %p2810_p4 }
  0x85   : > { %p2806_p3 = pneg %p2805_p2 }
  0x87   : > { %p2813_p13 = pnand %p2812_p10, %p2806_p3 }
  0x89   : > { %2816 = shalt.err (!%p2813_p13)
}
  0x8a   : > { %s2940_s30 = smov 128   ;;  %s2941_s29 = smov 8  }
  0x8b   : > { %s3539_s7 = scalar_lea.sflag [#allocation9], %s3065_s24  ;;  %s3540_s0 = sld [smem:[#allocation32_spill]] }
  0x8c   : > { %2425 = dma.hbm_to_vmem [thread:$0]  (!%p3060_p7), %s3173_s12, 2048, %s426_s13, %s3539_s7, %s2940_s30, %s2940_s30, %s2941_s29  }
  0x8d   : > { %s458_s11 = scalar_lea.vmem [#allocation13], %s2141_s28  ;;  %s2942_s21 = smov [#allocation13]  }
  0x8e   : > { %s465_s19 = sshll.u32 %s458_s11, 4  ;;  %s2835_s15 = sshll.u32 %s2942_s21, 4  ;;  %s466_s19 = int_to_ptr.vmem [resolvable:$true] %s465_s19  ;;  %s2836_s15 = int_to_ptr.vmem [resolvable:$false] %s2835_s15 }
  0x8f   : > { %s2830_s1 = scalar_lea.vmem %s466_s19, 2048  ;;  %s2837_s3 = scalar_lea.vmem %s2836_s15, 4096 }
  0x90   : > { %p2831_p6 = scmp.ne.s32.totalorder %s466_s19, %s2830_s1  ;;  %p2838_p0 = scmp.lt.s32.totalorder %s466_s19, %s2836_s15 }
  0x91   : > { %s464_s2 = scalar_lea.hbm %s3540_s0, %s2235_s26  ;;  %p2839_p1 = scmp.lt.s32.totalorder %s2837_s3, %s2830_s1 }
  0x92   : > { %p2833_p9 = pnand %p2831_p6, %p3075_p8 }
  0x93   : > { %p2840_p2 = por %p2839_p1, %p2838_p0 }
  0x94   : > { %p2834_p12 = pneg %p2833_p9 }
  0x96   : > { %p2841_p3 = pnand %p2840_p2, %p2834_p12 }
  0x98   : > { %2844 = shalt.err (!%p2841_p3)
}
  0x99   : > { %s3541_s12 = smov 4   ;;  %s3542_s22 = smov 64  }
  0x9a   : > { %s3543_s28 = scalar_lea.sflag [#allocation12], %s3065_s24  ;;  %477 = sbr.rel (%p3129_p11) target bundleno = 3337 (0xd09), region = 56 }
  0x9b   : > { %2431 = dma.hbm_to_vmem [thread:$0]  (!%p3060_p7), %s464_s2, 2048, %s466_s19, %s3543_s28, %s3542_s22, %s3542_s22, %s3541_s12  }
  0x9c   : > { %s479_s17 = sand.u32 (!%p3129_p11), 1, %s2903_s10   ;;  %p3544_p8 = scmp.ne.s32.totalorder (!%p3129_p11), %s3533_s27, 0 }
  0x9d   : > { %s2151_s26 = sshll.u32 (!%p3129_p11), %s479_s17, 3  ;;  %s480_s13 = scalar_lea.sflag (!%p3129_p11), [#allocation4], %s479_s17 }
  0x9e   : > { %s3209_s3 = scalar_lea.vmem (!%p3129_p11), [#allocation3], %s2151_s26 }
  0x9f   : > { %2878 = dma.done.wait (%p3544_p8), %s480_s13, 128  }
  0xa0   : > { %2880 = vsyncadd (%p3544_p8), %s480_s13, 4294967168  ;;  %s3545_s23 = sadd.s32 4294967295, %s2927_s16   ;;  %s2386_s30 = smul.u32 192, %s479_s17 }
  0xa1   : > { %s488_s24 = sand.u32 1, %s3545_s23  }
  0xa2   : > { %s489_s29 = scalar_lea.sflag [#allocation6], %s488_s24  ;;  %s3217_s9 = scalar_lea.vmem [#allocation5], %s2386_s30 }
  0xa3   : > { %2882 = dma.done.wait (%p3544_p8), %s489_s29, 3120  }
  0xa4   : > { %2884 = vsyncadd (%p3544_p8), %s489_s29, 4294964176  ;;  %s2387_s7 = smul.u32 3, %s479_s17  ;;  %s2152_s20 = sshll.u32 %s479_s17, 6 }
  0xa5   : > { %s507_s0 = scalar_lea.sflag [#allocation9], %s488_s24  ;;  %s3225_s2 = scalar_lea.vmem [#allocation8], %s2152_s20 }
  0xa6   : > { %s3223_s25 = scalar_lea.vmem [#allocation7], %s2387_s7 }
  0xa7   : > { %2886 = dma.done.wait (%p3544_p8), %s507_s0, 3072  }
  0xa8   : > { %2888 = vsyncadd (%p3544_p8), %s507_s0, 4294964224  ;;  %s2153_s11 = sshll.u32 %s479_s17, 7  ;;  %s2154_s19 = sshll.u32 %s479_s17, 1 }
  0xa9   : > { %s3231_s1 = scalar_lea.vmem [#allocation10], %s2153_s11  ;;  %s525_s21 = scalar_lea.sflag [#allocation12], %s488_s24 }
  0xaa   : > { %s3233_s15 = scalar_lea.vmem [#allocation11], %s2154_s19 }
  0xab   : > { %2890 = dma.done.wait (%p3544_p8), %s525_s21, 2080  }
  0xac   : > { %2892 = vsyncadd (%p3544_p8), %s525_s21, 4294965216  ;;  %s3239_s12 = scalar_lea.vmem [#allocation13], %s2153_s11  ;;  %p3546_p7 = scmp.ne.s32.totalorder %s3532_s18, 0 }
  0xae   : > { %2894 = dma.done.wait (%p3546_p7), [#allocation15], 32  }
  0xaf   : > { %2896 = vsyncadd (%p3546_p7), [#allocation15], 4294967264  ;;  %s3547_s22 = sld [smem:[#allocation23_spill]] }
  0xb0   : > { %s3548_s27 = sld [smem:[#allocation33_spill]] }
  0xb1   : > { %s3549_s30 = sld [smem:[#allocation28_spill]] }
  0xb2   : > { %s3550_s7 = sld [smem:[#allocation22_spill]] }
  0xb5   : > { %p608_p11 = scmp.lt.s32.totalorder %s3547_s22, 1 }
  0xb7   : > { %s3570_s22 = smov (!%p608_p11, %s3547_s22), 1 }
  0xb8   : > { %s2157_s28 = sshll.u32 %s3570_s22, 3  ;;  %s614_s13 = scalar_lea.vmem %s3548_s27, %s3570_s22 }
  0xb9   : > { %s611_s29 = scalar_lea.vmem %s3549_s30, %s2157_s28  ;;  %p2158_p4 = scmp.ne.s32.totalorder %s3550_s7, 0 }
  0xbb   : > { %620 = sbr.rel (%p2158_p4) target bundleno = 194 (0xc2), region = 92 }
  0xc0   : > { %v621_v0 = vld [vmem:[%s611_s29] sm:$0x1f] }
  0xc1   : > { %622 = vst [vmem:[#allocation2] sm:$0x1f] %v621_v0 }
  0xc2 PF: > { %vm723_vm0 = vcmask 1044480   ;;  %v2513_v3 = vld [vmem:[%s3217_s9 + $0xac] ss:$12 sps:$4 sm:$0xff]   ;;  %v2515_v4 = vld [vmem:[%s3217_s9 + $0xa8] ss:$12 sps:$4 sm:$0xff]   ;;  %v2943_v5 = vmov 0.0   ;;  %v738_v37 = vlaneseq }
  0xc3   : > { %2294 = vmatprep.subr.bf16.mxu1 %v2943_v5  ;;  %v2516_v6 = vld [vmem:[%s3217_s9 + $0xb0] ss:$12 sps:$4 sm:$0xff]   ;;  %v2517_v7 = vld [vmem:[%s3217_s9 + $0x94] ss:$12 sps:$4 sm:$0xff]   ;;  %893 = vmatprep.subr.bf16.mxu0 %v2513_v3  ;;  %v2520_v9 = vld [vmem:[%s3217_s9 + $0x98] ss:$12 sps:$4 sm:$0xff]  }
  0xc4   : > { %v2519_v8 = vld [vmem:[%s3217_s9 + $0x90] ss:$12 sps:$4 sm:$0xff]   ;;  %894 = vmatpush1.bf16.msra.mxu0 %v2515_v4  ;;  %2295 = vmatpush3.bf16.msra.mxu1 %v2516_v6  ;;  %v2523_v16 = vld [vmem:[%s3217_s9 + $0x78] ss:$12 sps:$4 sm:$0xff]   ;;  %v2524_v17 = vld [vmem:[%s3217_s9 + $0x80] ss:$12 sps:$4 sm:$0xff]  }
  0xc5   : > { %895 = vmatprep.subr.bf16.mxu0 %v2517_v7  ;;  %2296 = vmatprep.subr.bf16.mxu1 %v2943_v5  ;;  %v2521_v15 = vld [vmem:[%s3217_s9 + $0x7c] ss:$12 sps:$4 sm:$0xff]   ;;  %v2525_v18 = vld [vmem:[%s3217_s9 + $0x64] ss:$12 sps:$4 sm:$0xff]   ;;  %v2527_v19 = vld [vmem:[%s3217_s9 + $0x60] ss:$12 sps:$4 sm:$0xff]  }
  0xc6   : > { %v2528_v20 = vld [vmem:[%s3217_s9 + $0x68] ss:$12 sps:$4 sm:$0xff]   ;;  %v2529_v21 = vld [vmem:[%s3217_s9 + $0x4c] ss:$12 sps:$4 sm:$0xff]   ;;  %v2532_v23 = vld [vmem:[%s3217_s9 + $0x50] ss:$12 sps:$4 sm:$0xff]  }
  0xc7   : > { %v2531_v22 = vld [vmem:[%s3217_s9 + $0x48] ss:$12 sps:$4 sm:$0xff]   ;;  %v2944_v25 = vmov 0   ;;  %vm2945_vm1 = vmmov 0   ;;  %v2535_v26 = vld [vmem:[%s3217_s9 + $0x30] ss:$12 sps:$4 sm:$0xff]  }
  0xc8   : > { %v3258_v1 = vld [vmem:[#allocation2] sm:$0x1f]  ;;  %896 = vmatpush1.bf16.msra.mxu0 %v2519_v8  ;;  %2297 = vmatpush3.bf16.msra.mxu1 %v2520_v9  ;;  %v2533_v24 = vld [vmem:[%s3217_s9 + $0x34] ss:$12 sps:$4 sm:$0xff]   ;;  %v2536_v27 = vld [vmem:[%s3217_s9 + $0x38] ss:$12 sps:$4 sm:$0xff]  }
  0xc9   : > { %v724_v2 = vsel %vm723_vm0, %v3258_v1, 0.0  ;;  %2298 = vmatprep.subr.bf16.mxu1 %v2943_v5  ;;  %897 = vmatprep.subr.bf16.mxu0 %v2521_v15  ;;  %v2537_v28 = vld [vmem:[%s3217_s9 + $0x1c] ss:$12 sps:$4 sm:$0xff]   ;;  %v2539_v29 = vld [vmem:[%s3217_s9 + $0x18] ss:$12 sps:$4 sm:$0xff]   ;;  %v3301_v38 = vshrl.u32 %v738_v37, 7 }
  0xca   : > { %725 = vadd.xlane.f32.xlu0 %v724_v2  ;;  %925 = vmatprep.mubr.bf16.mxu0 %v2944_v25  ;;  %v2540_v30 = vld [vmem:[%s3217_s9 + $0x20] ss:$12 sps:$4 sm:$0xff]   ;;  %v2541_v31 = vld [vmem:[%s3217_s9 + $0x4] ss:$12 sps:$4 sm:$0xff]   ;;  %v2544_v33 = vld [vmem:[%s3217_s9 + $0x8] ss:$12 sps:$4 sm:$0xff]  }
  0xcb   : > { %2310 = vmatprep.mubr.msk.bf16.mxu1 %vm2945_vm1, %v2943_v5  ;;  %v2543_v32 = vld [vmem:[%s3217_s9] ss:$12 sps:$4 sm:$0xff]   ;;  %v3304_v39 = vsub.s32 0, %v3301_v38  ;;  %v3307_v40 = vld [vmem:[%s3209_s3] sm:$0x3f]  ;;  %v3310_v41 = vsub.s32 1, %v3301_v38 }
  0xcc   : > { %898 = vmatpush1.bf16.msra.mxu0 %v2523_v16  ;;  %2299 = vmatpush3.bf16.msra.mxu1 %v2524_v17  ;;  %v657_v49 = vld [vmem:[%s3223_s25] sm:$0x7]  ;;  %v760_v50 = vsub.s32 2, %v3301_v38  ;;  %vm977_vm2 = vcmask 261120   ;;  %vm1041_vm3 = vcmask 1041408   ;;  %s2946_s18 = smov 96  }
  0xcd   : > { %2300 = vmatprep.subr.bf16.mxu1 %v2943_v5  ;;  %899 = vmatprep.subr.bf16.mxu0 %v2525_v18  ;;  %v741_v42 = vrot.slane %v3307_v40, %v3304_v39  ;;  %v746_v45 = vrot.slane %v3307_v40, %v3310_v41  ;;  %v757_v51 = vrot.slane %v657_v49, %v3310_v41  ;;  %vm1042_vm4 = vcmask 1042432   ;;  %s2948_s3 = smov 32   ;;  %s2949_s9 = smov 64  }
  0xce   : > { %v761_v54 = vrot.slane %v657_v49, %v760_v50  ;;  %v753_v60 = vrot.slane %v657_v49, %v3304_v39  ;;  %v2947_v3 = vmov 65535   ;;  %vm1024_vm5 = vcmask 36864   ;;  %s3551_s20 = sld [smem:[#allocation22_spill]] }
  0xcf   : > { %v1043_v4 = vsel %vm1041_vm3, 4294967295, %v2947_v3  ;;  %vm1037_vm6 = vcmask 39936   ;;  %vm1434_vm7 = vcmask 523264   ;;  %vm1436_vm8 = vcmask 785408  }
  0xd0   : > { %900 = vmatpush1.bf16.msra.mxu0 %v2527_v19  ;;  %2301 = vmatpush3.bf16.msra.mxu1 %v2528_v20  ;;  %v3332_v8 = vsel %vm1042_vm4, %v1043_v4, 0 }
  0xd1   : > { %901 = vmatprep.subr.bf16.mxu0 %v2529_v21  ;;  %2302 = vmatprep.subr.bf16.mxu1 %v2943_v5 }
  0xd4   : > { %902 = vmatpush1.bf16.msra.mxu0 %v2531_v22  ;;  %2303 = vmatpush3.bf16.msra.mxu1 %v2532_v23  ;;  %p2231_p5 = scmp.ne.s32.totalorder %s3551_s20, 11 }
  0xd5   : > { %903 = vmatprep.subr.bf16.mxu0 %v2533_v24  ;;  %2304 = vmatprep.subr.bf16.mxu1 %v2943_v5 }
  0xd8   : > { %904 = vmatpush1.bf16.msra.mxu0 %v2535_v26  ;;  %2305 = vmatpush3.bf16.msra.mxu1 %v2536_v27 }
  0xd9   : > { %905 = vmatprep.subr.bf16.mxu0 %v2537_v28  ;;  %2306 = vmatprep.subr.bf16.mxu1 %v2943_v5 }
  0xdc   : > { %906 = vmatpush1.bf16.msra.mxu0 %v2539_v29  ;;  %2307 = vmatpush3.bf16.msra.mxu1 %v2540_v30 }
  0xdd   : > { %907 = vmatprep.subr.bf16.mxu0 %v2541_v31  ;;  %2308 = vmatprep.subr.bf16.mxu1 %v2943_v5 }
  0xe0   : > { %908 = vmatpush1.bf16.msra.mxu0 %v2543_v32  ;;  %2309 = vmatpush3.bf16.msra.mxu1 %v2544_v33 }
  0xe1   : > { %2314 = vmatprep.subr.bf16.mxu1 %v2943_v5  ;;  %2338 = vmatprep.subr.bf16.mxu0 %v2943_v5 }
 0x153   : > { %v726_v10 = vpop.xlane.xlu0 %725 }
 0x154   : > { %v728_v11 = vmul.f32 0.0078125, %v726_v10 }
 0x156   : > { %v729_v12 = vsub.f32 %v3258_v1, %v728_v11 }
 0x158   : > { %v730_v13 = vmul.f32 %v729_v12, %v729_v12 }
 0x15a   : > { %v731_v14 = vsel %vm723_vm0, %v730_v13, 0.0 }
 0x15b   : > { %732 = vadd.xlane.f32.xlu0 %v731_v14 }
 0x1e4   : > { %v733_v34 = vpop.xlane.xlu0 %732 }
 0x1e5   : > { %v734_v35 = vmul.f32 0.0078125, %v733_v34 }
 0x1e7   : > { %v735_v36 = vadd.f32 1e-06, %v734_v35 }
 0x1e9   : > { %2593 = vrsqrt.f32 %v735_v36 }
 0x1f6   : > { %v2594_v43 = vpop.eup %2593 }
 0x1f7   : > { %v737_v44 = vmul.f32 %v2594_v43, %v729_v12 }
 0x1f9   : > { %v742_v46 = vmul.f32 %v741_v42, %v737_v44 }
 0x1fb   : > { %v747_v47 = vadd.f32 %v746_v45, %v742_v46 }
 0x1fd   : > { %v748_v48 = vpack.c.bf16 %v747_v47, %v747_v47 }
 0x1ff   : > { %926 = vmatmul.mubr.bf16.vlgmr.msra.gmra.mxu0 %v748_v48  ;;  %2311 = vmatmul.mubr.bf16.vlgmr.msra.gmra.mxu1 %v748_v48 }
 0x200   : > { %2316 = vmatprep.mubr.msk.bf16.mxu1 %vm2945_vm1, %v2943_v5  ;;  %2340 = vmatprep.mubr.msk.bf16.mxu0 %vm2945_vm1, %v2943_v5 }
 0x2bf   : > { %v927_v52 = vpop.f32.mrf.mxu0  ;;  %v968_v53 = vpop.f32.mrf.mxu1 }
 0x2c0   : > { %v969_v62 = vadd.f32 %v968_v53, %v761_v54  ;;  %v928_v6 = vadd.f32 %v927_v52, %v753_v60 }
 0x2c1   : > { %v929_v55 = vpop.f32.mrf.mxu0  ;;  %v2312_v56 = vpop.f32.mrf.mxu1 }
 0x2c2   : > { %v930_v57 = vadd.f32 %v929_v55, %v757_v51  ;;  %v3329_v7 = vpack.c.bf16 %v969_v62, %v969_v62  ;;  %v976_v9 = vpack.c.bf16 %v928_v6, %v928_v6 }
 0x2c3   : > { %v931_v58 = vpop.f32.mrf.mxu0  ;;  %v971_v59 = vpop.f32.mrf.mxu1 }
 0x2c4   : > { %v974_v61 = vpack.c.bf16 %v930_v57, %v930_v57  ;;  %v1046_v10 = vand.u32 %v3332_v8, %v3329_v7 }
 0x2c5   : > { %v932_v63 = vpop.f32.mrf.mxu0  ;;  %v2313_v0 = vpop.f32.mrf.mxu1 }
 0x2c6   : > { %1092 = vrot.lane.b32.xlu0 %v974_v61, %s2946_s18  ;;  %v982_v2 = vsel %vm977_vm2, %v974_v61, 0 }
 0x2c7   : > { %2315 = vmatpush3.bf16.xpose.msra.mxu1 %v982_v2 }
 0x2c8   : > { %2320 = vmatprep.subr.bf16.mxu1 %v2943_v5 }
 0x2ca   : > { %1313 = vrot.lane.b32.xlu0 %v974_v61, %s2948_s3 }
 0x2ce   : > { %2317 = vmatmul.mubr.msk.bf16.vlgmr.msra.gmra.mxu1 %vm977_vm2, %v976_v9 }
 0x2cf   : > { %2321 = vmatpush3.bf16.msra.mxu1 %v1046_v10  ;;  %2322 = vmatprep.mubr.msk.bf16.mxu1 %vm2945_vm1, %v2943_v5 }
 0x2d0   : > { %2326 = vmatprep.subr.bf16.mxu1 %v2943_v5 }
 0x338   : > { %v1093_v23 = vpop.permute.xlu0 %1092 }
 0x339   : > { %v1098_v33 = vsel %vm977_vm2, %v1093_v23, 0 }
 0x33c   : > { %v1314_v28 = vpop.permute.xlu0 %1313 }
 0x33d   : > { %v1319_v31 = vsel %vm977_vm2, %v1314_v28, 0 }
 0x38e   : > { %v1018_v11 = vpop.f32.mrf.mxu1 }
 0x38f   : > { %v1025_v12 = vsel %vm1024_vm5, %v1018_v11, -inf }
 0x390   : > { %1026 = vmax.xlane.f32.xlu1 %v1025_v12  ;;  %v2318_v13 = vpop.f32.mrf.mxu1 }
 0x392   : > { %v1021_v14 = vpop.f32.mrf.mxu1 }
 0x394   : > { %v2319_v15 = vpop.f32.mrf.mxu1 }
 0x419   : > { %v1027_v16 = vpop.xlane.xlu1 %1026 }
 0x41a   : > { %v1028_v17 = vsub.f32 %v1018_v11, %v1027_v16 }
 0x41c   : > { %v1029_v18 = vmul.f32 1.442695, %v1028_v17 }
 0x41e   : > { %2595 = vpow2.f32 %v1029_v18 }
 0x42b   : > { %v2596_v19 = vpop.eup %2595 }
 0x42c   : > { %v1031_v20 = vsel %vm1024_vm5, %v2596_v19, 0.0 }
 0x42d   : > { %1032 = vadd.xlane.f32.xlu1 %v1031_v20 }
 0x43e   : > { %1089 = vrot.lane.b32.xlu1 %v976_v9, %s2946_s18 }
 0x442   : > { %1203 = vrot.lane.b32.xlu1 %v974_v61, %s2949_s9 }
 0x446   : > { %1201 = vrot.lane.b32.xlu1 %v976_v9, %s2949_s9 }
 0x44a   : > { %1311 = vrot.lane.b32.xlu1 %v976_v9, %s2948_s3 }
 0x4b6   : > { %v1033_v21 = vpop.xlane.xlu1 %1032 }
 0x4b7   : > { %2597 = vrcp.f32 %v1033_v21 }
 0x4ba   : > { %v1090_v22 = vpop.permute.xlu1 %1089 }
 0x4be   : > { %v1204_v24 = vpop.permute.xlu1 %1203 }
 0x4bf   : > { %v1209_v26 = vsel %vm977_vm2, %v1204_v24, 0 }
 0x4c0   : > { %2339 = vmatpush3.bf16.xpose.msra.mxu0 %v1209_v26 }
 0x4c1   : > { %2350 = vmatprep.subr.bf16.mxu0 %v2943_v5 }
 0x4c2   : > { %v1202_v30 = vpop.permute.xlu1 %1201 }
 0x4c4   : > { %v2598_v27 = vpop.eup %2597 }
 0x4c5   : > { %v1035_v29 = vmul.f32 %v2598_v27, %v2596_v19 }
 0x4c6   : > { %v1312_v34 = vpop.permute.xlu1 %1311 }
 0x4c7   : > { %2341 = vmatmul.mubr.msk.bf16.vlgmr.msra.gmra.mxu0 %vm977_vm2, %v1202_v30  ;;  %v1036_v32 = vpack.c.bf16 %v1035_v29, %v1035_v29 }
 0x4c8   : > { %2351 = vmatpush3.bf16.xpose.msra.mxu0 %v1319_v31  ;;  %2352 = vmatprep.mubr.msk.bf16.mxu0 %vm2945_vm1, %v2943_v5 }
 0x4c9   : > { %2323 = vmatmul.mubr.msk.bf16.vlgmr.msra.gmra.mxu1 %vm1037_vm6, %v1036_v32  ;;  %2362 = vmatprep.subr.bf16.mxu0 %v2943_v5  ;;  %v2545_v32 = vld [vmem:[%s3225_s2 + $0x38] sm:$0xff]  }
 0x4ca   : > { %2327 = vmatpush3.bf16.xpose.msra.mxu1 %v1098_v33  ;;  %2328 = vmatprep.mubr.msk.bf16.mxu1 %vm2945_vm1, %v2943_v5  ;;  %v2546_v33 = vld [vmem:[%s3225_s2 + $0x30] sm:$0xff]  }
 0x4cb   : > { %2332 = vmatprep.subr.bf16.mxu1 %v2943_v5 }
 0x4cf   : > { %2353 = vmatmul.mubr.msk.bf16.vlgmr.msra.gmra.mxu0 %vm977_vm2, %v1312_v34  ;;  %v2548_v34 = vld [vmem:[%s3225_s2 + $0x20] sm:$0xff]  }
 0x4d0   : > { %2378 = vmatprep.mubr.msk.bf16.mxu0 %vm2945_vm1, %v2943_v5  ;;  %2363 = vmatpush3.bf16.msra.mxu0 %v2545_v32 }
 0x4d1   : > { %2329 = vmatmul.mubr.msk.bf16.vlgmr.msra.gmra.mxu1 %vm977_vm2, %v1090_v22  ;;  %2364 = vmatprep.subr.bf16.mxu0 %v2943_v5 }
 0x4d2   : > { %2334 = vmatprep.mubr.msk.bf16.mxu1 %vm2945_vm1, %v2943_v5 }
 0x4d4   : > { %2365 = vmatpush3.bf16.msra.mxu0 %v2546_v33  ;;  %v1552_v33 = vsub.s32 3, %v3301_v38 }
 0x4d5   : > { %2366 = vmatprep.subr.bf16.mxu0 %v2943_v5 }
 0x587   : > { %v1245_v35 = vpop.f32.mrf.mxu0 }
 0x588   : > { %v1251_v36 = vsel %vm1024_vm5, %v1245_v35, -inf }
 0x589   : > { %1252 = vmax.xlane.f32.xlu1 %v1251_v36  ;;  %v3365_v37 = vpop.f32.mrf.mxu1  ;;  %v2342_v42 = vpop.f32.mrf.mxu0  ;;  %v2551_v36 = vld [vmem:[%s3225_s2 + $0x8] sm:$0xff]  }
 0x58b   : > { %v2324_v43 = vpop.f32.mrf.mxu1  ;;  %v1248_v44 = vpop.f32.mrf.mxu0 }
 0x58c   : > { %v2552_v44 = vld [vmem:[%s3225_s2] sm:$0xff]  }
 0x58d   : > { %v1085_v45 = vpop.f32.mrf.mxu1  ;;  %v2343_v46 = vpop.f32.mrf.mxu0 }
 0x58f   : > { %v2325_v47 = vpop.f32.mrf.mxu1  ;;  %v1355_v48 = vpop.f32.mrf.mxu0 }
 0x590   : > { %v1361_v57 = vsel %vm1024_vm5, %v1355_v48, -inf }
 0x591   : > { %v1134_v49 = vpop.f32.mrf.mxu1  ;;  %v2354_v51 = vpop.f32.mrf.mxu0 }
 0x592   : > { %v1140_v52 = vsel %vm1024_vm5, %v1134_v49, -inf }
 0x593   : > { %v1358_v53 = vpop.f32.mrf.mxu0  ;;  %1141 = vmax.xlane.f32.xlu0 %v1140_v52  ;;  %v2330_v54 = vpop.f32.mrf.mxu1 }
 0x595   : > { %v1137_v55 = vpop.f32.mrf.mxu1  ;;  %v2355_v56 = vpop.f32.mrf.mxu0 }
 0x597   : > { %1362 = vmax.xlane.f32.xlu0 %v1361_v57  ;;  %v2331_v58 = vpop.f32.mrf.mxu1 }
 0x612   : > { %v1253_v59 = vpop.xlane.xlu1 %1252 }
 0x613   : > { %v1254_v60 = vsub.f32 %v1245_v35, %v1253_v59  ;;  %v2549_v35 = vld [vmem:[%s3225_s2 + $0x18] sm:$0xff]  }
 0x615   : > { %v1255_v61 = vmul.f32 1.442695, %v1254_v60 }
 0x617   : > { %2599 = vpow2.f32 %v1255_v61 }
 0x61c   : > { %v1142_v62 = vpop.xlane.xlu0 %1141 }
 0x61d   : > { %v1143_v63 = vsub.f32 %v1134_v49, %v1142_v62  ;;  %v1441_v62 = vsub.s32 4, %v3301_v38 }
 0x61f   : > { %v1144_v0 = vmul.f32 1.442695, %v1143_v63  ;;  %v1442_v63 = vrot.slane %v3307_v40, %v1441_v62 }
 0x620   : > { %v1363_v2 = vpop.xlane.xlu0 %1362 }
 0x621   : > { %2601 = vpow2.f32 %v1144_v0  ;;  %v1364_v3 = vsub.f32 %v1355_v48, %v1363_v2 }
 0x623   : > { %v1365_v4 = vmul.f32 1.442695, %v1364_v3 }
 0x624   : > { %v2600_v6 = vpop.eup %2599 }
 0x625   : > { %2603 = vpow2.f32 %v1365_v4  ;;  %v1257_v9 = vsel %vm1024_vm5, %v2600_v6, 0.0 }
 0x626   : > { %1258 = vadd.xlane.f32.xlu0 %v1257_v9 }
 0x62e   : > { %v2602_v10 = vpop.eup %2601 }
 0x62f   : > { %v1146_v11 = vsel %vm1024_vm5, %v2602_v10, 0.0 }
 0x630   : > { %1147 = vadd.xlane.f32.xlu0 %v1146_v11  ;;  %v2555_v11 = vld [vmem:[%s3231_s1 + $0x74] ss:$8 sps:$4 sm:$0xff]  }
 0x632   : > { %v2604_v12 = vpop.eup %2603 }
 0x633   : > { %v1367_v13 = vsel %vm1024_vm5, %v2604_v12, 0.0 }
 0x634   : > { %1368 = vadd.xlane.f32.xlu1 %v1367_v13  ;;  %v2556_v13 = vld [vmem:[%s3231_s1 + $0x60] ss:$8 sps:$4 sm:$0xff]  }
 0x645   : > { %1263 = vrot.lane.b32.xlu1 %v3329_v7, %s2949_s9 }
 0x646   : > { %1153 = vrot.lane.b32.xlu0 %v3329_v7, %s2946_s18 }
 0x649   : > { %1373 = vrot.lane.b32.xlu1 %v3329_v7, %s2948_s3 }
 0x6af   : > { %v1259_v14 = vpop.xlane.xlu0 %1258 }
 0x6b9   : > { %v1148_v15 = vpop.xlane.xlu0 %1147 }
 0x6ba   : > { %2605 = vrcp.f32 %v1148_v15 }
 0x6bb   : > { %2607 = vrcp.f32 %v1259_v14 }
 0x6bd   : > { %v1154_v16 = vpop.permute.xlu0 %1153  ;;  %v1369_v18 = vpop.xlane.xlu1 %1368 }
 0x6be   : > { %v1159_v17 = vand.u32 %v1154_v16, %v3332_v8  ;;  %2609 = vrcp.f32 %v1369_v18  ;;  %v2561_v18 = vld [vmem:[%s3231_s1 + $0x54] ss:$8 sps:$4 sm:$0xff]  }
 0x6c0   : > { %2333 = vmatpush3.bf16.msra.mxu1 %v1159_v17 }
 0x6c1   : > { %2344 = vmatprep.subr.bf16.mxu1 %v2943_v5  ;;  %v1264_v20 = vpop.permute.xlu1 %1263 }
 0x6c2   : > { %v1269_v24 = vand.u32 %v1264_v20, %v3332_v8  ;;  %v2562_v20 = vld [vmem:[%s3231_s1 + $0x40] ss:$8 sps:$4 sm:$0xff]  }
 0x6c5   : > { %v1374_v26 = vpop.permute.xlu1 %1373 }
 0x6c6   : > { %v1379_v29 = vand.u32 %v1374_v26, %v3332_v8  ;;  %v2547_v8 = vld [vmem:[%s3225_s2 + $0x28] sm:$0xff]   ;;  %v2573_v26 = vld [vmem:[%s3231_s1 + $0x14] ss:$8 sps:$4 sm:$0xff]  }
 0x6c7   : > { %v2606_v19 = vpop.eup %2605  ;;  %2367 = vmatpush3.bf16.msra.mxu0 %v2547_v8  ;;  %v1548_v8 = vrot.slane %v3307_v40, %v760_v50  ;;  %v2580_v50 = vld [vmem:[%s3239_s12 + $0x30] sm:$0xff]  }
 0x6c8   : > { %v1150_v21 = vmul.f32 %v2606_v19, %v2602_v10  ;;  %v2608_v23 = vpop.eup %2607  ;;  %2368 = vmatprep.subr.bf16.mxu0 %v2943_v5  ;;  %v2553_v10 = vld [vmem:[%s3231_s1 + $0x70] ss:$8 sps:$4 sm:$0xff]  }
 0x6c9   : > { %v1261_v7 = vmul.f32 %v2608_v23, %v2600_v6  ;;  %v2559_v19 = vld [vmem:[%s3231_s1 + $0x50] ss:$8 sps:$4 sm:$0xff]  }
 0x6ca   : > { %v1151_v22 = vpack.c.bf16 %v1150_v21, %v1150_v21  ;;  %v2564_v21 = vld [vmem:[%s3231_s1 + $0x44] ss:$8 sps:$4 sm:$0xff]   ;;  %v2565_v23 = vld [vmem:[%s3231_s1 + $0x30] ss:$8 sps:$4 sm:$0xff]  }
 0x6cb   : > { %v1262_v27 = vpack.c.bf16 %v1261_v7, %v1261_v7  ;;  %v2610_v28 = vpop.eup %2609  ;;  %2369 = vmatpush3.bf16.msra.mxu0 %v2548_v34  ;;  %v2568_v7 = vld [vmem:[%s3231_s1 + $0x20] ss:$8 sps:$4 sm:$0xff]  }
 0x6cc   : > { %2335 = vmatmul.mubr.msk.bf16.vlgmr.msra.gmra.mxu1 %vm1037_vm6, %v1151_v22  ;;  %v1371_v30 = vmul.f32 %v2610_v28, %v2604_v12  ;;  %2370 = vmatprep.subr.bf16.mxu0 %v2943_v5  ;;  %v2558_v12 = vld [vmem:[%s3231_s1 + $0x64] ss:$8 sps:$4 sm:$0xff]   ;;  %v2567_v22 = vld [vmem:[%s3231_s1 + $0x34] ss:$8 sps:$4 sm:$0xff]  }
 0x6cd   : > { %2345 = vmatpush3.bf16.msra.mxu1 %v1269_v24  ;;  %2346 = vmatprep.mubr.msk.bf16.mxu1 %vm2945_vm1, %v2943_v5  ;;  %v2570_v24 = vld [vmem:[%s3231_s1 + $0x24] ss:$8 sps:$4 sm:$0xff]  }
 0x6ce   : > { %2356 = vmatprep.subr.bf16.mxu1 %v2943_v5  ;;  %v1372_v31 = vpack.c.bf16 %v1371_v30, %v1371_v30  ;;  %v2576_v28 = vld [vmem:[%s3231_s1 + $0x4] ss:$8 sps:$4 sm:$0xff]  }
 0x6cf   : > { %2371 = vmatpush3.bf16.msra.mxu0 %v2549_v35 }
 0x6d0   : > { %2372 = vmatprep.subr.bf16.mxu0 %v2943_v5 }
 0x6d4   : > { %2347 = vmatmul.mubr.msk.bf16.vlgmr.msra.gmra.mxu1 %vm1037_vm6, %v1262_v27  ;;  %v2571_v27 = vld [vmem:[%s3231_s1 + $0x10] ss:$8 sps:$4 sm:$0xff]  }
 0x6d5   : > { %2357 = vmatpush3.bf16.msra.mxu1 %v1379_v29  ;;  %2358 = vmatprep.mubr.msk.bf16.mxu1 %vm2945_vm1, %v2943_v5  ;;  %v2574_v29 = vld [vmem:[%s3231_s1] ss:$8 sps:$4 sm:$0xff]  }
 0x6d6   : > { %1647 = vmatprep.subr.bf16.mxu1 %v2555_v11 }
 0x6dc   : > { %2359 = vmatmul.mubr.msk.bf16.vlgmr.msra.gmra.mxu1 %vm1037_vm6, %v1372_v31 }
 0x6dd   : > { %1679 = vmatprep.mubr.bf16.mxu1 %v2944_v25  ;;  %v2550_v25 = vld [vmem:[%s3225_s2 + $0x10] sm:$0xff]   ;;  %1648 = vmatpush1.bf16.msra.mxu1 %v2553_v10 }
 0x6de   : > { %2373 = vmatpush3.bf16.msra.mxu0 %v2550_v25  ;;  %1649 = vmatprep.subr.bf16.mxu1 %v2558_v12  ;;  %v1553_v25 = vrot.slane %v3307_v40, %v1552_v33 }
 0x6df   : > { %2374 = vmatprep.subr.bf16.mxu0 %v2943_v5 }
 0x6e1   : > { %1650 = vmatpush1.bf16.msra.mxu1 %v2556_v13 }
 0x6e2   : > { %2375 = vmatpush3.bf16.msra.mxu0 %v2551_v36  ;;  %1651 = vmatprep.subr.bf16.mxu1 %v2561_v18 }
 0x6e3   : > { %2376 = vmatprep.subr.bf16.mxu0 %v2943_v5 }
 0x6e5   : > { %1652 = vmatpush1.bf16.msra.mxu1 %v2559_v19 }
 0x6e6   : > { %2377 = vmatpush3.bf16.msra.mxu0 %v2552_v44  ;;  %1653 = vmatprep.subr.bf16.mxu1 %v2564_v21  ;;  %v2577_v44 = vld [vmem:[%s3239_s12 + $0x78] sm:$0xff]  }
 0x6e7   : > { %2272 = vmatprep.subr.bf16.mxu0 %v2577_v44 }
 0x6e9   : > { %1654 = vmatpush1.bf16.msra.mxu1 %v2562_v20 }
 0x6ea   : > { %1655 = vmatprep.subr.bf16.mxu1 %v2567_v22 }
 0x6ed   : > { %1656 = vmatpush1.bf16.msra.mxu1 %v2565_v23 }
 0x6ee   : > { %1657 = vmatprep.subr.bf16.mxu1 %v2570_v24 }
 0x6f1   : > { %1658 = vmatpush1.bf16.msra.mxu1 %v2568_v7 }
 0x6f2   : > { %1659 = vmatprep.subr.bf16.mxu1 %v2573_v26 }
 0x6f5   : > { %1660 = vmatpush1.bf16.msra.mxu1 %v2571_v27 }
 0x6f6   : > { %1661 = vmatprep.subr.bf16.mxu1 %v2576_v28 }
 0x6f9   : > { %1662 = vmatpush1.bf16.msra.mxu1 %v2574_v29 }
 0x78c   : > { %v1195_v42 = vpop.f32.mrf.mxu1 }
 0x78d   : > { %1422 = vrot.lane.b32.xlu1 %v1195_v42, %s2948_s3 }
 0x78e   : > { %v2336_v43 = vpop.f32.mrf.mxu1 }
 0x790   : > { %v1198_v45 = vpop.f32.mrf.mxu1 }
 0x791   : > { %v2578_v45 = vld [vmem:[%s3239_s12 + $0x38] sm:$0xff]  }
 0x792   : > { %v2337_v46 = vpop.f32.mrf.mxu1 }
 0x793   : > { %v2579_v46 = vld [vmem:[%s3239_s12 + $0x70] sm:$0xff]  }
 0x794   : > { %v1305_v47 = vpop.f32.mrf.mxu1 }
 0x795   : > { %1426 = vrot.lane.b32.xlu0 %v1305_v47, %s2949_s9  ;;  %v2581_v47 = vld [vmem:[%s3239_s12 + $0x68] sm:$0xff]  }
 0x796   : > { %v2348_v48 = vpop.f32.mrf.mxu1 }
 0x797   : > { %v2582_v48 = vld [vmem:[%s3239_s12 + $0x28] sm:$0xff]  }
 0x798   : > { %v1308_v49 = vpop.f32.mrf.mxu1 }
 0x799   : > { %v2583_v49 = vld [vmem:[%s3239_s12 + $0x60] sm:$0xff]  }
 0x79a   : > { %v2349_v51 = vpop.f32.mrf.mxu1 }
 0x79b   : > { %v2584_v51 = vld [vmem:[%s3239_s12 + $0x20] sm:$0xff]  }
 0x79c   : > { %v1415_v52 = vpop.f32.mrf.mxu1 }
 0x79d   : > { %1430 = vrot.lane.b32.xlu1 %v1415_v52, %s2946_s18  ;;  %v2585_v52 = vld [vmem:[%s3239_s12 + $0x58] sm:$0xff]  }
 0x79e   : > { %v2360_v53 = vpop.f32.mrf.mxu1 }
 0x79f   : > { %v2586_v53 = vld [vmem:[%s3239_s12 + $0x18] sm:$0xff]  }
 0x7a0   : > { %v1418_v54 = vpop.f32.mrf.mxu1 }
 0x7a1   : > { %v2587_v54 = vld [vmem:[%s3239_s12 + $0x50] sm:$0xff]  }
 0x7a2   : > { %v2361_v55 = vpop.f32.mrf.mxu1 }
 0x7a3   : > { %v2588_v55 = vld [vmem:[%s3239_s12 + $0x10] sm:$0xff]  }
 0x7ff   : > { %v1423_v56 = vpop.permute.xlu1 %1422 }
 0x800   : > { %v1433_v5 = vsel %vm977_vm2, %v3365_v37, %v1423_v56  ;;  %v2589_v56 = vld [vmem:[%s3239_s12 + $0x48] sm:$0xff]  }
 0x807   : > { %v1427_v57 = vpop.permute.xlu0 %1426 }
 0x808   : > { %v1435_v58 = vsel %vm1434_vm7, %v1433_v5, %v1427_v57  ;;  %v2590_v57 = vld [vmem:[%s3239_s12 + $0x8] sm:$0xff]   ;;  %v2591_v5 = vld [vmem:[%s3239_s12 + $0x40] sm:$0xff]  }
 0x80f   : > { %v1431_v59 = vpop.permute.xlu1 %1430 }
 0x810   : > { %v1437_v60 = vsel %vm1436_vm8, %v1435_v58, %v1431_v59  ;;  %v2592_v58 = vld [vmem:[%s3239_s12] sm:$0xff]   ;;  %v690_v59 = vld [vmem:[%s3233_s15] sm:$0x3] }
 0x811   : > { %v1438_v61 = vpack.c.bf16 %v1437_v60, %v1437_v60  ;;  %v1560_v60 = vrot.slane %v690_v59, %v3304_v39 }
 0x813   : > { %2379 = vmatmul.mubr.bf16.vlgmr.msra.gmra.mxu0 %v1438_v61  ;;  %v1564_v61 = vrot.slane %v690_v59, %v3310_v41  ;;  %v1746_v59 = vsub.s32 5, %v3301_v38 }
 0x814   : > { %2273 = vmatpush3.bf16.msra.mxu0 %v2578_v45 }
 0x815   : > { %2274 = vmatprep.subr.bf16.mxu0 %v2579_v46 }
 0x818   : > { %2275 = vmatpush3.bf16.msra.mxu0 %v2580_v50 }
 0x819   : > { %2276 = vmatprep.subr.bf16.mxu0 %v2581_v47 }
 0x81c   : > { %2277 = vmatpush3.bf16.msra.mxu0 %v2582_v48 }
 0x81d   : > { %2278 = vmatprep.subr.bf16.mxu0 %v2583_v49 }
 0x820   : > { %2279 = vmatpush3.bf16.msra.mxu0 %v2584_v51 }
 0x821   : > { %2280 = vmatprep.subr.bf16.mxu0 %v2585_v52 }
 0x824   : > { %2281 = vmatpush3.bf16.msra.mxu0 %v2586_v53 }
 0x825   : > { %2282 = vmatprep.subr.bf16.mxu0 %v2587_v54 }
 0x828   : > { %2283 = vmatpush3.bf16.msra.mxu0 %v2588_v55 }
 0x829   : > { %2284 = vmatprep.subr.bf16.mxu0 %v2589_v56 }
 0x82c   : > { %2285 = vmatpush3.bf16.msra.mxu0 %v2590_v57 }
 0x82d   : > { %2286 = vmatprep.subr.bf16.mxu0 %v2591_v5 }
 0x830   : > { %2287 = vmatpush3.bf16.msra.mxu0 %v2592_v58 }
 0x8d3   : > { %v1525_v0 = vpop.f32.mrf.mxu0 }
 0x8d4   : > { %v1526_v2 = vadd.f32 %v1525_v0, %v1442_v63 }
 0x8d5   : > { %v2380_v3 = vpop.f32.mrf.mxu0 }
 0x8d6   : > { %v3414_v4 = vadd.f32 %v1526_v2, %v3258_v1 }
 0x8d7   : > { %v1528_v37 = vpop.f32.mrf.mxu0 }
 0x8d8   : > { %v1532_v6 = vsel %vm723_vm0, %v3414_v4, 0.0 }
 0x8d9   : > { %1533 = vadd.xlane.f32.xlu0 %v1532_v6  ;;  %v2381_v9 = vpop.f32.mrf.mxu0 }
 0x962   : > { %v1534_v1 = vpop.xlane.xlu0 %1533 }
 0x963   : > { %v1535_v14 = vmul.f32 0.0078125, %v1534_v1 }
 0x965   : > { %v1536_v15 = vsub.f32 %v3414_v4, %v1535_v14 }
 0x967   : > { %v1537_v16 = vmul.f32 %v1536_v15, %v1536_v15 }
 0x969   : > { %v1538_v17 = vsel %vm723_vm0, %v1537_v16, 0.0 }
 0x96a   : > { %1539 = vadd.xlane.f32.xlu1 %v1538_v17 }
 0x9f3   : > { %v1540_v30 = vpop.xlane.xlu1 %1539 }
 0x9f4   : > { %v1541_v31 = vmul.f32 0.0078125, %v1540_v30 }
 0x9f6   : > { %v1542_v32 = vadd.f32 1e-06, %v1541_v31 }
 0x9f8   : > { %2611 = vrsqrt.f32 %v1542_v32 }
 0xa05   : > { %v2612_v34 = vpop.eup %2611 }
 0xa06   : > { %v1544_v35 = vmul.f32 %v2612_v34, %v1536_v15 }
 0xa08   : > { %v1549_v36 = vmul.f32 %v1548_v8, %v1544_v35 }
 0xa0a   : > { %v1554_v42 = vadd.f32 %v1553_v25, %v1549_v36 }
 0xa0c   : > { %v1555_v43 = vpack.c.bf16 %v1554_v42, %v1554_v42 }
 0xa0e   : > { %1680 = vmatmul.mubr.bf16.vlgmr.msra.gmra.mxu1 %v1555_v43 }
 0xace   : > { %v1681_v62 = vpop.f32.mrf.mxu1 }
 0xacf   : > { %v1682_v63 = vadd.f32 %v1681_v62, %v1560_v60 }
 0xad0   : > { %v1683_v0 = vpop.f32.mrf.mxu1 }
 0xad1   : > { %v1690_v2 = vmul.f32 0.70710677, %v1682_v63  ;;  %v1684_v3 = vadd.f32 %v1683_v0, %v1564_v61  ;;  %v1688_v52 = vmul.f32 0.5, %v1682_v63  ;;  %v1747_v61 = vrot.slane %v3307_v40, %v1746_v59 }
 0xad2   : > { %v1685_v37 = vpop.f32.mrf.mxu1 }
 0xad3   : > { %v1692_v6 = vand.u32 2147483647, %v1690_v2  ;;  %v1691_v9 = vmul.f32 0.70710677, %v1684_v3  ;;  %v1720_v15 = vsub.f32 0.0, %v1690_v2  ;;  %vm1732_vm9 = vcmp.ge.f32.partialorder %v1690_v2, 0.0 }
 0xad4   : > { %v1686_v10 = vpop.f32.mrf.mxu1  ;;  %v1689_v54 = vmul.f32 0.5, %v1684_v3 }
 0xad5   : > { %v1694_v11 = vmul.f32 0.3275911, %v1692_v6  ;;  %v1693_v12 = vand.u32 2147483647, %v1691_v9  ;;  %v1721_v39 = vsub.f32 0.0, %v1691_v9  ;;  %v1722_v16 = vmul.f32 %v1720_v15, %v1690_v2 }
 0xad6   : > { %vm1733_vm10 = vcmp.ge.f32.partialorder %v1691_v9, 0.0 }
 0xad7   : > { %v1696_v13 = vadd.f32 1.0, %v1694_v11  ;;  %v1695_v1 = vmul.f32 0.3275911, %v1693_v12  ;;  %v1723_v17 = vmul.f32 %v1721_v39, %v1691_v9  ;;  %v1724_v19 = vmul.f32 1.442695, %v1722_v16 }
 0xad9   : > { %2613 = vrcp.f32 %v1696_v13  ;;  %v1697_v14 = vadd.f32 1.0, %v1695_v1  ;;  %v1726_v22 = vmul.f32 1.442695, %v1723_v17 }
 0xadb   : > { %2615 = vrcp.f32 %v1697_v14 }
 0xadc   : > { %2617 = vpow2.f32 %v1724_v19 }
 0xadd   : > { %2619 = vpow2.f32 %v1726_v22 }
 0xae6   : > { %v2614_v41 = vpop.eup %2613 }
 0xae7   : > { %v1702_v18 = vmul.f32 1.0614054, %v2614_v41 }
 0xae8   : > { %v2616_v20 = vpop.eup %2615 }
 0xae9   : > { %v1704_v21 = vadd.f32 -1.4531521, %v1702_v18  ;;  %v1703_v23 = vmul.f32 1.0614054, %v2616_v20  ;;  %v2618_v25 = vpop.eup %2617 }
 0xaea   : > { %v2620_v44 = vpop.eup %2619 }
 0xaeb   : > { %v1706_v24 = vmul.f32 %v2614_v41, %v1704_v21  ;;  %v1705_v7 = vadd.f32 -1.4531521, %v1703_v23 }
 0xaed   : > { %v1708_v26 = vadd.f32 1.4214138, %v1706_v24  ;;  %v1707_v27 = vmul.f32 %v2616_v20, %v1705_v7 }
 0xaef   : > { %v1710_v28 = vmul.f32 %v2614_v41, %v1708_v26  ;;  %v1709_v29 = vadd.f32 1.4214138, %v1707_v27 }
 0xaf1   : > { %v1712_v30 = vadd.f32 -0.28449672, %v1710_v28  ;;  %v1711_v31 = vmul.f32 %v2616_v20, %v1709_v29 }
 0xaf3   : > { %v1714_v32 = vmul.f32 %v2614_v41, %v1712_v30  ;;  %v1713_v33 = vadd.f32 -0.28449672, %v1711_v31 }
 0xaf5   : > { %v1716_v8 = vadd.f32 0.2548296, %v1714_v32  ;;  %v1715_v34 = vmul.f32 %v2616_v20, %v1713_v33 }
 0xaf7   : > { %v1718_v35 = vmul.f32 %v2614_v41, %v1716_v8  ;;  %v1717_v36 = vadd.f32 0.2548296, %v1715_v34 }
 0xaf9   : > { %v1728_v42 = vmul.f32 %v2618_v25, %v1718_v35  ;;  %v1719_v43 = vmul.f32 %v2616_v20, %v1717_v36 }
 0xafb   : > { %v1730_v45 = vsub.f32 1.0, %v1728_v42  ;;  %v1729_v46 = vmul.f32 %v2620_v44, %v1719_v43 }
 0xafd   : > { %v1734_v50 = vsub.f32 0.0, %v1730_v45  ;;  %v1731_v47 = vsub.f32 1.0, %v1729_v46 }
 0xaff   : > { %v1736_v48 = vsel %vm1732_vm9, %v1730_v45, %v1734_v50  ;;  %v1735_v51 = vsub.f32 0.0, %v1731_v47 }
 0xb00   : > { %v1738_v49 = vadd.f32 1.0, %v1736_v48 }
 0xb01   : > { %v1737_v53 = vsel %vm1733_vm10, %v1731_v47, %v1735_v51 }
 0xb02   : > { %v1739_v55 = vadd.f32 1.0, %v1737_v53  ;;  %v1740_v56 = vmul.f32 %v1738_v49, %v1688_v52 }
 0xb04   : > { %v1741_v57 = vmul.f32 %v1739_v55, %v1689_v54  ;;  %v1742_v58 = vpack.c.bf16 %v1740_v56, %v1740_v56 }
 0xb06   : > { %v1743_v5 = vpack.c.bf16 %v1741_v57, %v1741_v57 }
 0xb08   : > { %1876 = vmatprep.mubr.bf16.mxu0 %v1743_v5 }
 0xb09   : > { %1877 = vmatmul.mubr.bf16.vlgmr.msra.gmra.mxu0 %v1742_v58 }
 0xbc9   : > { %v2288_v60 = vpop.f32.mrf.mxu0 }
 0xbcb   : > { %v2289_v62 = vpop.f32.mrf.mxu0 }
 0xbcc   : > { %v2290_v0 = vadd.f32 %v2289_v62, %v2288_v60 }
 0xbcd   : > { %v2291_v2 = vpop.f32.mrf.mxu0 }
 0xbce   : > { %v1879_v37 = vadd.f32 %v2290_v0, %v1747_v61  ;;  %1888 = sbr.rel (%p2231_p5) target bundleno = 3337 (0xd09), region = 96 }
 0xbcf   : > { %v2292_v6 = vpop.f32.mrf.mxu0 }
 0xbd0   : > { %v1884_v63 = vadd.f32 %v1879_v37, %v3414_v4 }
 0xbd2   : > { %1885 = vst [vmem:[#allocation2] sm:$0x1f] %v1884_v63 }
 0xbd3   : > { %vm1891_vm11 = vcmask 1040384   ;;  %v1889_v4 = vld [vmem:[#allocation14] sm:$0x1]  ;;  %v1890_v39 = vld [vmem:[#allocation14 + $0x1] sm:$0x1] }
 0xbd4   : > { %v1892_v3 = vsel %vm1891_vm11, %v1884_v63, 0.0 }
 0xbd5   : > { %1893 = vadd.xlane.f32.xlu0 %v1892_v3 }
 0xc5e   : > { %v1894_v9 = vpop.xlane.xlu0 %1893 }
 0xc5f   : > { %v1895_v38 = vmul.f32 0.0078125, %v1894_v9 }
 0xc61   : > { %v1896_v10 = vsub.f32 %v1884_v63, %v1895_v38 }
 0xc63   : > { %v1897_v11 = vmul.f32 %v1896_v10, %v1896_v10 }
 0xc65   : > { %v1898_v40 = vsel %vm1891_vm11, %v1897_v11, 0.0 }
 0xc66   : > { %1899 = vadd.xlane.f32.xlu0 %v1898_v40 }
 0xcef   : > { %v1900_v12 = vpop.xlane.xlu0 %1899 }
 0xcf0   : > { %v1901_v13 = vmul.f32 0.0078125, %v1900_v12 }
 0xcf2   : > { %v1902_v1 = vadd.f32 1e-06, %v1901_v13 }
 0xcf4   : > { %2621 = vrsqrt.f32 %v1902_v1 }
 0xd01   : > { %v2622_v14 = vpop.eup %2621 }
 0xd02   : > { %v1904_v15 = vmul.f32 %v2622_v14, %v1896_v10 }
 0xd04   : > { %v1905_v16 = vmul.f32 %v1904_v15, %v1889_v4 }
 0xd06   : > { %v1906_v41 = vadd.f32 %v1905_v16, %v1890_v39 }
 0xd08   : > { %1907 = vst [vmem:[%s614_s13] sm:$0x1] %v1906_v41 }
 0xd09 PF: > { %s32_s16 = sadd.s32 1, %s2927_s16   ;;  %s3553_s11 = sld [smem:[#allocation21_spill]] }
 0xd0a   : > { %p29_p10 = scmp.ge.s32.totalorder %s32_s16, 26   ;;  %s3554_s19 = sld [smem:[#allocation27_spill]] }
 0xd0b   : > { %s3555_s13 = sld [smem:[#allocation24_spill]]  ;;  %s3558_s30 = smov %s2903_s10 }
 0xd0c   : > { %s3556_s1 = sld [smem:[#allocation25_spill]]  ;;  %s3561_s12 = smov %s2919_s14 }
 0xd0d   : > { %s3557_s15 = sld [smem:[#allocation26_spill]] }
 0xd0e   :  { %31 = sbr.rel (!%p29_p10) target bundleno = 19 (0x13), region = 183 }
 0xd0f   : > { %s3559_s10 = smov %s3553_s11 }
 0xd10   : > { %s3560_s11 = smov %s3554_s19 }
 0xd12   : > { %s3562_s14 = smov %s3556_s1 }
 0xd13   :  { %1925 = vsyncpa [#allocation4], 1 }
 0xd14   :  { %1927 = vsyncpa [#allocation4 + $0x1], 1 }
 0xd15   :  { %1928 = vsyncpa [#allocation6], 1 }
 0xd16   :  { %1930 = vsyncpa [#allocation6 + $0x1], 1 }
 0xd17   :  { %1931 = vsyncpa [#allocation9], 1 }
 0xd18   :  { %1933 = vsyncpa [#allocation9 + $0x1], 1 }
 0xd19   :  { %1934 = vsyncpa [#allocation12], 1 }
 0xd1a   :  { %1936 = vsyncpa [#allocation12 + $0x1], 1 }
 0xd1b   :  { %1937 = vsyncpa [#allocation15], 1 }

// kernel: vit_forward.5
= control target key start
LH: loop header
LB: loop body
LE: loop exit
PB: predicated region body
PF: predicated region fallthrough
CT: control target
= control target key end

     0   :  { %s2697_s0 = inlined_call_operand.vmem [shape: s32[3], index: 0, kind: input, shape index: {}]   ;;  %s2698_s1 = inlined_call_operand.vmem [shape: bf16[2,5,128], index: 1, kind: input, shape index: {}]   ;;  %s2699_s2 = inlined_call_operand.vmem [shape: f32[12,6,128], index: 2, kind: input, shape index: {}]   ;;  %s2700_s3 = inlined_call_operand.vmem [shape: bf16[12,128,384], index: 3, kind: input, shape index: {}]   ;;  %s2701_s4 = inlined_call_operand.vmem [shape: f32[12,1,384], index: 4, kind: input, shape index: {}]   ;;  %s2702_s5 = inlined_call_operand.vmem [shape: bf16[12,128,128], index: 5, kind: input, shape index: {}]   ;;  %s2703_s6 = inlined_call_operand.vmem [shape: bf16[12,128,256], index: 6, kind: input, shape index: {}]   ;;  %s2704_s7 = inlined_call_operand.vmem [shape: f32[12,1,256], index: 7, kind: input, shape index: {}]   ;;  %s2705_s8 = inlined_call_operand.vmem [shape: bf16[12,256,128], index: 8, kind: input, shape index: {}]   ;;  %s2706_s9 = inlined_call_operand.vmem [shape: f32[3,2,1,128], index: 9, kind: output, shape index: {}]  }
   0x1   :  { %s14_s11 = sshll.u32 %s2697_s0, 4  ;;  %s15_s11 = int_to_ptr.vmem [resolvable:$true] %s14_s11 }
   0x2   :  { %s2320_s12 = scalar_lea.vmem %s15_s11, 16  ;;  %p2325_p1 = scmp.lt.s32.totalorder %s15_s11, %s15_s11 }
   0x3   :  { %p2321_p0 = scmp.ne.s32.totalorder %s15_s11, %s2320_s12  ;;  %p2326_p2 = scmp.lt.s32.totalorder %s2320_s12, %s2320_s12 }
   0x5   :  { %p2327_p3 = por %p2326_p2, %p2325_p1 }
   0x7   :  { %p2328_p4 = pnand %p2327_p3, %p2321_p0 }
   0x9   :  { %2331 = shalt.err (!%p2328_p4)  }
   0xa   :  { %s2374_s13 = smov [#allocation3]  }
   0xb   :  { %17 = dma.vmem_to_smem %s15_s11, 16, %s2374_s13, [#allocation2] }
   0xc   :  { %2352 = dma.done.wait [#allocation2], 16 }
   0xd   :  { %2353 = vsyncadd [#allocation2], 4294967280 }
   0xe   :  { %19 = sfence }
   0xf   :  { %s2435_s14 = smov 0   ;;  %s2437_s15 = smov 0  }
  0x10   :  { %s2439_s16 = smov 0   ;;  %s2441_s0 = smov 0  }
  0x11   :  { %s2443_s17 = smov 0  }
  0x12 LB: > { %s34_s18 = sadd.s32 1, %s2364_s16  ;;  %s37_s19 = sadd.s32 1, %s2368_s0  ;;  %s2372_s17 = sphi %s2443_s17, %s25_s17   ;;  %s2368_s0 = sphi %s2441_s0, %s2710_s0   ;;  %s2364_s16 = sphi %s2439_s16, %s2709_s16   ;;  %s2360_s15 = sphi %s2437_s15, %s2708_s15   ;;  %s2356_s14 = sphi %s2435_s14, %s2707_s14  }
  0x13   : > { %p35_p5 = scmp.ge.s32.totalorder %s34_s18, 2  ;;  %p1929_p6 = scmp.ge.s32.totalorder %s2372_s17, 1 }
  0x14   : > { %p377_p7 = scmp.lt.s32.totalorder %s2372_s17, 7 }
  0x15   : > { %s2712_s18 = smov (%p35_p5, %s34_s18), 0  ;;  %s2714_s19 = smov (!%p35_p5, %s37_s19), %s2368_s0 }
  0x16   : > { %p378_p8 = pnand %p1929_p6, %p377_p7  ;;  %p39_p9 = scmp.ge.s32.totalorder %s2714_s19, 3 }
  0x17   : > { %p451_p10 = scmp.lt.s32.totalorder (!%p378_p8), %s2356_s14, 1  ;;  %s461_s24 = sld [smem:[#allocation3 + %s2360_s15]] (!%p378_p8) }
  0x18   : > { %s2716_s19 = smov (%p39_p9, %s2714_s19), 0  ;;  %381 = sbr.rel (%p378_p8) target bundleno = 2861 (0xb2d), region = 52 }
  0x19   : > { %s455_s29 = sld [smem:[#allocation3 + %s2360_s15]] (!%p378_p8)  ;;  %s2381_s26 = smov (!%p378_p8), 64  }
  0x1a   : > { %s468_s13 = sld [smem:[#allocation3 + %s2360_s15]] (!%p378_p8)  ;;  %p501_p4 = scmp.lt.s32.totalorder (!%p378_p8), %s2360_s15, 2 }
  0x1b   : > { %s474_s27 = sld [smem:[#allocation3 + %s2360_s15]] (!%p378_p8) }
  0x1c   : > { %s481_s11 = sld [smem:[#allocation3 + %s2360_s15]] (!%p378_p8) }
  0x1d   : > { %s2718_s14 = smov (!%p451_p10, %s2356_s14), 1  ;;  %vm610_vm0 = vcmask 1044480   ;;  %v2375_v3 = vmov 0.0   ;;  %p462_p11 = scmp.lt.s32.totalorder %s461_s24, 11  ;;  %v2376_v25 = vmov 0   ;;  %vm2377_vm1 = vmmov 0  }
  0x1e   : > { %s1930_s20 = sshll.u32 %s2718_s14, 2  ;;  %2074 = vmatprep.subr.bf16.mxu1 %v2375_v3  ;;  %812 = vmatprep.mubr.bf16.mxu0 %v2376_v25  ;;  %v625_v37 = vlaneseq  ;;  %vm864_vm2 = vcmask 261120   ;;  %vm928_vm3 = vcmask 1041408   ;;  %vm929_vm4 = vcmask 1042432   ;;  %s494_s22 = sld [smem:[#allocation3 + %s2360_s15]] }
  0x1f   : > { %s454_s23 = scalar_lea.vmem %s2698_s1, %s1930_s20  ;;  %s2720_s24 = smov (!%p462_p11, %s461_s24), 11  ;;  %2090 = vmatprep.mubr.msk.bf16.mxu1 %vm2377_vm1, %v2375_v3  ;;  %vm911_vm5 = vcmask 32768   ;;  %vm924_vm6 = vcmask 39936   ;;  %vm1321_vm7 = vcmask 523264   ;;  %vm1323_vm8 = vcmask 785408  }
  0x20   : > { %v509_v0 = vld [vmem:[%s454_s23] sm:$0x7]  ;;  %s2162_s25 = smul.u32 192, %s2720_s24  ;;  %p456_p12 = scmp.lt.s32.totalorder %s455_s29, 11  ;;  %v626_v38 = vshrl.u32 %v625_v37, 7  ;;  %vm1418_vm9 = vcmask 1040384  }
  0x21   : > { %v2473_v1 = vunpack.c.l.bf16 %v509_v0  ;;  %p469_p13 = scmp.lt.s32.totalorder %s468_s13, 11  ;;  %s2378_s24 = smov 96  }
  0x22   : > { %s2482_s28 = scalar_lea.vmem %s2700_s3, %s2162_s25  ;;  %s2722_s29 = smov (!%p456_p12, %s455_s29), 11  ;;  %v2530_v39 = vsub.s32 0, %v626_v38  ;;  %v2534_v41 = vsub.s32 1, %v626_v38  ;;  %v647_v50 = vsub.s32 2, %v626_v38 }
  0x23   : > { %v611_v2 = vsel %vm610_vm0, %v2473_v1, 0.0  ;;  %v2212_v4 = vld [vmem:[%s2482_s28 + $0xac] ss:$12 sps:$4 sm:$0xff]   ;;  %v2214_v5 = vld [vmem:[%s2482_s28 + $0xa8] ss:$12 sps:$4 sm:$0xff]   ;;  %s1931_s30 = sshll.u32 %s2722_s29, 3 }
  0x24   : > { %612 = vadd.xlane.f32.xlu0 %v611_v2  ;;  %780 = vmatprep.subr.bf16.mxu0 %v2212_v4  ;;  %v2215_v6 = vld [vmem:[%s2482_s28 + $0xb0] ss:$12 sps:$4 sm:$0xff]   ;;  %v2216_v7 = vld [vmem:[%s2482_s28 + $0x94] ss:$12 sps:$4 sm:$0xff]   ;;  %v2219_v9 = vld [vmem:[%s2482_s28 + $0x98] ss:$12 sps:$4 sm:$0xff]   ;;  %s459_s12 = scalar_lea.vmem %s2699_s2, %s1931_s30 }
  0x25   : > { %781 = vmatpush1.bf16.msra.mxu0 %v2214_v5  ;;  %v2218_v8 = vld [vmem:[%s2482_s28 + $0x90] ss:$12 sps:$4 sm:$0xff]   ;;  %2075 = vmatpush3.bf16.msra.mxu1 %v2215_v6  ;;  %v2222_v16 = vld [vmem:[%s2482_s28 + $0x78] ss:$12 sps:$4 sm:$0xff]   ;;  %v2223_v17 = vld [vmem:[%s2482_s28 + $0x80] ss:$12 sps:$4 sm:$0xff]  }
  0x26   : > { %782 = vmatprep.subr.bf16.mxu0 %v2216_v7  ;;  %2076 = vmatprep.subr.bf16.mxu1 %v2375_v3  ;;  %v2220_v15 = vld [vmem:[%s2482_s28 + $0x7c] ss:$12 sps:$4 sm:$0xff]   ;;  %v2224_v18 = vld [vmem:[%s2482_s28 + $0x64] ss:$12 sps:$4 sm:$0xff]   ;;  %v2226_v19 = vld [vmem:[%s2482_s28 + $0x60] ss:$12 sps:$4 sm:$0xff]  }
  0x27   : > { %v2227_v20 = vld [vmem:[%s2482_s28 + $0x68] ss:$12 sps:$4 sm:$0xff]   ;;  %v2228_v21 = vld [vmem:[%s2482_s28 + $0x4c] ss:$12 sps:$4 sm:$0xff]   ;;  %v2231_v23 = vld [vmem:[%s2482_s28 + $0x50] ss:$12 sps:$4 sm:$0xff]  }
  0x28   : > { %v2230_v22 = vld [vmem:[%s2482_s28 + $0x48] ss:$12 sps:$4 sm:$0xff]   ;;  %v2234_v26 = vld [vmem:[%s2482_s28 + $0x30] ss:$12 sps:$4 sm:$0xff]   ;;  %v2235_v27 = vld [vmem:[%s2482_s28 + $0x38] ss:$12 sps:$4 sm:$0xff]  }
  0x29   : > { %783 = vmatpush1.bf16.msra.mxu0 %v2218_v8  ;;  %2077 = vmatpush3.bf16.msra.mxu1 %v2219_v9  ;;  %v2232_v24 = vld [vmem:[%s2482_s28 + $0x34] ss:$12 sps:$4 sm:$0xff]   ;;  %v2236_v28 = vld [vmem:[%s2482_s28 + $0x1c] ss:$12 sps:$4 sm:$0xff]   ;;  %v2238_v29 = vld [vmem:[%s2482_s28 + $0x18] ss:$12 sps:$4 sm:$0xff]  }
  0x2a   : > { %2078 = vmatprep.subr.bf16.mxu1 %v2375_v3  ;;  %784 = vmatprep.subr.bf16.mxu0 %v2220_v15  ;;  %v2239_v30 = vld [vmem:[%s2482_s28 + $0x20] ss:$12 sps:$4 sm:$0xff]   ;;  %v2240_v31 = vld [vmem:[%s2482_s28 + $0x4] ss:$12 sps:$4 sm:$0xff]   ;;  %v2243_v33 = vld [vmem:[%s2482_s28 + $0x8] ss:$12 sps:$4 sm:$0xff]  }
  0x2b   : > { %v2242_v32 = vld [vmem:[%s2482_s28] ss:$12 sps:$4 sm:$0xff]   ;;  %s2724_s13 = smov (!%p469_p13, %s468_s13), 11  ;;  %v2379_v4 = vmov 65535   ;;  %s2380_s25 = smov 32  }
  0x2c   : > { %v2532_v40 = vld [vmem:[%s459_s12] sm:$0x3f]  ;;  %s2163_s20 = smul.u32 3, %s2724_s13  ;;  %v930_v5 = vsel %vm928_vm3, 4294967295, %v2379_v4  ;;  %p475_p0 = scmp.lt.s32.totalorder %s474_s27, 11 }
  0x2d   : > { %785 = vmatpush1.bf16.msra.mxu0 %v2222_v16  ;;  %2079 = vmatpush3.bf16.msra.mxu1 %v2223_v17  ;;  %v628_v42 = vrot.slane %v2532_v40, %v2530_v39  ;;  %v633_v45 = vrot.slane %v2532_v40, %v2534_v41  ;;  %v2557_v8 = vsel %vm929_vm4, %v930_v5, 0  ;;  %p482_p1 = scmp.lt.s32.totalorder %s481_s11, 11  ;;  %p495_p2 = scmp.lt.s32.totalorder %s494_s22, 11 }
  0x2e   : > { %2080 = vmatprep.subr.bf16.mxu1 %v2375_v3  ;;  %786 = vmatprep.subr.bf16.mxu0 %v2224_v18  ;;  %s472_s23 = scalar_lea.vmem %s2701_s4, %s2163_s20  ;;  %s2726_s27 = smov (!%p475_p0, %s474_s27), 11 }
  0x2f   : > { %v544_v49 = vld [vmem:[%s472_s23] sm:$0x7]  ;;  %s2015_s28 = sshll.u32 %s2726_s27, 6  ;;  %s2728_s11 = smov (!%p482_p1, %s481_s11), 11 }
  0x30   : > { %v644_v51 = vrot.slane %v544_v49, %v2534_v41  ;;  %v648_v54 = vrot.slane %v544_v49, %v647_v50  ;;  %v640_v60 = vrot.slane %v544_v49, %v2530_v39  ;;  %s479_s10 = scalar_lea.vmem %s2702_s5, %s2015_s28  ;;  %s2016_s12 = sshll.u32 %s2728_s11, 7 }
  0x31   : > { %787 = vmatpush1.bf16.msra.mxu0 %v2226_v19  ;;  %2081 = vmatpush3.bf16.msra.mxu1 %v2227_v20  ;;  %s2642_s21 = scalar_lea.vmem %s2703_s6, %s2016_s12  ;;  %s2730_s22 = smov (!%p495_p2, %s494_s22), 11 }
  0x32   : > { %788 = vmatprep.subr.bf16.mxu0 %v2228_v21  ;;  %2082 = vmatprep.subr.bf16.mxu1 %v2375_v3  ;;  %s2017_s23 = sshll.u32 %s2730_s22, 7  ;;  %s488_s27 = sld [smem:[#allocation3 + %s2360_s15]] }
  0x33   : > { %s2734_s15 = smov (!%p501_p4, %s2360_s15), 2 }
  0x34   : > { %s1940_s11 = sshll.u32 %s2734_s15, 1 }
  0x35   : > { %789 = vmatpush1.bf16.msra.mxu0 %v2230_v22  ;;  %2083 = vmatpush3.bf16.msra.mxu1 %v2231_v23  ;;  %s506_s12 = sadd.s32 %s1940_s11, %s2718_s14 }
  0x36   : > { %790 = vmatprep.subr.bf16.mxu0 %v2232_v24  ;;  %2084 = vmatprep.subr.bf16.mxu1 %v2375_v3 }
  0x38   : > { %p489_p3 = scmp.lt.s32.totalorder %s488_s27, 11 }
  0x39   : > { %791 = vmatpush1.bf16.msra.mxu0 %v2234_v26  ;;  %2085 = vmatpush3.bf16.msra.mxu1 %v2235_v27 }
  0x3a   : > { %792 = vmatprep.subr.bf16.mxu0 %v2236_v28  ;;  %2086 = vmatprep.subr.bf16.mxu1 %v2375_v3  ;;  %s2732_s27 = smov (!%p489_p3, %s488_s27), 11 }
  0x3b   : > { %s1937_s28 = sshll.u32 %s2732_s27, 1 }
  0x3d   : > { %793 = vmatpush1.bf16.msra.mxu0 %v2238_v29  ;;  %2087 = vmatpush3.bf16.msra.mxu1 %v2239_v30 }
  0x3e   : > { %794 = vmatprep.subr.bf16.mxu0 %v2240_v31  ;;  %2088 = vmatprep.subr.bf16.mxu1 %v2375_v3 }
  0x41   : > { %795 = vmatpush1.bf16.msra.mxu0 %v2242_v32  ;;  %2089 = vmatpush3.bf16.msra.mxu1 %v2243_v33 }
  0x42   : > { %2094 = vmatprep.subr.bf16.mxu1 %v2375_v3  ;;  %2118 = vmatprep.subr.bf16.mxu0 %v2375_v3 }
  0xad   : > { %v613_v10 = vpop.xlane.xlu0 %612 }
  0xae   : > { %v615_v11 = vmul.f32 0.0078125, %v613_v10 }
  0xb0   : > { %v2493_v12 = vsub.f32 %v2473_v1, %v615_v11 }
  0xb2   : > { %v617_v13 = vmul.f32 %v2493_v12, %v2493_v12 }
  0xb4   : > { %v618_v14 = vsel %vm610_vm0, %v617_v13, 0.0 }
  0xb5   : > { %619 = vadd.xlane.f32.xlu0 %v618_v14 }
 0x13e   : > { %v620_v34 = vpop.xlane.xlu0 %619 }
 0x13f   : > { %v621_v35 = vmul.f32 0.0078125, %v620_v34 }
 0x141   : > { %v622_v36 = vadd.f32 1e-06, %v621_v35 }
 0x143   : > { %2292 = vrsqrt.f32 %v622_v36 }
 0x150   : > { %v2293_v43 = vpop.eup %2292 }
 0x151   : > { %v624_v44 = vmul.f32 %v2293_v43, %v2493_v12 }
 0x153   : > { %v629_v46 = vmul.f32 %v628_v42, %v624_v44 }
 0x155   : > { %v634_v47 = vadd.f32 %v633_v45, %v629_v46 }
 0x157   : > { %v635_v48 = vpack.c.bf16 %v634_v47, %v634_v47 }
 0x159   : > { %813 = vmatmul.mubr.bf16.vlgmr.msra.gmra.mxu0 %v635_v48  ;;  %2091 = vmatmul.mubr.bf16.vlgmr.msra.gmra.mxu1 %v635_v48 }
 0x15a   : > { %2096 = vmatprep.mubr.msk.bf16.mxu1 %vm2377_vm1, %v2375_v3  ;;  %2120 = vmatprep.mubr.msk.bf16.mxu0 %vm2377_vm1, %v2375_v3 }
 0x219   : > { %v814_v52 = vpop.f32.mrf.mxu0  ;;  %v855_v53 = vpop.f32.mrf.mxu1 }
 0x21a   : > { %v856_v62 = vadd.f32 %v855_v53, %v648_v54  ;;  %v815_v6 = vadd.f32 %v814_v52, %v640_v60 }
 0x21b   : > { %v816_v55 = vpop.f32.mrf.mxu0  ;;  %v2092_v56 = vpop.f32.mrf.mxu1 }
 0x21c   : > { %v817_v57 = vadd.f32 %v816_v55, %v644_v51  ;;  %v2554_v7 = vpack.c.bf16 %v856_v62, %v856_v62  ;;  %v863_v9 = vpack.c.bf16 %v815_v6, %v815_v6 }
 0x21d   : > { %v818_v58 = vpop.f32.mrf.mxu0  ;;  %v858_v59 = vpop.f32.mrf.mxu1 }
 0x21e   : > { %v861_v61 = vpack.c.bf16 %v817_v57, %v817_v57  ;;  %v933_v10 = vand.u32 %v2557_v8, %v2554_v7 }
 0x21f   : > { %v819_v63 = vpop.f32.mrf.mxu0  ;;  %v2093_v0 = vpop.f32.mrf.mxu1 }
 0x220   : > { %979 = vrot.lane.b32.xlu0 %v861_v61, %s2378_s24  ;;  %v869_v2 = vsel %vm864_vm2, %v861_v61, 0 }
 0x221   : > { %2095 = vmatpush3.bf16.xpose.msra.mxu1 %v869_v2 }
 0x222   : > { %2100 = vmatprep.subr.bf16.mxu1 %v2375_v3 }
 0x224   : > { %1200 = vrot.lane.b32.xlu0 %v861_v61, %s2380_s25 }
 0x228   : > { %2097 = vmatmul.mubr.msk.bf16.vlgmr.msra.gmra.mxu1 %vm864_vm2, %v863_v9 }
 0x229   : > { %2101 = vmatpush3.bf16.msra.mxu1 %v933_v10  ;;  %2102 = vmatprep.mubr.msk.bf16.mxu1 %vm2377_vm1, %v2375_v3 }
 0x22a   : > { %2106 = vmatprep.subr.bf16.mxu1 %v2375_v3 }
 0x292   : > { %v980_v23 = vpop.permute.xlu0 %979 }
 0x293   : > { %v985_v33 = vsel %vm864_vm2, %v980_v23, 0 }
 0x296   : > { %v1201_v28 = vpop.permute.xlu0 %1200 }
 0x297   : > { %v1206_v31 = vsel %vm864_vm2, %v1201_v28, 0 }
 0x2e8   : > { %v905_v11 = vpop.f32.mrf.mxu1 }
 0x2e9   : > { %v912_v12 = vsel %vm911_vm5, %v905_v11, -inf }
 0x2ea   : > { %913 = vmax.xlane.f32.xlu1 %v912_v12  ;;  %v2098_v13 = vpop.f32.mrf.mxu1 }
 0x2ec   : > { %v908_v14 = vpop.f32.mrf.mxu1 }
 0x2ee   : > { %v2099_v15 = vpop.f32.mrf.mxu1 }
 0x373   : > { %v914_v16 = vpop.xlane.xlu1 %913 }
 0x374   : > { %v915_v17 = vsub.f32 %v905_v11, %v914_v16 }
 0x376   : > { %v916_v18 = vmul.f32 1.442695, %v915_v17 }
 0x378   : > { %2294 = vpow2.f32 %v916_v18 }
 0x385   : > { %v2295_v19 = vpop.eup %2294 }
 0x386   : > { %v918_v20 = vsel %vm911_vm5, %v2295_v19, 0.0 }
 0x387   : > { %919 = vadd.xlane.f32.xlu1 %v918_v20 }
 0x398   : > { %976 = vrot.lane.b32.xlu1 %v863_v9, %s2378_s24 }
 0x39c   : > { %1090 = vrot.lane.b32.xlu1 %v861_v61, %s2381_s26 }
 0x3a0   : > { %1088 = vrot.lane.b32.xlu1 %v863_v9, %s2381_s26 }
 0x3a4   : > { %1198 = vrot.lane.b32.xlu1 %v863_v9, %s2380_s25 }
 0x410   : > { %v920_v21 = vpop.xlane.xlu1 %919 }
 0x411   : > { %2296 = vrcp.f32 %v920_v21 }
 0x414   : > { %v977_v22 = vpop.permute.xlu1 %976 }
 0x418   : > { %v1091_v24 = vpop.permute.xlu1 %1090 }
 0x419   : > { %v1096_v26 = vsel %vm864_vm2, %v1091_v24, 0 }
 0x41a   : > { %2119 = vmatpush3.bf16.xpose.msra.mxu0 %v1096_v26 }
 0x41b   : > { %2130 = vmatprep.subr.bf16.mxu0 %v2375_v3 }
 0x41c   : > { %v1089_v30 = vpop.permute.xlu1 %1088 }
 0x41e   : > { %v2297_v27 = vpop.eup %2296 }
 0x41f   : > { %v922_v29 = vmul.f32 %v2297_v27, %v2295_v19 }
 0x420   : > { %v1199_v34 = vpop.permute.xlu1 %1198 }
 0x421   : > { %2121 = vmatmul.mubr.msk.bf16.vlgmr.msra.gmra.mxu0 %vm864_vm2, %v1089_v30  ;;  %v923_v32 = vpack.c.bf16 %v922_v29, %v922_v29  ;;  %v2245_v30 = vld [vmem:[%s479_s10 + $0x30] sm:$0xff]  }
 0x422   : > { %2131 = vmatpush3.bf16.xpose.msra.mxu0 %v1206_v31  ;;  %2132 = vmatprep.mubr.msk.bf16.mxu0 %vm2377_vm1, %v2375_v3  ;;  %v2246_v31 = vld [vmem:[%s479_s10 + $0x28] sm:$0xff]  }
 0x423   : > { %2103 = vmatmul.mubr.msk.bf16.vlgmr.msra.gmra.mxu1 %vm924_vm6, %v923_v32  ;;  %2142 = vmatprep.subr.bf16.mxu0 %v2375_v3  ;;  %v2248_v32 = vld [vmem:[%s479_s10 + $0x18] sm:$0xff]  }
 0x424   : > { %2107 = vmatpush3.bf16.xpose.msra.mxu1 %v985_v33  ;;  %2108 = vmatprep.mubr.msk.bf16.mxu1 %vm2377_vm1, %v2375_v3  ;;  %v2249_v33 = vld [vmem:[%s479_s10 + $0x10] sm:$0xff]  }
 0x425   : > { %2112 = vmatprep.subr.bf16.mxu1 %v2375_v3 }
 0x429   : > { %2133 = vmatmul.mubr.msk.bf16.vlgmr.msra.gmra.mxu0 %vm864_vm2, %v1199_v34  ;;  %v2250_v34 = vld [vmem:[%s479_s10 + $0x8] sm:$0xff]  }
 0x42a   : > { %2158 = vmatprep.mubr.msk.bf16.mxu0 %vm2377_vm1, %v2375_v3 }
 0x42b   : > { %2109 = vmatmul.mubr.msk.bf16.vlgmr.msra.gmra.mxu1 %vm864_vm2, %v977_v22 }
 0x42c   : > { %2114 = vmatprep.mubr.msk.bf16.mxu1 %vm2377_vm1, %v2375_v3 }
 0x4e1   : > { %v1132_v35 = vpop.f32.mrf.mxu0 }
 0x4e2   : > { %v1138_v36 = vsel %vm911_vm5, %v1132_v35, -inf }
 0x4e3   : > { %1139 = vmax.xlane.f32.xlu1 %v1138_v36  ;;  %v2590_v37 = vpop.f32.mrf.mxu1  ;;  %v2122_v38 = vpop.f32.mrf.mxu0 }
 0x4e4   : > { %v2251_v38 = vld [vmem:[%s479_s10] sm:$0xff]  }
 0x4e5   : > { %v2104_v42 = vpop.f32.mrf.mxu1  ;;  %v1135_v43 = vpop.f32.mrf.mxu0 }
 0x4e7   : > { %v972_v44 = vpop.f32.mrf.mxu1  ;;  %v2123_v45 = vpop.f32.mrf.mxu0 }
 0x4e9   : > { %v2105_v46 = vpop.f32.mrf.mxu1  ;;  %v1242_v47 = vpop.f32.mrf.mxu0 }
 0x4ea   : > { %v1248_v55 = vsel %vm911_vm5, %v1242_v47, -inf }
 0x4eb   : > { %v1021_v48 = vpop.f32.mrf.mxu1  ;;  %v2134_v49 = vpop.f32.mrf.mxu0 }
 0x4ec   : > { %v1027_v50 = vsel %vm911_vm5, %v1021_v48, -inf }
 0x4ed   : > { %v1245_v51 = vpop.f32.mrf.mxu0  ;;  %1028 = vmax.xlane.f32.xlu0 %v1027_v50  ;;  %v2110_v52 = vpop.f32.mrf.mxu1 }
 0x4ef   : > { %v1024_v53 = vpop.f32.mrf.mxu1  ;;  %v2135_v54 = vpop.f32.mrf.mxu0 }
 0x4f1   : > { %1249 = vmax.xlane.f32.xlu0 %v1248_v55  ;;  %v2111_v56 = vpop.f32.mrf.mxu1 }
 0x56c   : > { %v1140_v57 = vpop.xlane.xlu1 %1139 }
 0x56d   : > { %v1141_v58 = vsub.f32 %v1132_v35, %v1140_v57 }
 0x56f   : > { %v1142_v59 = vmul.f32 1.442695, %v1141_v58  ;;  %v1375_v58 = vrot.slane %v2532_v40, 4 }
 0x571   : > { %2298 = vpow2.f32 %v1142_v59 }
 0x576   : > { %v1029_v60 = vpop.xlane.xlu0 %1028 }
 0x577   : > { %v1030_v61 = vsub.f32 %v1021_v48, %v1029_v60 }
 0x579   : > { %v1031_v62 = vmul.f32 1.442695, %v1030_v61 }
 0x57a   : > { %v1250_v63 = vpop.xlane.xlu0 %1249 }
 0x57b   : > { %2300 = vpow2.f32 %v1031_v62  ;;  %v1251_v0 = vsub.f32 %v1242_v47, %v1250_v63 }
 0x57d   : > { %v1252_v2 = vmul.f32 1.442695, %v1251_v0 }
 0x57e   : > { %v2299_v4 = vpop.eup %2298 }
 0x57f   : > { %2302 = vpow2.f32 %v1252_v2  ;;  %v1144_v5 = vsel %vm911_vm5, %v2299_v4, 0.0  ;;  %v2254_v2 = vld [vmem:[%s2642_s21 + $0x74] ss:$8 sps:$4 sm:$0xff]  }
 0x580   : > { %1145 = vadd.xlane.f32.xlu0 %v1144_v5  ;;  %v2257_v5 = vld [vmem:[%s2642_s21 + $0x64] ss:$8 sps:$4 sm:$0xff]  }
 0x588   : > { %v2301_v6 = vpop.eup %2300 }
 0x589   : > { %v1033_v9 = vsel %vm911_vm5, %v2301_v6, 0.0 }
 0x58a   : > { %1034 = vadd.xlane.f32.xlu0 %v1033_v9 }
 0x58c   : > { %v2303_v10 = vpop.eup %2302 }
 0x58d   : > { %v1254_v11 = vsel %vm911_vm5, %v2303_v10, 0.0 }
 0x58e   : > { %1255 = vadd.xlane.f32.xlu1 %v1254_v11 }
 0x59f   : > { %1150 = vrot.lane.b32.xlu1 %v2554_v7, %s2381_s26 }
 0x5a0   : > { %1040 = vrot.lane.b32.xlu0 %v2554_v7, %s2378_s24 }
 0x5a3   : > { %1260 = vrot.lane.b32.xlu1 %v2554_v7, %s2380_s25 }
 0x609   : > { %v1146_v12 = vpop.xlane.xlu0 %1145 }
 0x613   : > { %v1035_v13 = vpop.xlane.xlu0 %1034 }
 0x614   : > { %2304 = vrcp.f32 %v1035_v13  ;;  %v2260_v13 = vld [vmem:[%s2642_s21 + $0x54] ss:$8 sps:$4 sm:$0xff]  }
 0x615   : > { %2306 = vrcp.f32 %v1146_v12 }
 0x617   : > { %v1041_v14 = vpop.permute.xlu0 %1040  ;;  %v1256_v16 = vpop.xlane.xlu1 %1255 }
 0x618   : > { %v1046_v15 = vand.u32 %v1041_v14, %v2557_v8  ;;  %2308 = vrcp.f32 %v1256_v16  ;;  %v2258_v14 = vld [vmem:[%s2642_s21 + $0x50] ss:$8 sps:$4 sm:$0xff]   ;;  %v2263_v16 = vld [vmem:[%s2642_s21 + $0x44] ss:$8 sps:$4 sm:$0xff]  }
 0x61a   : > { %2113 = vmatpush3.bf16.msra.mxu1 %v1046_v15  ;;  %v2261_v15 = vld [vmem:[%s2642_s21 + $0x40] ss:$8 sps:$4 sm:$0xff]  }
 0x61b   : > { %2124 = vmatprep.subr.bf16.mxu1 %v2375_v3  ;;  %v1151_v18 = vpop.permute.xlu1 %1150 }
 0x61c   : > { %v1156_v22 = vand.u32 %v1151_v18, %v2557_v8  ;;  %v2264_v18 = vld [vmem:[%s2642_s21 + $0x30] ss:$8 sps:$4 sm:$0xff]  }
 0x61f   : > { %v1261_v23 = vpop.permute.xlu1 %1260 }
 0x620   : > { %v1266_v27 = vand.u32 %v1261_v23, %v2557_v8  ;;  %v2244_v8 = vld [vmem:[%s479_s10 + $0x38] sm:$0xff]   ;;  %v2273_v23 = vld [vmem:[%s2642_s21] ss:$8 sps:$4 sm:$0xff]  }
 0x621   : > { %v2305_v17 = vpop.eup %2304  ;;  %2143 = vmatpush3.bf16.msra.mxu0 %v2244_v8 }
 0x622   : > { %v1037_v19 = vmul.f32 %v2305_v17, %v2301_v6  ;;  %v2307_v21 = vpop.eup %2306  ;;  %2144 = vmatprep.subr.bf16.mxu0 %v2375_v3  ;;  %v2266_v17 = vld [vmem:[%s2642_s21 + $0x34] ss:$8 sps:$4 sm:$0xff]  }
 0x623   : > { %v1148_v7 = vmul.f32 %v2307_v21, %v2299_v4  ;;  %v2255_v4 = vld [vmem:[%s2642_s21 + $0x60] ss:$8 sps:$4 sm:$0xff]   ;;  %v2272_v21 = vld [vmem:[%s2642_s21 + $0x14] ss:$8 sps:$4 sm:$0xff]  }
 0x624   : > { %v1038_v20 = vpack.c.bf16 %v1037_v19, %v1037_v19  ;;  %v2269_v19 = vld [vmem:[%s2642_s21 + $0x24] ss:$8 sps:$4 sm:$0xff]  }
 0x625   : > { %v1149_v24 = vpack.c.bf16 %v1148_v7, %v1148_v7  ;;  %v2309_v26 = vpop.eup %2308  ;;  %2145 = vmatpush3.bf16.msra.mxu0 %v2245_v30  ;;  %v2275_v7 = vld [vmem:[%s2642_s21 + $0x4] ss:$8 sps:$4 sm:$0xff]   ;;  %v1435_v30 = vrot.slane %v2532_v40, 3 }
 0x626   : > { %2115 = vmatmul.mubr.msk.bf16.vlgmr.msra.gmra.mxu1 %vm924_vm6, %v1038_v20  ;;  %v1258_v28 = vmul.f32 %v2309_v26, %v2303_v10  ;;  %2146 = vmatprep.subr.bf16.mxu0 %v2375_v3  ;;  %v2267_v20 = vld [vmem:[%s2642_s21 + $0x20] ss:$8 sps:$4 sm:$0xff]  }
 0x627   : > { %2125 = vmatpush3.bf16.msra.mxu1 %v1156_v22  ;;  %2126 = vmatprep.mubr.msk.bf16.mxu1 %vm2377_vm1, %v2375_v3  ;;  %v2270_v22 = vld [vmem:[%s2642_s21 + $0x10] ss:$8 sps:$4 sm:$0xff]  }
 0x628   : > { %2136 = vmatprep.subr.bf16.mxu1 %v2375_v3  ;;  %v1259_v29 = vpack.c.bf16 %v1258_v28, %v1258_v28  ;;  %v1432_v28 = vrot.slane %v2532_v40, 2 }
 0x629   : > { %2147 = vmatpush3.bf16.msra.mxu0 %v2246_v31 }
 0x62a   : > { %2148 = vmatprep.subr.bf16.mxu0 %v2375_v3 }
 0x62e   : > { %2127 = vmatmul.mubr.msk.bf16.vlgmr.msra.gmra.mxu1 %vm924_vm6, %v1149_v24 }
 0x62f   : > { %2137 = vmatpush3.bf16.msra.mxu1 %v1266_v27  ;;  %2138 = vmatprep.mubr.msk.bf16.mxu1 %vm2377_vm1, %v2375_v3 }
 0x630   : > { %1530 = vmatprep.subr.bf16.mxu1 %v2254_v2 }
 0x636   : > { %2139 = vmatmul.mubr.msk.bf16.vlgmr.msra.gmra.mxu1 %vm924_vm6, %v1259_v29 }
 0x637   : > { %1562 = vmatprep.mubr.bf16.mxu1 %v2376_v25  ;;  %v2247_v25 = vld [vmem:[%s479_s10 + $0x20] sm:$0xff]   ;;  %s492_s10 = scalar_lea.vmem %s2704_s7, %s1937_s28 }
 0x638   : > { %2149 = vmatpush3.bf16.msra.mxu0 %v2247_v25 }
 0x639   : > { %2150 = vmatprep.subr.bf16.mxu0 %v2375_v3 }
 0x63c   : > { %2151 = vmatpush3.bf16.msra.mxu0 %v2248_v32 }
 0x63d   : > { %2152 = vmatprep.subr.bf16.mxu0 %v2375_v3 }
 0x640   : > { %2153 = vmatpush3.bf16.msra.mxu0 %v2249_v33 }
 0x641   : > { %2154 = vmatprep.subr.bf16.mxu0 %v2375_v3 }
 0x644   : > { %2155 = vmatpush3.bf16.msra.mxu0 %v2250_v34 }
 0x645   : > { %2156 = vmatprep.subr.bf16.mxu0 %v2375_v3 }
 0x648   : > { %2157 = vmatpush3.bf16.msra.mxu0 %v2251_v38 }
 0x6e6   : > { %v1082_v35 = vpop.f32.mrf.mxu1 }
 0x6e7   : > { %1309 = vrot.lane.b32.xlu1 %v1082_v35, %s2380_s25 }
 0x6e8   : > { %v2116_v36 = vpop.f32.mrf.mxu1 }
 0x6ea   : > { %v1085_v42 = vpop.f32.mrf.mxu1 }
 0x6ec   : > { %v2117_v43 = vpop.f32.mrf.mxu1 }
 0x6ee   : > { %v1192_v44 = vpop.f32.mrf.mxu1 }
 0x6ef   : > { %1313 = vrot.lane.b32.xlu0 %v1192_v44, %s2381_s26  ;;  %s499_s26 = scalar_lea.vmem %s2705_s8, %s2017_s23 }
 0x6f0   : > { %v2128_v45 = vpop.f32.mrf.mxu1  ;;  %v2276_v33 = vld [vmem:[%s499_s26 + $0x78] sm:$0xff]   ;;  %v2278_v35 = vld [vmem:[%s499_s26 + $0x70] sm:$0xff]   ;;  %v2280_v38 = vld [vmem:[%s499_s26 + $0x68] sm:$0xff]  }
 0x6f1   : > { %v2277_v34 = vld [vmem:[%s499_s26 + $0x38] sm:$0xff]   ;;  %2052 = vmatprep.subr.bf16.mxu0 %v2276_v33  ;;  %v2279_v36 = vld [vmem:[%s499_s26 + $0x30] sm:$0xff]   ;;  %v2281_v42 = vld [vmem:[%s499_s26 + $0x28] sm:$0xff]  }
 0x6f2   : > { %v1195_v46 = vpop.f32.mrf.mxu1  ;;  %v2282_v43 = vld [vmem:[%s499_s26 + $0x60] sm:$0xff]   ;;  %v2284_v45 = vld [vmem:[%s499_s26 + $0x58] sm:$0xff]  }
 0x6f3   : > { %v2283_v44 = vld [vmem:[%s499_s26 + $0x20] sm:$0xff]   ;;  %v2285_v46 = vld [vmem:[%s499_s26 + $0x18] sm:$0xff]  }
 0x6f4   : > { %v2129_v47 = vpop.f32.mrf.mxu1 }
 0x6f5   : > { %v2286_v47 = vld [vmem:[%s499_s26 + $0x50] sm:$0xff]  }
 0x6f6   : > { %v1302_v48 = vpop.f32.mrf.mxu1 }
 0x6f7   : > { %1317 = vrot.lane.b32.xlu1 %v1302_v48, %s2378_s24  ;;  %v2287_v48 = vld [vmem:[%s499_s26 + $0x10] sm:$0xff]  }
 0x6f8   : > { %v2140_v49 = vpop.f32.mrf.mxu1 }
 0x6f9   : > { %v2288_v49 = vld [vmem:[%s499_s26 + $0x48] sm:$0xff]  }
 0x6fa   : > { %v1305_v50 = vpop.f32.mrf.mxu1 }
 0x6fb   : > { %v2289_v50 = vld [vmem:[%s499_s26 + $0x8] sm:$0xff]  }
 0x6fc   : > { %v2141_v51 = vpop.f32.mrf.mxu1 }
 0x6fd   : > { %v2290_v51 = vld [vmem:[%s499_s26 + $0x40] sm:$0xff]  }
 0x759   : > { %v1310_v52 = vpop.permute.xlu1 %1309 }
 0x75a   : > { %v1320_v3 = vsel %vm864_vm2, %v2590_v37, %v1310_v52  ;;  %v2291_v52 = vld [vmem:[%s499_s26] sm:$0xff]  }
 0x761   : > { %v1314_v53 = vpop.permute.xlu0 %1313 }
 0x762   : > { %v1322_v54 = vsel %vm1321_vm7, %v1320_v3, %v1314_v53  ;;  %v577_v53 = vld [vmem:[%s492_s10] sm:$0x3] }
 0x763   : > { %v1523_v3 = vrot.slane %v577_v53, %v2530_v39 }
 0x769   : > { %v1318_v55 = vpop.permute.xlu1 %1317 }
 0x76a   : > { %v1324_v56 = vsel %vm1323_vm8, %v1322_v54, %v1318_v55  ;;  %v1527_v54 = vrot.slane %v577_v53, %v2534_v41  ;;  %v1723_v53 = vrot.slane %v2532_v40, 5 }
 0x76b   : > { %v1325_v57 = vpack.c.bf16 %v1324_v56, %v1324_v56 }
 0x76d   : > { %2159 = vmatmul.mubr.bf16.vlgmr.msra.gmra.mxu0 %v1325_v57 }
 0x76e   : > { %2053 = vmatpush3.bf16.msra.mxu0 %v2277_v34 }
 0x76f   : > { %2054 = vmatprep.subr.bf16.mxu0 %v2278_v35 }
 0x772   : > { %2055 = vmatpush3.bf16.msra.mxu0 %v2279_v36 }
 0x773   : > { %2056 = vmatprep.subr.bf16.mxu0 %v2280_v38 }
 0x776   : > { %2057 = vmatpush3.bf16.msra.mxu0 %v2281_v42 }
 0x777   : > { %2058 = vmatprep.subr.bf16.mxu0 %v2282_v43 }
 0x77a   : > { %2059 = vmatpush3.bf16.msra.mxu0 %v2283_v44 }
 0x77b   : > { %2060 = vmatprep.subr.bf16.mxu0 %v2284_v45 }
 0x77e   : > { %2061 = vmatpush3.bf16.msra.mxu0 %v2285_v46 }
 0x77f   : > { %2062 = vmatprep.subr.bf16.mxu0 %v2286_v47 }
 0x782   : > { %2063 = vmatpush3.bf16.msra.mxu0 %v2287_v48 }
 0x783   : > { %2064 = vmatprep.subr.bf16.mxu0 %v2288_v49 }
 0x786   : > { %2065 = vmatpush3.bf16.msra.mxu0 %v2289_v50 }
 0x787   : > { %2066 = vmatprep.subr.bf16.mxu0 %v2290_v51 }
 0x78a   : > { %2067 = vmatpush3.bf16.msra.mxu0 %v2291_v52 }
 0x82d   : > { %v1411_v59 = vpop.f32.mrf.mxu0 }
 0x82e   : > { %v1412_v60 = vadd.f32 %v1411_v59, %v1375_v58 }
 0x82f   : > { %v2160_v61 = vpop.f32.mrf.mxu0 }
 0x830   : > { %v2634_v62 = vadd.f32 %v1412_v60, %v2473_v1  ;;  %v2252_v1 = vld [vmem:[%s2642_s21 + $0x70] ss:$8 sps:$4 sm:$0xff]   ;;  %s507_s21 = scalar_lea.vmem %s2706_s9, %s506_s12 }
 0x831   : > { %v1414_v63 = vpop.f32.mrf.mxu0  ;;  %1531 = vmatpush1.bf16.msra.mxu1 %v2252_v1 }
 0x832   : > { %v1419_v0 = vsel %vm1418_vm9, %v2634_v62, 0.0  ;;  %1532 = vmatprep.subr.bf16.mxu1 %v2257_v5 }
 0x833   : > { %1420 = vadd.xlane.f32.xlu0 %v1419_v0  ;;  %v2161_v37 = vpop.f32.mrf.mxu0 }
 0x835   : > { %1533 = vmatpush1.bf16.msra.mxu1 %v2255_v4 }
 0x836   : > { %1534 = vmatprep.subr.bf16.mxu1 %v2260_v13 }
 0x839   : > { %1535 = vmatpush1.bf16.msra.mxu1 %v2258_v14 }
 0x83a   : > { %1536 = vmatprep.subr.bf16.mxu1 %v2263_v16 }
 0x83d   : > { %1537 = vmatpush1.bf16.msra.mxu1 %v2261_v15 }
 0x83e   : > { %1538 = vmatprep.subr.bf16.mxu1 %v2266_v17 }
 0x841   : > { %1539 = vmatpush1.bf16.msra.mxu1 %v2264_v18 }
 0x842   : > { %1540 = vmatprep.subr.bf16.mxu1 %v2269_v19 }
 0x845   : > { %1541 = vmatpush1.bf16.msra.mxu1 %v2267_v20 }
 0x846   : > { %1542 = vmatprep.subr.bf16.mxu1 %v2272_v21 }
 0x849   : > { %1543 = vmatpush1.bf16.msra.mxu1 %v2270_v22 }
 0x84a   : > { %1544 = vmatprep.subr.bf16.mxu1 %v2275_v7 }
 0x84d   : > { %1545 = vmatpush1.bf16.msra.mxu1 %v2273_v23 }
 0x8bc   : > { %v1421_v6 = vpop.xlane.xlu0 %1420 }
 0x8bd   : > { %v1422_v9 = vmul.f32 0.0078125, %v1421_v6 }
 0x8bf   : > { %v1423_v10 = vsub.f32 %v2634_v62, %v1422_v9 }
 0x8c1   : > { %v1424_v11 = vmul.f32 %v1423_v10, %v1423_v10 }
 0x8c3   : > { %v1425_v12 = vsel %vm1418_vm9, %v1424_v11, 0.0 }
 0x8c4   : > { %1426 = vadd.xlane.f32.xlu1 %v1425_v12 }
 0x94d   : > { %v1427_v24 = vpop.xlane.xlu1 %1426 }
 0x94e   : > { %v1428_v26 = vmul.f32 0.0078125, %v1427_v24 }
 0x950   : > { %v1429_v27 = vadd.f32 1e-06, %v1428_v26 }
 0x952   : > { %2310 = vrsqrt.f32 %v1429_v27 }
 0x95f   : > { %v2311_v29 = vpop.eup %2310 }
 0x960   : > { %v1431_v8 = vmul.f32 %v2311_v29, %v1423_v10 }
 0x962   : > { %v1434_v31 = vmul.f32 %v1432_v28, %v1431_v8 }
 0x964   : > { %v1437_v25 = vadd.f32 %v1435_v30, %v1434_v31 }
 0x966   : > { %v1438_v32 = vpack.c.bf16 %v1437_v25, %v1437_v25 }
 0x968   : > { %1563 = vmatmul.mubr.bf16.vlgmr.msra.gmra.mxu1 %v1438_v32 }
 0xa28   : > { %v1564_v55 = vpop.f32.mrf.mxu1 }
 0xa29   : > { %v1565_v56 = vadd.f32 %v1564_v55, %v1523_v3 }
 0xa2a   : > { %v1566_v57 = vpop.f32.mrf.mxu1 }
 0xa2b   : > { %v1573_v58 = vmul.f32 0.70710677, %v1565_v56  ;;  %v1567_v59 = vadd.f32 %v1566_v57, %v1527_v54  ;;  %v1571_v44 = vmul.f32 0.5, %v1565_v56 }
 0xa2c   : > { %v1568_v60 = vpop.f32.mrf.mxu1 }
 0xa2d   : > { %v1575_v61 = vand.u32 2147483647, %v1573_v58  ;;  %v1574_v63 = vmul.f32 0.70710677, %v1567_v59  ;;  %v1603_v6 = vsub.f32 0.0, %v1573_v58  ;;  %vm1615_vm10 = vcmp.ge.f32.partialorder %v1573_v58, 0.0 }
 0xa2e   : > { %v1569_v0 = vpop.f32.mrf.mxu1  ;;  %v1572_v46 = vmul.f32 0.5, %v1567_v59 }
 0xa2f   : > { %v1577_v37 = vmul.f32 0.3275911, %v1575_v61  ;;  %v1576_v1 = vand.u32 2147483647, %v1574_v63  ;;  %v1604_v39 = vsub.f32 0.0, %v1574_v63  ;;  %v1605_v9 = vmul.f32 %v1603_v6, %v1573_v58 }
 0xa30   : > { %vm1616_vm11 = vcmp.ge.f32.partialorder %v1574_v63, 0.0 }
 0xa31   : > { %v1579_v2 = vadd.f32 1.0, %v1577_v37  ;;  %v1578_v4 = vmul.f32 0.3275911, %v1576_v1  ;;  %v1606_v10 = vmul.f32 %v1604_v39, %v1574_v63  ;;  %v1607_v12 = vmul.f32 1.442695, %v1605_v9 }
 0xa33   : > { %2312 = vrcp.f32 %v1579_v2  ;;  %v1580_v5 = vadd.f32 1.0, %v1578_v4  ;;  %v1609_v15 = vmul.f32 1.442695, %v1606_v10 }
 0xa35   : > { %2314 = vrcp.f32 %v1580_v5 }
 0xa36   : > { %2316 = vpow2.f32 %v1607_v12 }
 0xa37   : > { %2318 = vpow2.f32 %v1609_v15 }
 0xa40   : > { %v2313_v41 = vpop.eup %2312 }
 0xa41   : > { %v1585_v11 = vmul.f32 1.0614054, %v2313_v41 }
 0xa42   : > { %v2315_v13 = vpop.eup %2314 }
 0xa43   : > { %v1587_v14 = vadd.f32 -1.4531521, %v1585_v11  ;;  %v1586_v16 = vmul.f32 1.0614054, %v2315_v13  ;;  %v2317_v8 = vpop.eup %2316 }
 0xa44   : > { %v2319_v32 = vpop.eup %2318 }
 0xa45   : > { %v1589_v17 = vmul.f32 %v2313_v41, %v1587_v14  ;;  %v1588_v18 = vadd.f32 -1.4531521, %v1586_v16 }
 0xa47   : > { %v1591_v19 = vadd.f32 1.4214138, %v1589_v17  ;;  %v1590_v20 = vmul.f32 %v2315_v13, %v1588_v18 }
 0xa49   : > { %v1593_v21 = vmul.f32 %v2313_v41, %v1591_v19  ;;  %v1592_v22 = vadd.f32 1.4214138, %v1590_v20 }
 0xa4b   : > { %v1595_v7 = vadd.f32 -0.28449672, %v1593_v21  ;;  %v1594_v23 = vmul.f32 %v2315_v13, %v1592_v22 }
 0xa4d   : > { %v1597_v24 = vmul.f32 %v2313_v41, %v1595_v7  ;;  %v1596_v26 = vadd.f32 -0.28449672, %v1594_v23 }
 0xa4f   : > { %v1599_v27 = vadd.f32 0.2548296, %v1597_v24  ;;  %v1598_v28 = vmul.f32 %v2315_v13, %v1596_v26 }
 0xa51   : > { %v1601_v29 = vmul.f32 %v2313_v41, %v1599_v27  ;;  %v1600_v30 = vadd.f32 0.2548296, %v1598_v28 }
 0xa53   : > { %v1611_v31 = vmul.f32 %v2317_v8, %v1601_v29  ;;  %v1602_v25 = vmul.f32 %v2315_v13, %v1600_v30 }
 0xa55   : > { %v1613_v33 = vsub.f32 1.0, %v1611_v31  ;;  %v1612_v34 = vmul.f32 %v2319_v32, %v1602_v25 }
 0xa57   : > { %v1617_v35 = vsub.f32 0.0, %v1613_v33  ;;  %v1614_v36 = vsub.f32 1.0, %v1612_v34 }
 0xa59   : > { %v1619_v38 = vsel %vm1615_vm10, %v1613_v33, %v1617_v35  ;;  %v1618_v43 = vsub.f32 0.0, %v1614_v36 }
 0xa5a   : > { %v1621_v42 = vadd.f32 1.0, %v1619_v38 }
 0xa5b   : > { %v1620_v45 = vsel %vm1616_vm11, %v1614_v36, %v1618_v43 }
 0xa5c   : > { %v1622_v47 = vadd.f32 1.0, %v1620_v45  ;;  %v1623_v48 = vmul.f32 %v1621_v42, %v1571_v44 }
 0xa5e   : > { %v1624_v49 = vmul.f32 %v1622_v47, %v1572_v46  ;;  %v1625_v51 = vpack.c.bf16 %v1623_v48, %v1623_v48 }
 0xa60   : > { %v1626_v50 = vpack.c.bf16 %v1624_v49, %v1624_v49 }
 0xa62   : > { %1757 = vmatprep.mubr.bf16.mxu0 %v1626_v50 }
 0xa63   : > { %1758 = vmatmul.mubr.bf16.vlgmr.msra.gmra.mxu0 %v1625_v51 }
 0xb23   : > { %v2068_v52 = vpop.f32.mrf.mxu0 }
 0xb25   : > { %v2069_v3 = vpop.f32.mrf.mxu0 }
 0xb26   : > { %v2070_v54 = vadd.f32 %v2069_v3, %v2068_v52 }
 0xb27   : > { %v2071_v55 = vpop.f32.mrf.mxu0 }
 0xb28   : > { %v1760_v56 = vadd.f32 %v2070_v54, %v1723_v53 }
 0xb29   : > { %v2072_v57 = vpop.f32.mrf.mxu0 }
 0xb2a   : > { %v1765_v58 = vadd.f32 %v1760_v56, %v2634_v62 }
 0xb2c   : > { %1766 = vst [vmem:[%s507_s21] sm:$0x1] %v1765_v58 }
 0xb2d PF: > { %s25_s17 = sadd.s32 1, %s2372_s17   ;;  %s2707_s14 = smov %s2364_s16 }
 0xb2e   : > { %p22_p5 = scmp.ge.s32.totalorder %s25_s17, 8   ;;  %s2708_s15 = smov %s2368_s0 }
 0xb2f   : > { %s2709_s16 = smov %s2712_s18  ;;  %s2710_s0 = smov %s2716_s19 }
 0xb30   :  { %24 = sbr.rel (!%p22_p5) target bundleno = 18 (0x12), region = 103 }

</bundles_post_ra>
